<compile_context>
chip_gen: v7x
topology: tpu7x:2x2x1
jax: 0.10.0
libtpu: 0.0.40
codegen_flags: <defaults>
</compile_context>

<pallas_src>
import functools

import jax
import jax.numpy as jnp
from jax.experimental import pallas as pl
from jax.experimental.pallas import tpu as pltpu


def _rhn_kernel(x_ref, h0_ref, wih_ref, bih_ref, wh_ref, bh_ref, out_ref, *,
                seq_len, n_steps):
    """Single invocation: every operand is a whole-array VMEM block."""
    # Hoisted (small) parameter loads for the input projection.
    w_ih = wih_ref[...]                      # (in_size, hidden)
    b_ih = bih_ref[...]                      # (1, hidden)

    def timestep(t, hx):
        x_t = x_ref[t]                       # (batch, in_size), dynamic leading index
        init_proj = (
            jnp.dot(x_t, w_ih, preferred_element_type=jnp.float32) + b_ih
        )                                    # (batch, hidden)
        for step in range(n_steps):          # static micro-step unroll
            z = (
                jnp.dot(hx, wh_ref[step], preferred_element_type=jnp.float32)
                + bh_ref[step:step + 1, :]   # (1, hidden) broadcast
            )
            if step == 0:
                z = z + init_proj
            s = jax.nn.sigmoid(z)            # single EUP transcendental per element
            # tanh(z) from the same sigmoid: (2s-1) / (s^2 + (1-s)^2)
            h = (2.0 * s - 1.0) / (2.0 * s * (s - 1.0) + 1.0)
            hx = hx + s * (h - hx)           # == h*s + hx*(1-s)
        out_ref[t] = hx                      # VMEM store; one HBM slab writeback at end
        return hx

    hx0 = h0_ref[0]                          # (batch, hidden)
    jax.lax.fori_loop(0, seq_len, timestep, hx0, unroll=True)


def rhn_forward(x, h0, w_init_h, b_init_h, w_h, b_h, *, n_steps):
    """
    x        : (seq, batch, in_size)   float32
    h0       : (1, batch, hidden)      float32   (the 'initial_state')
    w_init_h : (in_size, hidden)       pre-transposed Linear weight
    b_init_h : (1, hidden)
    w_h      : (n_steps, hidden, hidden)
    b_h      : (n_steps, hidden)
    returns  : (seq, batch, hidden)
    """
    seq, batch, in_size = x.shape
    hidden = h0.shape[-1]

    kernel = functools.partial(_rhn_kernel, seq_len=seq, n_steps=n_steps)

    matmul_flops = seq * (2 * batch * in_size * hidden
                          + n_steps * 2 * batch * hidden * hidden)
    vpu_flops = seq * n_steps * batch * hidden * 8
    bytes_accessed = 4 * (x.size + h0.size + w_init_h.size + b_init_h.size
                          + w_h.size + b_h.size + seq * batch * hidden)

    return pl.pallas_call(
        kernel,
        out_shape=jax.ShapeDtypeStruct((seq, batch, hidden), jnp.float32),
        cost_estimate=pl.CostEstimate(
            flops=matmul_flops + vpu_flops,
            transcendentals=seq * n_steps * batch * hidden,
            bytes_accessed=bytes_accessed,
        ),
        compiler_params=pltpu.CompilerParams(
            vmem_limit_bytes=32 * 1024 * 1024,
        ),
    )(x, h0, w_init_h, b_init_h, w_h, b_h)


def rhn_reference(x, h0, w_init_h, b_init_h, w_h, b_h, *, n_steps):
    """Plain-JAX reference mirroring the PyTorch forward (tanh + sigmoid)."""
    hx = h0[0]
    outs = []
    for t in range(x.shape[0]):
        init_proj = x[t] @ w_init_h + b_init_h
        for step in range(n_steps):
            z = hx @ w_h[step] + b_h[step]
            if step == 0:
                z = z + init_proj
            h = jnp.tanh(z)
            s = jax.nn.sigmoid(z)
            hx = h * s + hx * (1.0 - s)
        outs.append(hx[None])
    return jnp.concatenate(outs, axis=0)


if __name__ == "__main__":
    # Small, deterministic configuration. batch=8 fills the sublane axis,
    # hidden=128 makes the state/output lane-dense (unmasked vst).
    seq, batch, in_size, hidden, n_steps = 8, 8, 16, 128, 3

    key = jax.random.PRNGKey(0)
    keys = jax.random.split(key, 6)

    x = jax.random.normal(keys[0], (seq, batch, in_size), dtype=jnp.float32)
    h0 = jax.random.uniform(keys[1], (1, batch, hidden), dtype=jnp.float32)

    # Deterministic synthetic parameters (Linear weights stored as (in, out)).
    w_init_h = jax.random.normal(keys[2], (in_size, hidden), jnp.float32) * 0.1
    b_init_h = jax.random.normal(keys[3], (1, hidden), jnp.float32) * 0.1
    w_h = jax.random.normal(keys[4], (n_steps, hidden, hidden), jnp.float32) * 0.1
    b_h = jax.random.normal(keys[5], (n_steps, hidden), jnp.float32) * 0.1

    out = rhn_forward(x, h0, w_init_h, b_init_h, w_h, b_h, n_steps=n_steps)
    out = jax.block_until_ready(out)

    ref = rhn_reference(x, h0, w_init_h, b_init_h, w_h, b_h, n_steps=n_steps)
    assert out.shape == (seq, batch, hidden)
    # Slightly relaxed tolerance: tanh is computed from sigmoid via an exact
    # algebraic identity; f32 rounding differs from jnp.tanh by ~1e-6.
    assert jnp.allclose(out, ref, atol=2e-5, rtol=2e-5), "mismatch vs reference"

    print("KERNEL_OK")
</pallas_src>

<mosaic_0001>
module attributes {stable_mosaic.version = 11 : i64} {
  func.func @_rhn_kernel(%arg0: memref<8x8x16xf32, #tpu.memory_space<vmem>>, %arg1: memref<1x8x128xf32, #tpu.memory_space<vmem>>, %arg2: memref<16x128xf32, #tpu.memory_space<vmem>>, %arg3: memref<1x128xf32, #tpu.memory_space<vmem>>, %arg4: memref<3x128x128xf32, #tpu.memory_space<vmem>>, %arg5: memref<3x128xf32, #tpu.memory_space<vmem>>, %arg6: memref<8x8x128xf32, #tpu.memory_space<vmem>>) attributes {dimension_semantics = [], scalar_prefetch = 0 : i64, scratch_operands = 0 : i64, tpu.core_type = #tpu.core_type<tc>} {
    %c0 = arith.constant 0 : index
    %c0_0 = arith.constant 0 : index
    %0 = vector.load %arg2[%c0, %c0_0] : memref<16x128xf32, #tpu.memory_space<vmem>>, vector<16x128xf32>
    %c0_1 = arith.constant 0 : index
    %c0_2 = arith.constant 0 : index
    %1 = vector.load %arg3[%c0_1, %c0_2] : memref<1x128xf32, #tpu.memory_space<vmem>>, vector<1x128xf32>
    %c0_3 = arith.constant 0 : index
    %c0_4 = arith.constant 0 : index
    %c0_5 = arith.constant 0 : index
    %2 = vector.load %arg1[%c0_3, %c0_4, %c0_5] : memref<1x8x128xf32, #tpu.memory_space<vmem>>, vector<1x8x128xf32>
    %3 = vector.shape_cast %2 : vector<1x8x128xf32> to vector<8x128xf32>
    %c0_i32 = arith.constant 0 : i32
    %4 = arith.index_cast %c0_i32 : i32 to index
    %c0_6 = arith.constant 0 : index
    %c0_7 = arith.constant 0 : index
    %5 = vector.load %arg0[%4, %c0_6, %c0_7] : memref<8x8x16xf32, #tpu.memory_space<vmem>>, vector<1x8x16xf32>
    %6 = vector.shape_cast %5 : vector<1x8x16xf32> to vector<8x16xf32>
    %cst = arith.constant dense<0.000000e+00> : vector<8x128xf32>
    %7 = tpu.matmul %6, %0, %cst {dimension_numbers = #tpu.dot_dimension_numbers<[1], [0], [0], [1], [0, 0, 1, 1], [], []>} : vector<8x16xf32>, vector<16x128xf32>, vector<8x128xf32> -> vector<8x128xf32>
    %8 = vector.broadcast %1 : vector<1x128xf32> to vector<8x128xf32>
    %9 = arith.addf %7, %8 : vector<8x128xf32>
    %c0_8 = arith.constant 0 : index
    %c0_9 = arith.constant 0 : index
    %c0_10 = arith.constant 0 : index
    %10 = vector.load %arg4[%c0_8, %c0_9, %c0_10] : memref<3x128x128xf32, #tpu.memory_space<vmem>>, vector<1x128x128xf32>
    %11 = vector.shape_cast %10 : vector<1x128x128xf32> to vector<128x128xf32>
    %cst_11 = arith.constant dense<0.000000e+00> : vector<8x128xf32>
    %12 = tpu.matmul %3, %11, %cst_11 {dimension_numbers = #tpu.dot_dimension_numbers<[1], [0], [0], [1], [0, 0, 1, 1], [], []>} : vector<8x128xf32>, vector<128x128xf32>, vector<8x128xf32> -> vector<8x128xf32>
    %c0_12 = arith.constant 0 : index
    %c0_13 = arith.constant 0 : index
    %13 = vector.load %arg5[%c0_12, %c0_13] : memref<3x128xf32, #tpu.memory_space<vmem>>, vector<1x128xf32>
    %14 = vector.broadcast %13 : vector<1x128xf32> to vector<8x128xf32>
    %15 = arith.addf %12, %14 : vector<8x128xf32>
    %16 = arith.addf %15, %9 : vector<8x128xf32>
    %17 = arith.negf %16 : vector<8x128xf32>
    %18 = math.exp %17 : vector<8x128xf32>
    %cst_14 = arith.constant 1.000000e+00 : f32
    %19 = vector.broadcast %cst_14 : f32 to vector<8x128xf32>
    %20 = arith.addf %19, %18 : vector<8x128xf32>
    %21 = arith.divf %19, %20 : vector<8x128xf32>
    %cst_15 = arith.constant 2.000000e+00 : f32
    %22 = vector.broadcast %cst_15 : f32 to vector<8x128xf32>
    %23 = arith.mulf %22, %21 : vector<8x128xf32>
    %cst_16 = arith.constant 1.000000e+00 : f32
    %24 = vector.broadcast %cst_16 : f32 to vector<8x128xf32>
    %25 = arith.subf %23, %24 : vector<8x128xf32>
    %cst_17 = arith.constant 2.000000e+00 : f32
    %26 = vector.broadcast %cst_17 : f32 to vector<8x128xf32>
    %27 = arith.mulf %26, %21 : vector<8x128xf32>
    %cst_18 = arith.constant 1.000000e+00 : f32
    %28 = vector.broadcast %cst_18 : f32 to vector<8x128xf32>
    %29 = arith.subf %21, %28 : vector<8x128xf32>
    %30 = arith.mulf %27, %29 : vector<8x128xf32>
    %cst_19 = arith.constant 1.000000e+00 : f32
    %31 = vector.broadcast %cst_19 : f32 to vector<8x128xf32>
    %32 = arith.addf %30, %31 : vector<8x128xf32>
    %33 = arith.divf %25, %32 : vector<8x128xf32>
    %34 = arith.subf %33, %3 : vector<8x128xf32>
    %35 = arith.mulf %21, %34 : vector<8x128xf32>
    %36 = arith.addf %3, %35 : vector<8x128xf32>
    %c1 = arith.constant 1 : index
    %c0_20 = arith.constant 0 : index
    %c0_21 = arith.constant 0 : index
    %37 = vector.load %arg4[%c1, %c0_20, %c0_21] : memref<3x128x128xf32, #tpu.memory_space<vmem>>, vector<1x128x128xf32>
    %38 = vector.shape_cast %37 : vector<1x128x128xf32> to vector<128x128xf32>
    %cst_22 = arith.constant dense<0.000000e+00> : vector<8x128xf32>
    %39 = tpu.matmul %36, %38, %cst_22 {dimension_numbers = #tpu.dot_dimension_numbers<[1], [0], [0], [1], [0, 0, 1, 1], [], []>} : vector<8x128xf32>, vector<128x128xf32>, vector<8x128xf32> -> vector<8x128xf32>
    %c1_23 = arith.constant 1 : index
    %c0_24 = arith.constant 0 : index
    %40 = vector.load %arg5[%c1_23, %c0_24] : memref<3x128xf32, #tpu.memory_space<vmem>>, vector<1x128xf32>
    %41 = vector.broadcast %40 : vector<1x128xf32> to vector<8x128xf32>
    %42 = arith.addf %39, %41 : vector<8x128xf32>
    %43 = arith.negf %42 : vector<8x128xf32>
    %44 = math.exp %43 : vector<8x128xf32>
    %cst_25 = arith.constant 1.000000e+00 : f32
    %45 = vector.broadcast %cst_25 : f32 to vector<8x128xf32>
    %46 = arith.addf %45, %44 : vector<8x128xf32>
    %47 = arith.divf %45, %46 : vector<8x128xf32>
    %cst_26 = arith.constant 2.000000e+00 : f32
    %48 = vector.broadcast %cst_26 : f32 to vector<8x128xf32>
    %49 = arith.mulf %48, %47 : vector<8x128xf32>
    %cst_27 = arith.constant 1.000000e+00 : f32
    %50 = vector.broadcast %cst_27 : f32 to vector<8x128xf32>
    %51 = arith.subf %49, %50 : vector<8x128xf32>
    %cst_28 = arith.constant 2.000000e+00 : f32
    %52 = vector.broadcast %cst_28 : f32 to vector<8x128xf32>
    %53 = arith.mulf %52, %47 : vector<8x128xf32>
    %cst_29 = arith.constant 1.000000e+00 : f32
    %54 = vector.broadcast %cst_29 : f32 to vector<8x128xf32>
    %55 = arith.subf %47, %54 : vector<8x128xf32>
    %56 = arith.mulf %53, %55 : vector<8x128xf32>
    %cst_30 = arith.constant 1.000000e+00 : f32
    %57 = vector.broadcast %cst_30 : f32 to vector<8x128xf32>
    %58 = arith.addf %56, %57 : vector<8x128xf32>
    %59 = arith.divf %51, %58 : vector<8x128xf32>
    %60 = arith.subf %59, %36 : vector<8x128xf32>
    %61 = arith.mulf %47, %60 : vector<8x128xf32>
    %62 = arith.addf %36, %61 : vector<8x128xf32>
    %c2 = arith.constant 2 : index
    %c0_31 = arith.constant 0 : index
    %c0_32 = arith.constant 0 : index
    %63 = vector.load %arg4[%c2, %c0_31, %c0_32] : memref<3x128x128xf32, #tpu.memory_space<vmem>>, vector<1x128x128xf32>
    %64 = vector.shape_cast %63 : vector<1x128x128xf32> to vector<128x128xf32>
    %cst_33 = arith.constant dense<0.000000e+00> : vector<8x128xf32>
    %65 = tpu.matmul %62, %64, %cst_33 {dimension_numbers = #tpu.dot_dimension_numbers<[1], [0], [0], [1], [0, 0, 1, 1], [], []>} : vector<8x128xf32>, vector<128x128xf32>, vector<8x128xf32> -> vector<8x128xf32>
    %c2_34 = arith.constant 2 : index
    %c0_35 = arith.constant 0 : index
    %66 = vector.load %arg5[%c2_34, %c0_35] : memref<3x128xf32, #tpu.memory_space<vmem>>, vector<1x128xf32>
    %67 = vector.broadcast %66 : vector<1x128xf32> to vector<8x128xf32>
    %68 = arith.addf %65, %67 : vector<8x128xf32>
    %69 = arith.negf %68 : vector<8x128xf32>
    %70 = math.exp %69 : vector<8x128xf32>
    %cst_36 = arith.constant 1.000000e+00 : f32
    %71 = vector.broadcast %cst_36 : f32 to vector<8x128xf32>
    %72 = arith.addf %71, %70 : vector<8x128xf32>
    %73 = arith.divf %71, %72 : vector<8x128xf32>
    %cst_37 = arith.constant 2.000000e+00 : f32
    %74 = vector.broadcast %cst_37 : f32 to vector<8x128xf32>
    %75 = arith.mulf %74, %73 : vector<8x128xf32>
    %cst_38 = arith.constant 1.000000e+00 : f32
    %76 = vector.broadcast %cst_38 : f32 to vector<8x128xf32>
    %77 = arith.subf %75, %76 : vector<8x128xf32>
    %cst_39 = arith.constant 2.000000e+00 : f32
    %78 = vector.broadcast %cst_39 : f32 to vector<8x128xf32>
    %79 = arith.mulf %78, %73 : vector<8x128xf32>
    %cst_40 = arith.constant 1.000000e+00 : f32
    %80 = vector.broadcast %cst_40 : f32 to vector<8x128xf32>
    %81 = arith.subf %73, %80 : vector<8x128xf32>
    %82 = arith.mulf %79, %81 : vector<8x128xf32>
    %cst_41 = arith.constant 1.000000e+00 : f32
    %83 = vector.broadcast %cst_41 : f32 to vector<8x128xf32>
    %84 = arith.addf %82, %83 : vector<8x128xf32>
    %85 = arith.divf %77, %84 : vector<8x128xf32>
    %86 = arith.subf %85, %62 : vector<8x128xf32>
    %87 = arith.mulf %73, %86 : vector<8x128xf32>
    %88 = arith.addf %62, %87 : vector<8x128xf32>
    %89 = arith.index_cast %c0_i32 : i32 to index
    %c0_42 = arith.constant 0 : index
    %c0_43 = arith.constant 0 : index
    %90 = vector.load %arg6[%89, %c0_42, %c0_43] : memref<8x8x128xf32, #tpu.memory_space<vmem>>, vector<1x8x128xf32>
    %91 = vector.shape_cast %90 : vector<1x8x128xf32> to vector<8x128xf32>
    %92 = vector.shape_cast %88 : vector<8x128xf32> to vector<1x8x128xf32>
    tpu.vector_store %arg6[%89, %c0_42, %c0_43], %92 {strides = array<i32>} : memref<8x8x128xf32, #tpu.memory_space<vmem>>, vector<1x8x128xf32>,
    %c1_i32 = arith.constant 1 : i32
    %93 = arith.index_cast %c1_i32 : i32 to index
    %c0_44 = arith.constant 0 : index
    %c0_45 = arith.constant 0 : index
    %94 = vector.load %arg0[%93, %c0_44, %c0_45] : memref<8x8x16xf32, #tpu.memory_space<vmem>>, vector<1x8x16xf32>
    %95 = vector.shape_cast %94 : vector<1x8x16xf32> to vector<8x16xf32>
    %cst_46 = arith.constant dense<0.000000e+00> : vector<8x128xf32>
    %96 = tpu.matmul %95, %0, %cst_46 {dimension_numbers = #tpu.dot_dimension_numbers<[1], [0], [0], [1], [0, 0, 1, 1], [], []>} : vector<8x16xf32>, vector<16x128xf32>, vector<8x128xf32> -> vector<8x128xf32>
    %97 = vector.broadcast %1 : vector<1x128xf32> to vector<8x128xf32>
    %98 = arith.addf %96, %97 : vector<8x128xf32>
    %c0_47 = arith.constant 0 : index
    %c0_48 = arith.constant 0 : index
    %c0_49 = arith.constant 0 : index
    %99 = vector.load %arg4[%c0_47, %c0_48, %c0_49] : memref<3x128x128xf32, #tpu.memory_space<vmem>>, vector<1x128x128xf32>
    %100 = vector.shape_cast %99 : vector<1x128x128xf32> to vector<128x128xf32>
    %cst_50 = arith.constant dense<0.000000e+00> : vector<8x128xf32>
    %101 = tpu.matmul %88, %100, %cst_50 {dimension_numbers = #tpu.dot_dimension_numbers<[1], [0], [0], [1], [0, 0, 1, 1], [], []>} : vector<8x128xf32>, vector<128x128xf32>, vector<8x128xf32> -> vector<8x128xf32>
    %c0_51 = arith.constant 0 : index
    %c0_52 = arith.constant 0 : index
    %102 = vector.load %arg5[%c0_51, %c0_52] : memref<3x128xf32, #tpu.memory_space<vmem>>, vector<1x128xf32>
    %103 = vector.broadcast %102 : vector<1x128xf32> to vector<8x128xf32>
    %104 = arith.addf %101, %103 : vector<8x128xf32>
    %105 = arith.addf %104, %98 : vector<8x128xf32>
    %106 = arith.negf %105 : vector<8x128xf32>
    %107 = math.exp %106 : vector<8x128xf32>
    %cst_53 = arith.constant 1.000000e+00 : f32
    %108 = vector.broadcast %cst_53 : f32 to vector<8x128xf32>
    %109 = arith.addf %108, %107 : vector<8x128xf32>
    %110 = arith.divf %108, %109 : vector<8x128xf32>
    %cst_54 = arith.constant 2.000000e+00 : f32
    %111 = vector.broadcast %cst_54 : f32 to vector<8x128xf32>
    %112 = arith.mulf %111, %110 : vector<8x128xf32>
    %cst_55 = arith.constant 1.000000e+00 : f32
    %113 = vector.broadcast %cst_55 : f32 to vector<8x128xf32>
    %114 = arith.subf %112, %113 : vector<8x128xf32>
    %cst_56 = arith.constant 2.000000e+00 : f32
    %115 = vector.broadcast %cst_56 : f32 to vector<8x128xf32>
    %116 = arith.mulf %115, %110 : vector<8x128xf32>
    %cst_57 = arith.constant 1.000000e+00 : f32
    %117 = vector.broadcast %cst_57 : f32 to vector<8x128xf32>
    %118 = arith.subf %110, %117 : vector<8x128xf32>
    %119 = arith.mulf %116, %118 : vector<8x128xf32>
    %cst_58 = arith.constant 1.000000e+00 : f32
    %120 = vector.broadcast %cst_58 : f32 to vector<8x128xf32>
    %121 = arith.addf %119, %120 : vector<8x128xf32>
    %122 = arith.divf %114, %121 : vector<8x128xf32>
    %123 = arith.subf %122, %88 : vector<8x128xf32>
    %124 = arith.mulf %110, %123 : vector<8x128xf32>
    %125 = arith.addf %88, %124 : vector<8x128xf32>
    %c1_59 = arith.constant 1 : index
    %c0_60 = arith.constant 0 : index
    %c0_61 = arith.constant 0 : index
    %126 = vector.load %arg4[%c1_59, %c0_60, %c0_61] : memref<3x128x128xf32, #tpu.memory_space<vmem>>, vector<1x128x128xf32>
    %127 = vector.shape_cast %126 : vector<1x128x128xf32> to vector<128x128xf32>
    %cst_62 = arith.constant dense<0.000000e+00> : vector<8x128xf32>
    %128 = tpu.matmul %125, %127, %cst_62 {dimension_numbers = #tpu.dot_dimension_numbers<[1], [0], [0], [1], [0, 0, 1, 1], [], []>} : vector<8x128xf32>, vector<128x128xf32>, vector<8x128xf32> -> vector<8x128xf32>
    %c1_63 = arith.constant 1 : index
    %c0_64 = arith.constant 0 : index
    %129 = vector.load %arg5[%c1_63, %c0_64] : memref<3x128xf32, #tpu.memory_space<vmem>>, vector<1x128xf32>
    %130 = vector.broadcast %129 : vector<1x128xf32> to vector<8x128xf32>
    %131 = arith.addf %128, %130 : vector<8x128xf32>
    %132 = arith.negf %131 : vector<8x128xf32>
    %133 = math.exp %132 : vector<8x128xf32>
    %cst_65 = arith.constant 1.000000e+00 : f32
    %134 = vector.broadcast %cst_65 : f32 to vector<8x128xf32>
    %135 = arith.addf %134, %133 : vector<8x128xf32>
    %136 = arith.divf %134, %135 : vector<8x128xf32>
    %cst_66 = arith.constant 2.000000e+00 : f32
    %137 = vector.broadcast %cst_66 : f32 to vector<8x128xf32>
    %138 = arith.mulf %137, %136 : vector<8x128xf32>
    %cst_67 = arith.constant 1.000000e+00 : f32
    %139 = vector.broadcast %cst_67 : f32 to vector<8x128xf32>
    %140 = arith.subf %138, %139 : vector<8x128xf32>
    %cst_68 = arith.constant 2.000000e+00 : f32
    %141 = vector.broadcast %cst_68 : f32 to vector<8x128xf32>
    %142 = arith.mulf %141, %136 : vector<8x128xf32>
    %cst_69 = arith.constant 1.000000e+00 : f32
    %143 = vector.broadcast %cst_69 : f32 to vector<8x128xf32>
    %144 = arith.subf %136, %143 : vector<8x128xf32>
    %145 = arith.mulf %142, %144 : vector<8x128xf32>
    %cst_70 = arith.constant 1.000000e+00 : f32
    %146 = vector.broadcast %cst_70 : f32 to vector<8x128xf32>
    %147 = arith.addf %145, %146 : vector<8x128xf32>
    %148 = arith.divf %140, %147 : vector<8x128xf32>
    %149 = arith.subf %148, %125 : vector<8x128xf32>
    %150 = arith.mulf %136, %149 : vector<8x128xf32>
    %151 = arith.addf %125, %150 : vector<8x128xf32>
    %c2_71 = arith.constant 2 : index
    %c0_72 = arith.constant 0 : index
    %c0_73 = arith.constant 0 : index
    %152 = vector.load %arg4[%c2_71, %c0_72, %c0_73] : memref<3x128x128xf32, #tpu.memory_space<vmem>>, vector<1x128x128xf32>
    %153 = vector.shape_cast %152 : vector<1x128x128xf32> to vector<128x128xf32>
    %cst_74 = arith.constant dense<0.000000e+00> : vector<8x128xf32>
    %154 = tpu.matmul %151, %153, %cst_74 {dimension_numbers = #tpu.dot_dimension_numbers<[1], [0], [0], [1], [0, 0, 1, 1], [], []>} : vector<8x128xf32>, vector<128x128xf32>, vector<8x128xf32> -> vector<8x128xf32>
    %c2_75 = arith.constant 2 : index
    %c0_76 = arith.constant 0 : index
    %155 = vector.load %arg5[%c2_75, %c0_76] : memref<3x128xf32, #tpu.memory_space<vmem>>, vector<1x128xf32>
    %156 = vector.broadcast %155 : vector<1x128xf32> to vector<8x128xf32>
    %157 = arith.addf %154, %156 : vector<8x128xf32>
    %158 = arith.negf %157 : vector<8x128xf32>
    %159 = math.exp %158 : vector<8x128xf32>
    %cst_77 = arith.constant 1.000000e+00 : f32
    %160 = vector.broadcast %cst_77 : f32 to vector<8x128xf32>
    %161 = arith.addf %160, %159 : vector<8x128xf32>
    %162 = arith.divf %160, %161 : vector<8x128xf32>
    %cst_78 = arith.constant 2.000000e+00 : f32
    %163 = vector.broadcast %cst_78 : f32 to vector<8x128xf32>
    %164 = arith.mulf %163, %162 : vector<8x128xf32>
    %cst_79 = arith.constant 1.000000e+00 : f32
    %165 = vector.broadcast %cst_79 : f32 to vector<8x128xf32>
    %166 = arith.subf %164, %165 : vector<8x128xf32>
    %cst_80 = arith.constant 2.000000e+00 : f32
    %167 = vector.broadcast %cst_80 : f32 to vector<8x128xf32>
    %168 = arith.mulf %167, %162 : vector<8x128xf32>
    %cst_81 = arith.constant 1.000000e+00 : f32
    %169 = vector.broadcast %cst_81 : f32 to vector<8x128xf32>
    %170 = arith.subf %162, %169 : vector<8x128xf32>
    %171 = arith.mulf %168, %170 : vector<8x128xf32>
    %cst_82 = arith.constant 1.000000e+00 : f32
    %172 = vector.broadcast %cst_82 : f32 to vector<8x128xf32>
    %173 = arith.addf %171, %172 : vector<8x128xf32>
    %174 = arith.divf %166, %173 : vector<8x128xf32>
    %175 = arith.subf %174, %151 : vector<8x128xf32>
    %176 = arith.mulf %162, %175 : vector<8x128xf32>
    %177 = arith.addf %151, %176 : vector<8x128xf32>
    %178 = arith.index_cast %c1_i32 : i32 to index
    %c0_83 = arith.constant 0 : index
    %c0_84 = arith.constant 0 : index
    %179 = vector.load %arg6[%178, %c0_83, %c0_84] : memref<8x8x128xf32, #tpu.memory_space<vmem>>, vector<1x8x128xf32>
    %180 = vector.shape_cast %179 : vector<1x8x128xf32> to vector<8x128xf32>
    %181 = vector.shape_cast %177 : vector<8x128xf32> to vector<1x8x128xf32>
    tpu.vector_store %arg6[%178, %c0_83, %c0_84], %181 {strides = array<i32>} : memref<8x8x128xf32, #tpu.memory_space<vmem>>, vector<1x8x128xf32>,
    %c2_i32 = arith.constant 2 : i32
    %182 = arith.index_cast %c2_i32 : i32 to index
    %c0_85 = arith.constant 0 : index
    %c0_86 = arith.constant 0 : index
    %183 = vector.load %arg0[%182, %c0_85, %c0_86] : memref<8x8x16xf32, #tpu.memory_space<vmem>>, vector<1x8x16xf32>
    %184 = vector.shape_cast %183 : vector<1x8x16xf32> to vector<8x16xf32>
    %cst_87 = arith.constant dense<0.000000e+00> : vector<8x128xf32>
    %185 = tpu.matmul %184, %0, %cst_87 {dimension_numbers = #tpu.dot_dimension_numbers<[1], [0], [0], [1], [0, 0, 1, 1], [], []>} : vector<8x16xf32>, vector<16x128xf32>, vector<8x128xf32> -> vector<8x128xf32>
    %186 = vector.broadcast %1 : vector<1x128xf32> to vector<8x128xf32>
    %187 = arith.addf %185, %186 : vector<8x128xf32>
    %c0_88 = arith.constant 0 : index
    %c0_89 = arith.constant 0 : index
    %c0_90 = arith.constant 0 : index
    %188 = vector.load %arg4[%c0_88, %c0_89, %c0_90] : memref<3x128x128xf32, #tpu.memory_space<vmem>>, vector<1x128x128xf32>
    %189 = vector.shape_cast %188 : vector<1x128x128xf32> to vector<128x128xf32>
    %cst_91 = arith.constant dense<0.000000e+00> : vector<8x128xf32>
    %190 = tpu.matmul %177, %189, %cst_91 {dimension_numbers = #tpu.dot_dimension_numbers<[1], [0], [0], [1], [0, 0, 1, 1], [], []>} : vector<8x128xf32>, vector<128x128xf32>, vector<8x128xf32> -> vector<8x128xf32>
    %c0_92 = arith.constant 0 : index
    %c0_93 = arith.constant 0 : index
    %191 = vector.load %arg5[%c0_92, %c0_93] : memref<3x128xf32, #tpu.memory_space<vmem>>, vector<1x128xf32>
    %192 = vector.broadcast %191 : vector<1x128xf32> to vector<8x128xf32>
    %193 = arith.addf %190, %192 : vector<8x128xf32>
    %194 = arith.addf %193, %187 : vector<8x128xf32>
    %195 = arith.negf %194 : vector<8x128xf32>
    %196 = math.exp %195 : vector<8x128xf32>
    %cst_94 = arith.constant 1.000000e+00 : f32
    %197 = vector.broadcast %cst_94 : f32 to vector<8x128xf32>
    %198 = arith.addf %197, %196 : vector<8x128xf32>
    %199 = arith.divf %197, %198 : vector<8x128xf32>
    %cst_95 = arith.constant 2.000000e+00 : f32
    %200 = vector.broadcast %cst_95 : f32 to vector<8x128xf32>
    %201 = arith.mulf %200, %199 : vector<8x128xf32>
    %cst_96 = arith.constant 1.000000e+00 : f32
    %202 = vector.broadcast %cst_96 : f32 to vector<8x128xf32>
    %203 = arith.subf %201, %202 : vector<8x128xf32>
    %cst_97 = arith.constant 2.000000e+00 : f32
    %204 = vector.broadcast %cst_97 : f32 to vector<8x128xf32>
    %205 = arith.mulf %204, %199 : vector<8x128xf32>
    %cst_98 = arith.constant 1.000000e+00 : f32
    %206 = vector.broadcast %cst_98 : f32 to vector<8x128xf32>
    %207 = arith.subf %199, %206 : vector<8x128xf32>
    %208 = arith.mulf %205, %207 : vector<8x128xf32>
    %cst_99 = arith.constant 1.000000e+00 : f32
    %209 = vector.broadcast %cst_99 : f32 to vector<8x128xf32>
    %210 = arith.addf %208, %209 : vector<8x128xf32>
    %211 = arith.divf %203, %210 : vector<8x128xf32>
    %212 = arith.subf %211, %177 : vector<8x128xf32>
    %213 = arith.mulf %199, %212 : vector<8x128xf32>
    %214 = arith.addf %177, %213 : vector<8x128xf32>
    %c1_100 = arith.constant 1 : index
    %c0_101 = arith.constant 0 : index
    %c0_102 = arith.constant 0 : index
    %215 = vector.load %arg4[%c1_100, %c0_101, %c0_102] : memref<3x128x128xf32, #tpu.memory_space<vmem>>, vector<1x128x128xf32>
    %216 = vector.shape_cast %215 : vector<1x128x128xf32> to vector<128x128xf32>
    %cst_103 = arith.constant dense<0.000000e+00> : vector<8x128xf32>
    %217 = tpu.matmul %214, %216, %cst_103 {dimension_numbers = #tpu.dot_dimension_numbers<[1], [0], [0], [1], [0, 0, 1, 1], [], []>} : vector<8x128xf32>, vector<128x128xf32>, vector<8x128xf32> -> vector<8x128xf32>
    %c1_104 = arith.constant 1 : index
    %c0_105 = arith.constant 0 : index
    %218 = vector.load %arg5[%c1_104, %c0_105] : memref<3x128xf32, #tpu.memory_space<vmem>>, vector<1x128xf32>
    %219 = vector.broadcast %218 : vector<1x128xf32> to vector<8x128xf32>
    %220 = arith.addf %217, %219 : vector<8x128xf32>
    %221 = arith.negf %220 : vector<8x128xf32>
    %222 = math.exp %221 : vector<8x128xf32>
    %cst_106 = arith.constant 1.000000e+00 : f32
    %223 = vector.broadcast %cst_106 : f32 to vector<8x128xf32>
    %224 = arith.addf %223, %222 : vector<8x128xf32>
    %225 = arith.divf %223, %224 : vector<8x128xf32>
    %cst_107 = arith.constant 2.000000e+00 : f32
    %226 = vector.broadcast %cst_107 : f32 to vector<8x128xf32>
    %227 = arith.mulf %226, %225 : vector<8x128xf32>
    %cst_108 = arith.constant 1.000000e+00 : f32
    %228 = vector.broadcast %cst_108 : f32 to vector<8x128xf32>
    %229 = arith.subf %227, %228 : vector<8x128xf32>
    %cst_109 = arith.constant 2.000000e+00 : f32
    %230 = vector.broadcast %cst_109 : f32 to vector<8x128xf32>
    %231 = arith.mulf %230, %225 : vector<8x128xf32>
    %cst_110 = arith.constant 1.000000e+00 : f32
    %232 = vector.broadcast %cst_110 : f32 to vector<8x128xf32>
    %233 = arith.subf %225, %232 : vector<8x128xf32>
    %234 = arith.mulf %231, %233 : vector<8x128xf32>
    %cst_111 = arith.constant 1.000000e+00 : f32
    %235 = vector.broadcast %cst_111 : f32 to vector<8x128xf32>
    %236 = arith.addf %234, %235 : vector<8x128xf32>
    %237 = arith.divf %229, %236 : vector<8x128xf32>
    %238 = arith.subf %237, %214 : vector<8x128xf32>
    %239 = arith.mulf %225, %238 : vector<8x128xf32>
    %240 = arith.addf %214, %239 : vector<8x128xf32>
    %c2_112 = arith.constant 2 : index
    %c0_113 = arith.constant 0 : index
    %c0_114 = arith.constant 0 : index
    %241 = vector.load %arg4[%c2_112, %c0_113, %c0_114] : memref<3x128x128xf32, #tpu.memory_space<vmem>>, vector<1x128x128xf32>
    %242 = vector.shape_cast %241 : vector<1x128x128xf32> to vector<128x128xf32>
    %cst_115 = arith.constant dense<0.000000e+00> : vector<8x128xf32>
    %243 = tpu.matmul %240, %242, %cst_115 {dimension_numbers = #tpu.dot_dimension_numbers<[1], [0], [0], [1], [0, 0, 1, 1], [], []>} : vector<8x128xf32>, vector<128x128xf32>, vector<8x128xf32> -> vector<8x128xf32>
    %c2_116 = arith.constant 2 : index
    %c0_117 = arith.constant 0 : index
    %244 = vector.load %arg5[%c2_116, %c0_117] : memref<3x128xf32, #tpu.memory_space<vmem>>, vector<1x128xf32>
    %245 = vector.broadcast %244 : vector<1x128xf32> to vector<8x128xf32>
    %246 = arith.addf %243, %245 : vector<8x128xf32>
    %247 = arith.negf %246 : vector<8x128xf32>
    %248 = math.exp %247 : vector<8x128xf32>
    %cst_118 = arith.constant 1.000000e+00 : f32
    %249 = vector.broadcast %cst_118 : f32 to vector<8x128xf32>
    %250 = arith.addf %249, %248 : vector<8x128xf32>
    %251 = arith.divf %249, %250 : vector<8x128xf32>
    %cst_119 = arith.constant 2.000000e+00 : f32
    %252 = vector.broadcast %cst_119 : f32 to vector<8x128xf32>
    %253 = arith.mulf %252, %251 : vector<8x128xf32>
    %cst_120 = arith.constant 1.000000e+00 : f32
    %254 = vector.broadcast %cst_120 : f32 to vector<8x128xf32>
    %255 = arith.subf %253, %254 : vector<8x128xf32>
    %cst_121 = arith.constant 2.000000e+00 : f32
    %256 = vector.broadcast %cst_121 : f32 to vector<8x128xf32>
    %257 = arith.mulf %256, %251 : vector<8x128xf32>
    %cst_122 = arith.constant 1.000000e+00 : f32
    %258 = vector.broadcast %cst_122 : f32 to vector<8x128xf32>
    %259 = arith.subf %251, %258 : vector<8x128xf32>
    %260 = arith.mulf %257, %259 : vector<8x128xf32>
    %cst_123 = arith.constant 1.000000e+00 : f32
    %261 = vector.broadcast %cst_123 : f32 to vector<8x128xf32>
    %262 = arith.addf %260, %261 : vector<8x128xf32>
    %263 = arith.divf %255, %262 : vector<8x128xf32>
    %264 = arith.subf %263, %240 : vector<8x128xf32>
    %265 = arith.mulf %251, %264 : vector<8x128xf32>
    %266 = arith.addf %240, %265 : vector<8x128xf32>
    %267 = arith.index_cast %c2_i32 : i32 to index
    %c0_124 = arith.constant 0 : index
    %c0_125 = arith.constant 0 : index
    %268 = vector.load %arg6[%267, %c0_124, %c0_125] : memref<8x8x128xf32, #tpu.memory_space<vmem>>, vector<1x8x128xf32>
    %269 = vector.shape_cast %268 : vector<1x8x128xf32> to vector<8x128xf32>
    %270 = vector.shape_cast %266 : vector<8x128xf32> to vector<1x8x128xf32>
    tpu.vector_store %arg6[%267, %c0_124, %c0_125], %270 {strides = array<i32>} : memref<8x8x128xf32, #tpu.memory_space<vmem>>, vector<1x8x128xf32>,
    %c3_i32 = arith.constant 3 : i32
    %271 = arith.index_cast %c3_i32 : i32 to index
    %c0_126 = arith.constant 0 : index
    %c0_127 = arith.constant 0 : index
    %272 = vector.load %arg0[%271, %c0_126, %c0_127] : memref<8x8x16xf32, #tpu.memory_space<vmem>>, vector<1x8x16xf32>
    %273 = vector.shape_cast %272 : vector<1x8x16xf32> to vector<8x16xf32>
    %cst_128 = arith.constant dense<0.000000e+00> : vector<8x128xf32>
    %274 = tpu.matmul %273, %0, %cst_128 {dimension_numbers = #tpu.dot_dimension_numbers<[1], [0], [0], [1], [0, 0, 1, 1], [], []>} : vector<8x16xf32>, vector<16x128xf32>, vector<8x128xf32> -> vector<8x128xf32>
    %275 = vector.broadcast %1 : vector<1x128xf32> to vector<8x128xf32>
    %276 = arith.addf %274, %275 : vector<8x128xf32>
    %c0_129 = arith.constant 0 : index
    %c0_130 = arith.constant 0 : index
    %c0_131 = arith.constant 0 : index
    %277 = vector.load %arg4[%c0_129, %c0_130, %c0_131] : memref<3x128x128xf32, #tpu.memory_space<vmem>>, vector<1x128x128xf32>
    %278 = vector.shape_cast %277 : vector<1x128x128xf32> to vector<128x128xf32>
    %cst_132 = arith.constant dense<0.000000e+00> : vector<8x128xf32>
    %279 = tpu.matmul %266, %278, %cst_132 {dimension_numbers = #tpu.dot_dimension_numbers<[1], [0], [0], [1], [0, 0, 1, 1], [], []>} : vector<8x128xf32>, vector<128x128xf32>, vector<8x128xf32> -> vector<8x128xf32>
    %c0_133 = arith.constant 0 : index
    %c0_134 = arith.constant 0 : index
    %280 = vector.load %arg5[%c0_133, %c0_134] : memref<3x128xf32, #tpu.memory_space<vmem>>, vector<1x128xf32>
    %281 = vector.broadcast %280 : vector<1x128xf32> to vector<8x128xf32>
    %282 = arith.addf %279, %281 : vector<8x128xf32>
    %283 = arith.addf %282, %276 : vector<8x128xf32>
    %284 = arith.negf %283 : vector<8x128xf32>
    %285 = math.exp %284 : vector<8x128xf32>
    %cst_135 = arith.constant 1.000000e+00 : f32
    %286 = vector.broadcast %cst_135 : f32 to vector<8x128xf32>
    %287 = arith.addf %286, %285 : vector<8x128xf32>
    %288 = arith.divf %286, %287 : vector<8x128xf32>
    %cst_136 = arith.constant 2.000000e+00 : f32
    %289 = vector.broadcast %cst_136 : f32 to vector<8x128xf32>
    %290 = arith.mulf %289, %288 : vector<8x128xf32>
    %cst_137 = arith.constant 1.000000e+00 : f32
    %291 = vector.broadcast %cst_137 : f32 to vector<8x128xf32>
    %292 = arith.subf %290, %291 : vector<8x128xf32>
    %cst_138 = arith.constant 2.000000e+00 : f32
    %293 = vector.broadcast %cst_138 : f32 to vector<8x128xf32>
    %294 = arith.mulf %293, %288 : vector<8x128xf32>
    %cst_139 = arith.constant 1.000000e+00 : f32
    %295 = vector.broadcast %cst_139 : f32 to vector<8x128xf32>
    %296 = arith.subf %288, %295 : vector<8x128xf32>
    %297 = arith.mulf %294, %296 : vector<8x128xf32>
    %cst_140 = arith.constant 1.000000e+00 : f32
    %298 = vector.broadcast %cst_140 : f32 to vector<8x128xf32>
    %299 = arith.addf %297, %298 : vector<8x128xf32>
    %300 = arith.divf %292, %299 : vector<8x128xf32>
    %301 = arith.subf %300, %266 : vector<8x128xf32>
    %302 = arith.mulf %288, %301 : vector<8x128xf32>
    %303 = arith.addf %266, %302 : vector<8x128xf32>
    %c1_141 = arith.constant 1 : index
    %c0_142 = arith.constant 0 : index
    %c0_143 = arith.constant 0 : index
    %304 = vector.load %arg4[%c1_141, %c0_142, %c0_143] : memref<3x128x128xf32, #tpu.memory_space<vmem>>, vector<1x128x128xf32>
    %305 = vector.shape_cast %304 : vector<1x128x128xf32> to vector<128x128xf32>
    %cst_144 = arith.constant dense<0.000000e+00> : vector<8x128xf32>
    %306 = tpu.matmul %303, %305, %cst_144 {dimension_numbers = #tpu.dot_dimension_numbers<[1], [0], [0], [1], [0, 0, 1, 1], [], []>} : vector<8x128xf32>, vector<128x128xf32>, vector<8x128xf32> -> vector<8x128xf32>
    %c1_145 = arith.constant 1 : index
    %c0_146 = arith.constant 0 : index
    %307 = vector.load %arg5[%c1_145, %c0_146] : memref<3x128xf32, #tpu.memory_space<vmem>>, vector<1x128xf32>
    %308 = vector.broadcast %307 : vector<1x128xf32> to vector<8x128xf32>
    %309 = arith.addf %306, %308 : vector<8x128xf32>
    %310 = arith.negf %309 : vector<8x128xf32>
    %311 = math.exp %310 : vector<8x128xf32>
    %cst_147 = arith.constant 1.000000e+00 : f32
    %312 = vector.broadcast %cst_147 : f32 to vector<8x128xf32>
    %313 = arith.addf %312, %311 : vector<8x128xf32>
    %314 = arith.divf %312, %313 : vector<8x128xf32>
    %cst_148 = arith.constant 2.000000e+00 : f32
    %315 = vector.broadcast %cst_148 : f32 to vector<8x128xf32>
    %316 = arith.mulf %315, %314 : vector<8x128xf32>
    %cst_149 = arith.constant 1.000000e+00 : f32
    %317 = vector.broadcast %cst_149 : f32 to vector<8x128xf32>
    %318 = arith.subf %316, %317 : vector<8x128xf32>
    %cst_150 = arith.constant 2.000000e+00 : f32
    %319 = vector.broadcast %cst_150 : f32 to vector<8x128xf32>
    %320 = arith.mulf %319, %314 : vector<8x128xf32>
    %cst_151 = arith.constant 1.000000e+00 : f32
    %321 = vector.broadcast %cst_151 : f32 to vector<8x128xf32>
    %322 = arith.subf %314, %321 : vector<8x128xf32>
    %323 = arith.mulf %320, %322 : vector<8x128xf32>
    %cst_152 = arith.constant 1.000000e+00 : f32
    %324 = vector.broadcast %cst_152 : f32 to vector<8x128xf32>
    %325 = arith.addf %323, %324 : vector<8x128xf32>
    %326 = arith.divf %318, %325 : vector<8x128xf32>
    %327 = arith.subf %326, %303 : vector<8x128xf32>
    %328 = arith.mulf %314, %327 : vector<8x128xf32>
    %329 = arith.addf %303, %328 : vector<8x128xf32>
    %c2_153 = arith.constant 2 : index
    %c0_154 = arith.constant 0 : index
    %c0_155 = arith.constant 0 : index
    %330 = vector.load %arg4[%c2_153, %c0_154, %c0_155] : memref<3x128x128xf32, #tpu.memory_space<vmem>>, vector<1x128x128xf32>
    %331 = vector.shape_cast %330 : vector<1x128x128xf32> to vector<128x128xf32>
    %cst_156 = arith.constant dense<0.000000e+00> : vector<8x128xf32>
    %332 = tpu.matmul %329, %331, %cst_156 {dimension_numbers = #tpu.dot_dimension_numbers<[1], [0], [0], [1], [0, 0, 1, 1], [], []>} : vector<8x128xf32>, vector<128x128xf32>, vector<8x128xf32> -> vector<8x128xf32>
    %c2_157 = arith.constant 2 : index
    %c0_158 = arith.constant 0 : index
    %333 = vector.load %arg5[%c2_157, %c0_158] : memref<3x128xf32, #tpu.memory_space<vmem>>, vector<1x128xf32>
    %334 = vector.broadcast %333 : vector<1x128xf32> to vector<8x128xf32>
    %335 = arith.addf %332, %334 : vector<8x128xf32>
    %336 = arith.negf %335 : vector<8x128xf32>
    %337 = math.exp %336 : vector<8x128xf32>
    %cst_159 = arith.constant 1.000000e+00 : f32
    %338 = vector.broadcast %cst_159 : f32 to vector<8x128xf32>
    %339 = arith.addf %338, %337 : vector<8x128xf32>
    %340 = arith.divf %338, %339 : vector<8x128xf32>
    %cst_160 = arith.constant 2.000000e+00 : f32
    %341 = vector.broadcast %cst_160 : f32 to vector<8x128xf32>
    %342 = arith.mulf %341, %340 : vector<8x128xf32>
    %cst_161 = arith.constant 1.000000e+00 : f32
    %343 = vector.broadcast %cst_161 : f32 to vector<8x128xf32>
    %344 = arith.subf %342, %343 : vector<8x128xf32>
    %cst_162 = arith.constant 2.000000e+00 : f32
    %345 = vector.broadcast %cst_162 : f32 to vector<8x128xf32>
    %346 = arith.mulf %345, %340 : vector<8x128xf32>
    %cst_163 = arith.constant 1.000000e+00 : f32
    %347 = vector.broadcast %cst_163 : f32 to vector<8x128xf32>
    %348 = arith.subf %340, %347 : vector<8x128xf32>
    %349 = arith.mulf %346, %348 : vector<8x128xf32>
    %cst_164 = arith.constant 1.000000e+00 : f32
    %350 = vector.broadcast %cst_164 : f32 to vector<8x128xf32>
    %351 = arith.addf %349, %350 : vector<8x128xf32>
    %352 = arith.divf %344, %351 : vector<8x128xf32>
    %353 = arith.subf %352, %329 : vector<8x128xf32>
    %354 = arith.mulf %340, %353 : vector<8x128xf32>
    %355 = arith.addf %329, %354 : vector<8x128xf32>
    %356 = arith.index_cast %c3_i32 : i32 to index
    %c0_165 = arith.constant 0 : index
    %c0_166 = arith.constant 0 : index
    %357 = vector.load %arg6[%356, %c0_165, %c0_166] : memref<8x8x128xf32, #tpu.memory_space<vmem>>, vector<1x8x128xf32>
    %358 = vector.shape_cast %357 : vector<1x8x128xf32> to vector<8x128xf32>
    %359 = vector.shape_cast %355 : vector<8x128xf32> to vector<1x8x128xf32>
    tpu.vector_store %arg6[%356, %c0_165, %c0_166], %359 {strides = array<i32>} : memref<8x8x128xf32, #tpu.memory_space<vmem>>, vector<1x8x128xf32>,
    %c4_i32 = arith.constant 4 : i32
    %360 = arith.index_cast %c4_i32 : i32 to index
    %c0_167 = arith.constant 0 : index
    %c0_168 = arith.constant 0 : index
    %361 = vector.load %arg0[%360, %c0_167, %c0_168] : memref<8x8x16xf32, #tpu.memory_space<vmem>>, vector<1x8x16xf32>
    %362 = vector.shape_cast %361 : vector<1x8x16xf32> to vector<8x16xf32>
    %cst_169 = arith.constant dense<0.000000e+00> : vector<8x128xf32>
    %363 = tpu.matmul %362, %0, %cst_169 {dimension_numbers = #tpu.dot_dimension_numbers<[1], [0], [0], [1], [0, 0, 1, 1], [], []>} : vector<8x16xf32>, vector<16x128xf32>, vector<8x128xf32> -> vector<8x128xf32>
    %364 = vector.broadcast %1 : vector<1x128xf32> to vector<8x128xf32>
    %365 = arith.addf %363, %364 : vector<8x128xf32>
    %c0_170 = arith.constant 0 : index
    %c0_171 = arith.constant 0 : index
    %c0_172 = arith.constant 0 : index
    %366 = vector.load %arg4[%c0_170, %c0_171, %c0_172] : memref<3x128x128xf32, #tpu.memory_space<vmem>>, vector<1x128x128xf32>
    %367 = vector.shape_cast %366 : vector<1x128x128xf32> to vector<128x128xf32>
    %cst_173 = arith.constant dense<0.000000e+00> : vector<8x128xf32>
    %368 = tpu.matmul %355, %367, %cst_173 {dimension_numbers = #tpu.dot_dimension_numbers<[1], [0], [0], [1], [0, 0, 1, 1], [], []>} : vector<8x128xf32>, vector<128x128xf32>, vector<8x128xf32> -> vector<8x128xf32>
    %c0_174 = arith.constant 0 : index
    %c0_175 = arith.constant 0 : index
    %369 = vector.load %arg5[%c0_174, %c0_175] : memref<3x128xf32, #tpu.memory_space<vmem>>, vector<1x128xf32>
    %370 = vector.broadcast %369 : vector<1x128xf32> to vector<8x128xf32>
    %371 = arith.addf %368, %370 : vector<8x128xf32>
    %372 = arith.addf %371, %365 : vector<8x128xf32>
    %373 = arith.negf %372 : vector<8x128xf32>
    %374 = math.exp %373 : vector<8x128xf32>
    %cst_176 = arith.constant 1.000000e+00 : f32
    %375 = vector.broadcast %cst_176 : f32 to vector<8x128xf32>
    %376 = arith.addf %375, %374 : vector<8x128xf32>
    %377 = arith.divf %375, %376 : vector<8x128xf32>
    %cst_177 = arith.constant 2.000000e+00 : f32
    %378 = vector.broadcast %cst_177 : f32 to vector<8x128xf32>
    %379 = arith.mulf %378, %377 : vector<8x128xf32>
    %cst_178 = arith.constant 1.000000e+00 : f32
    %380 = vector.broadcast %cst_178 : f32 to vector<8x128xf32>
    %381 = arith.subf %379, %380 : vector<8x128xf32>
    %cst_179 = arith.constant 2.000000e+00 : f32
    %382 = vector.broadcast %cst_179 : f32 to vector<8x128xf32>
    %383 = arith.mulf %382, %377 : vector<8x128xf32>
    %cst_180 = arith.constant 1.000000e+00 : f32
    %384 = vector.broadcast %cst_180 : f32 to vector<8x128xf32>
    %385 = arith.subf %377, %384 : vector<8x128xf32>
    %386 = arith.mulf %383, %385 : vector<8x128xf32>
    %cst_181 = arith.constant 1.000000e+00 : f32
    %387 = vector.broadcast %cst_181 : f32 to vector<8x128xf32>
    %388 = arith.addf %386, %387 : vector<8x128xf32>
    %389 = arith.divf %381, %388 : vector<8x128xf32>
    %390 = arith.subf %389, %355 : vector<8x128xf32>
    %391 = arith.mulf %377, %390 : vector<8x128xf32>
    %392 = arith.addf %355, %391 : vector<8x128xf32>
    %c1_182 = arith.constant 1 : index
    %c0_183 = arith.constant 0 : index
    %c0_184 = arith.constant 0 : index
    %393 = vector.load %arg4[%c1_182, %c0_183, %c0_184] : memref<3x128x128xf32, #tpu.memory_space<vmem>>, vector<1x128x128xf32>
    %394 = vector.shape_cast %393 : vector<1x128x128xf32> to vector<128x128xf32>
    %cst_185 = arith.constant dense<0.000000e+00> : vector<8x128xf32>
    %395 = tpu.matmul %392, %394, %cst_185 {dimension_numbers = #tpu.dot_dimension_numbers<[1], [0], [0], [1], [0, 0, 1, 1], [], []>} : vector<8x128xf32>, vector<128x128xf32>, vector<8x128xf32> -> vector<8x128xf32>
    %c1_186 = arith.constant 1 : index
    %c0_187 = arith.constant 0 : index
    %396 = vector.load %arg5[%c1_186, %c0_187] : memref<3x128xf32, #tpu.memory_space<vmem>>, vector<1x128xf32>
    %397 = vector.broadcast %396 : vector<1x128xf32> to vector<8x128xf32>
    %398 = arith.addf %395, %397 : vector<8x128xf32>
    %399 = arith.negf %398 : vector<8x128xf32>
    %400 = math.exp %399 : vector<8x128xf32>
    %cst_188 = arith.constant 1.000000e+00 : f32
    %401 = vector.broadcast %cst_188 : f32 to vector<8x128xf32>
    %402 = arith.addf %401, %400 : vector<8x128xf32>
    %403 = arith.divf %401, %402 : vector<8x128xf32>
    %cst_189 = arith.constant 2.000000e+00 : f32
    %404 = vector.broadcast %cst_189 : f32 to vector<8x128xf32>
    %405 = arith.mulf %404, %403 : vector<8x128xf32>
    %cst_190 = arith.constant 1.000000e+00 : f32
    %406 = vector.broadcast %cst_190 : f32 to vector<8x128xf32>
    %407 = arith.subf %405, %406 : vector<8x128xf32>
    %cst_191 = arith.constant 2.000000e+00 : f32
    %408 = vector.broadcast %cst_191 : f32 to vector<8x128xf32>
    %409 = arith.mulf %408, %403 : vector<8x128xf32>
    %cst_192 = arith.constant 1.000000e+00 : f32
    %410 = vector.broadcast %cst_192 : f32 to vector<8x128xf32>
    %411 = arith.subf %403, %410 : vector<8x128xf32>
    %412 = arith.mulf %409, %411 : vector<8x128xf32>
    %cst_193 = arith.constant 1.000000e+00 : f32
    %413 = vector.broadcast %cst_193 : f32 to vector<8x128xf32>
    %414 = arith.addf %412, %413 : vector<8x128xf32>
    %415 = arith.divf %407, %414 : vector<8x128xf32>
    %416 = arith.subf %415, %392 : vector<8x128xf32>
    %417 = arith.mulf %403, %416 : vector<8x128xf32>
    %418 = arith.addf %392, %417 : vector<8x128xf32>
    %c2_194 = arith.constant 2 : index
    %c0_195 = arith.constant 0 : index
    %c0_196 = arith.constant 0 : index
    %419 = vector.load %arg4[%c2_194, %c0_195, %c0_196] : memref<3x128x128xf32, #tpu.memory_space<vmem>>, vector<1x128x128xf32>
    %420 = vector.shape_cast %419 : vector<1x128x128xf32> to vector<128x128xf32>
    %cst_197 = arith.constant dense<0.000000e+00> : vector<8x128xf32>
    %421 = tpu.matmul %418, %420, %cst_197 {dimension_numbers = #tpu.dot_dimension_numbers<[1], [0], [0], [1], [0, 0, 1, 1], [], []>} : vector<8x128xf32>, vector<128x128xf32>, vector<8x128xf32> -> vector<8x128xf32>
    %c2_198 = arith.constant 2 : index
    %c0_199 = arith.constant 0 : index
    %422 = vector.load %arg5[%c2_198, %c0_199] : memref<3x128xf32, #tpu.memory_space<vmem>>, vector<1x128xf32>
    %423 = vector.broadcast %422 : vector<1x128xf32> to vector<8x128xf32>
    %424 = arith.addf %421, %423 : vector<8x128xf32>
    %425 = arith.negf %424 : vector<8x128xf32>
    %426 = math.exp %425 : vector<8x128xf32>
    %cst_200 = arith.constant 1.000000e+00 : f32
    %427 = vector.broadcast %cst_200 : f32 to vector<8x128xf32>
    %428 = arith.addf %427, %426 : vector<8x128xf32>
    %429 = arith.divf %427, %428 : vector<8x128xf32>
    %cst_201 = arith.constant 2.000000e+00 : f32
    %430 = vector.broadcast %cst_201 : f32 to vector<8x128xf32>
    %431 = arith.mulf %430, %429 : vector<8x128xf32>
    %cst_202 = arith.constant 1.000000e+00 : f32
    %432 = vector.broadcast %cst_202 : f32 to vector<8x128xf32>
    %433 = arith.subf %431, %432 : vector<8x128xf32>
    %cst_203 = arith.constant 2.000000e+00 : f32
    %434 = vector.broadcast %cst_203 : f32 to vector<8x128xf32>
    %435 = arith.mulf %434, %429 : vector<8x128xf32>
    %cst_204 = arith.constant 1.000000e+00 : f32
    %436 = vector.broadcast %cst_204 : f32 to vector<8x128xf32>
    %437 = arith.subf %429, %436 : vector<8x128xf32>
    %438 = arith.mulf %435, %437 : vector<8x128xf32>
    %cst_205 = arith.constant 1.000000e+00 : f32
    %439 = vector.broadcast %cst_205 : f32 to vector<8x128xf32>
    %440 = arith.addf %438, %439 : vector<8x128xf32>
    %441 = arith.divf %433, %440 : vector<8x128xf32>
    %442 = arith.subf %441, %418 : vector<8x128xf32>
    %443 = arith.mulf %429, %442 : vector<8x128xf32>
    %444 = arith.addf %418, %443 : vector<8x128xf32>
    %445 = arith.index_cast %c4_i32 : i32 to index
    %c0_206 = arith.constant 0 : index
    %c0_207 = arith.constant 0 : index
    %446 = vector.load %arg6[%445, %c0_206, %c0_207] : memref<8x8x128xf32, #tpu.memory_space<vmem>>, vector<1x8x128xf32>
    %447 = vector.shape_cast %446 : vector<1x8x128xf32> to vector<8x128xf32>
    %448 = vector.shape_cast %444 : vector<8x128xf32> to vector<1x8x128xf32>
    tpu.vector_store %arg6[%445, %c0_206, %c0_207], %448 {strides = array<i32>} : memref<8x8x128xf32, #tpu.memory_space<vmem>>, vector<1x8x128xf32>,
    %c5_i32 = arith.constant 5 : i32
    %449 = arith.index_cast %c5_i32 : i32 to index
    %c0_208 = arith.constant 0 : index
    %c0_209 = arith.constant 0 : index
    %450 = vector.load %arg0[%449, %c0_208, %c0_209] : memref<8x8x16xf32, #tpu.memory_space<vmem>>, vector<1x8x16xf32>
    %451 = vector.shape_cast %450 : vector<1x8x16xf32> to vector<8x16xf32>
    %cst_210 = arith.constant dense<0.000000e+00> : vector<8x128xf32>
    %452 = tpu.matmul %451, %0, %cst_210 {dimension_numbers = #tpu.dot_dimension_numbers<[1], [0], [0], [1], [0, 0, 1, 1], [], []>} : vector<8x16xf32>, vector<16x128xf32>, vector<8x128xf32> -> vector<8x128xf32>
    %453 = vector.broadcast %1 : vector<1x128xf32> to vector<8x128xf32>
    %454 = arith.addf %452, %453 : vector<8x128xf32>
    %c0_211 = arith.constant 0 : index
    %c0_212 = arith.constant 0 : index
    %c0_213 = arith.constant 0 : index
    %455 = vector.load %arg4[%c0_211, %c0_212, %c0_213] : memref<3x128x128xf32, #tpu.memory_space<vmem>>, vector<1x128x128xf32>
    %456 = vector.shape_cast %455 : vector<1x128x128xf32> to vector<128x128xf32>
    %cst_214 = arith.constant dense<0.000000e+00> : vector<8x128xf32>
    %457 = tpu.matmul %444, %456, %cst_214 {dimension_numbers = #tpu.dot_dimension_numbers<[1], [0], [0], [1], [0, 0, 1, 1], [], []>} : vector<8x128xf32>, vector<128x128xf32>, vector<8x128xf32> -> vector<8x128xf32>
    %c0_215 = arith.constant 0 : index
    %c0_216 = arith.constant 0 : index
    %458 = vector.load %arg5[%c0_215, %c0_216] : memref<3x128xf32, #tpu.memory_space<vmem>>, vector<1x128xf32>
    %459 = vector.broadcast %458 : vector<1x128xf32> to vector<8x128xf32>
    %460 = arith.addf %457, %459 : vector<8x128xf32>
    %461 = arith.addf %460, %454 : vector<8x128xf32>
    %462 = arith.negf %461 : vector<8x128xf32>
    %463 = math.exp %462 : vector<8x128xf32>
    %cst_217 = arith.constant 1.000000e+00 : f32
    %464 = vector.broadcast %cst_217 : f32 to vector<8x128xf32>
    %465 = arith.addf %464, %463 : vector<8x128xf32>
    %466 = arith.divf %464, %465 : vector<8x128xf32>
    %cst_218 = arith.constant 2.000000e+00 : f32
    %467 = vector.broadcast %cst_218 : f32 to vector<8x128xf32>
    %468 = arith.mulf %467, %466 : vector<8x128xf32>
    %cst_219 = arith.constant 1.000000e+00 : f32
    %469 = vector.broadcast %cst_219 : f32 to vector<8x128xf32>
    %470 = arith.subf %468, %469 : vector<8x128xf32>
    %cst_220 = arith.constant 2.000000e+00 : f32
    %471 = vector.broadcast %cst_220 : f32 to vector<8x128xf32>
    %472 = arith.mulf %471, %466 : vector<8x128xf32>
    %cst_221 = arith.constant 1.000000e+00 : f32
    %473 = vector.broadcast %cst_221 : f32 to vector<8x128xf32>
    %474 = arith.subf %466, %473 : vector<8x128xf32>
    %475 = arith.mulf %472, %474 : vector<8x128xf32>
    %cst_222 = arith.constant 1.000000e+00 : f32
    %476 = vector.broadcast %cst_222 : f32 to vector<8x128xf32>
    %477 = arith.addf %475, %476 : vector<8x128xf32>
    %478 = arith.divf %470, %477 : vector<8x128xf32>
    %479 = arith.subf %478, %444 : vector<8x128xf32>
    %480 = arith.mulf %466, %479 : vector<8x128xf32>
    %481 = arith.addf %444, %480 : vector<8x128xf32>
    %c1_223 = arith.constant 1 : index
    %c0_224 = arith.constant 0 : index
    %c0_225 = arith.constant 0 : index
    %482 = vector.load %arg4[%c1_223, %c0_224, %c0_225] : memref<3x128x128xf32, #tpu.memory_space<vmem>>, vector<1x128x128xf32>
    %483 = vector.shape_cast %482 : vector<1x128x128xf32> to vector<128x128xf32>
    %cst_226 = arith.constant dense<0.000000e+00> : vector<8x128xf32>
    %484 = tpu.matmul %481, %483, %cst_226 {dimension_numbers = #tpu.dot_dimension_numbers<[1], [0], [0], [1], [0, 0, 1, 1], [], []>} : vector<8x128xf32>, vector<128x128xf32>, vector<8x128xf32> -> vector<8x128xf32>
    %c1_227 = arith.constant 1 : index
    %c0_228 = arith.constant 0 : index
    %485 = vector.load %arg5[%c1_227, %c0_228] : memref<3x128xf32, #tpu.memory_space<vmem>>, vector<1x128xf32>
    %486 = vector.broadcast %485 : vector<1x128xf32> to vector<8x128xf32>
    %487 = arith.addf %484, %486 : vector<8x128xf32>
    %488 = arith.negf %487 : vector<8x128xf32>
    %489 = math.exp %488 : vector<8x128xf32>
    %cst_229 = arith.constant 1.000000e+00 : f32
    %490 = vector.broadcast %cst_229 : f32 to vector<8x128xf32>
    %491 = arith.addf %490, %489 : vector<8x128xf32>
    %492 = arith.divf %490, %491 : vector<8x128xf32>
    %cst_230 = arith.constant 2.000000e+00 : f32
    %493 = vector.broadcast %cst_230 : f32 to vector<8x128xf32>
    %494 = arith.mulf %493, %492 : vector<8x128xf32>
    %cst_231 = arith.constant 1.000000e+00 : f32
    %495 = vector.broadcast %cst_231 : f32 to vector<8x128xf32>
    %496 = arith.subf %494, %495 : vector<8x128xf32>
    %cst_232 = arith.constant 2.000000e+00 : f32
    %497 = vector.broadcast %cst_232 : f32 to vector<8x128xf32>
    %498 = arith.mulf %497, %492 : vector<8x128xf32>
    %cst_233 = arith.constant 1.000000e+00 : f32
    %499 = vector.broadcast %cst_233 : f32 to vector<8x128xf32>
    %500 = arith.subf %492, %499 : vector<8x128xf32>
    %501 = arith.mulf %498, %500 : vector<8x128xf32>
    %cst_234 = arith.constant 1.000000e+00 : f32
    %502 = vector.broadcast %cst_234 : f32 to vector<8x128xf32>
    %503 = arith.addf %501, %502 : vector<8x128xf32>
    %504 = arith.divf %496, %503 : vector<8x128xf32>
    %505 = arith.subf %504, %481 : vector<8x128xf32>
    %506 = arith.mulf %492, %505 : vector<8x128xf32>
    %507 = arith.addf %481, %506 : vector<8x128xf32>
    %c2_235 = arith.constant 2 : index
    %c0_236 = arith.constant 0 : index
    %c0_237 = arith.constant 0 : index
    %508 = vector.load %arg4[%c2_235, %c0_236, %c0_237] : memref<3x128x128xf32, #tpu.memory_space<vmem>>, vector<1x128x128xf32>
    %509 = vector.shape_cast %508 : vector<1x128x128xf32> to vector<128x128xf32>
    %cst_238 = arith.constant dense<0.000000e+00> : vector<8x128xf32>
    %510 = tpu.matmul %507, %509, %cst_238 {dimension_numbers = #tpu.dot_dimension_numbers<[1], [0], [0], [1], [0, 0, 1, 1], [], []>} : vector<8x128xf32>, vector<128x128xf32>, vector<8x128xf32> -> vector<8x128xf32>
    %c2_239 = arith.constant 2 : index
    %c0_240 = arith.constant 0 : index
    %511 = vector.load %arg5[%c2_239, %c0_240] : memref<3x128xf32, #tpu.memory_space<vmem>>, vector<1x128xf32>
    %512 = vector.broadcast %511 : vector<1x128xf32> to vector<8x128xf32>
    %513 = arith.addf %510, %512 : vector<8x128xf32>
    %514 = arith.negf %513 : vector<8x128xf32>
    %515 = math.exp %514 : vector<8x128xf32>
    %cst_241 = arith.constant 1.000000e+00 : f32
    %516 = vector.broadcast %cst_241 : f32 to vector<8x128xf32>
    %517 = arith.addf %516, %515 : vector<8x128xf32>
    %518 = arith.divf %516, %517 : vector<8x128xf32>
    %cst_242 = arith.constant 2.000000e+00 : f32
    %519 = vector.broadcast %cst_242 : f32 to vector<8x128xf32>
    %520 = arith.mulf %519, %518 : vector<8x128xf32>
    %cst_243 = arith.constant 1.000000e+00 : f32
    %521 = vector.broadcast %cst_243 : f32 to vector<8x128xf32>
    %522 = arith.subf %520, %521 : vector<8x128xf32>
    %cst_244 = arith.constant 2.000000e+00 : f32
    %523 = vector.broadcast %cst_244 : f32 to vector<8x128xf32>
    %524 = arith.mulf %523, %518 : vector<8x128xf32>
    %cst_245 = arith.constant 1.000000e+00 : f32
    %525 = vector.broadcast %cst_245 : f32 to vector<8x128xf32>
    %526 = arith.subf %518, %525 : vector<8x128xf32>
    %527 = arith.mulf %524, %526 : vector<8x128xf32>
    %cst_246 = arith.constant 1.000000e+00 : f32
    %528 = vector.broadcast %cst_246 : f32 to vector<8x128xf32>
    %529 = arith.addf %527, %528 : vector<8x128xf32>
    %530 = arith.divf %522, %529 : vector<8x128xf32>
    %531 = arith.subf %530, %507 : vector<8x128xf32>
    %532 = arith.mulf %518, %531 : vector<8x128xf32>
    %533 = arith.addf %507, %532 : vector<8x128xf32>
    %534 = arith.index_cast %c5_i32 : i32 to index
    %c0_247 = arith.constant 0 : index
    %c0_248 = arith.constant 0 : index
    %535 = vector.load %arg6[%534, %c0_247, %c0_248] : memref<8x8x128xf32, #tpu.memory_space<vmem>>, vector<1x8x128xf32>
    %536 = vector.shape_cast %535 : vector<1x8x128xf32> to vector<8x128xf32>
    %537 = vector.shape_cast %533 : vector<8x128xf32> to vector<1x8x128xf32>
    tpu.vector_store %arg6[%534, %c0_247, %c0_248], %537 {strides = array<i32>} : memref<8x8x128xf32, #tpu.memory_space<vmem>>, vector<1x8x128xf32>,
    %c6_i32 = arith.constant 6 : i32
    %538 = arith.index_cast %c6_i32 : i32 to index
    %c0_249 = arith.constant 0 : index
    %c0_250 = arith.constant 0 : index
    %539 = vector.load %arg0[%538, %c0_249, %c0_250] : memref<8x8x16xf32, #tpu.memory_space<vmem>>, vector<1x8x16xf32>
    %540 = vector.shape_cast %539 : vector<1x8x16xf32> to vector<8x16xf32>
    %cst_251 = arith.constant dense<0.000000e+00> : vector<8x128xf32>
    %541 = tpu.matmul %540, %0, %cst_251 {dimension_numbers = #tpu.dot_dimension_numbers<[1], [0], [0], [1], [0, 0, 1, 1], [], []>} : vector<8x16xf32>, vector<16x128xf32>, vector<8x128xf32> -> vector<8x128xf32>
    %542 = vector.broadcast %1 : vector<1x128xf32> to vector<8x128xf32>
    %543 = arith.addf %541, %542 : vector<8x128xf32>
    %c0_252 = arith.constant 0 : index
    %c0_253 = arith.constant 0 : index
    %c0_254 = arith.constant 0 : index
    %544 = vector.load %arg4[%c0_252, %c0_253, %c0_254] : memref<3x128x128xf32, #tpu.memory_space<vmem>>, vector<1x128x128xf32>
    %545 = vector.shape_cast %544 : vector<1x128x128xf32> to vector<128x128xf32>
    %cst_255 = arith.constant dense<0.000000e+00> : vector<8x128xf32>
    %546 = tpu.matmul %533, %545, %cst_255 {dimension_numbers = #tpu.dot_dimension_numbers<[1], [0], [0], [1], [0, 0, 1, 1], [], []>} : vector<8x128xf32>, vector<128x128xf32>, vector<8x128xf32> -> vector<8x128xf32>
    %c0_256 = arith.constant 0 : index
    %c0_257 = arith.constant 0 : index
    %547 = vector.load %arg5[%c0_256, %c0_257] : memref<3x128xf32, #tpu.memory_space<vmem>>, vector<1x128xf32>
    %548 = vector.broadcast %547 : vector<1x128xf32> to vector<8x128xf32>
    %549 = arith.addf %546, %548 : vector<8x128xf32>
    %550 = arith.addf %549, %543 : vector<8x128xf32>
    %551 = arith.negf %550 : vector<8x128xf32>
    %552 = math.exp %551 : vector<8x128xf32>
    %cst_258 = arith.constant 1.000000e+00 : f32
    %553 = vector.broadcast %cst_258 : f32 to vector<8x128xf32>
    %554 = arith.addf %553, %552 : vector<8x128xf32>
    %555 = arith.divf %553, %554 : vector<8x128xf32>
    %cst_259 = arith.constant 2.000000e+00 : f32
    %556 = vector.broadcast %cst_259 : f32 to vector<8x128xf32>
    %557 = arith.mulf %556, %555 : vector<8x128xf32>
    %cst_260 = arith.constant 1.000000e+00 : f32
    %558 = vector.broadcast %cst_260 : f32 to vector<8x128xf32>
    %559 = arith.subf %557, %558 : vector<8x128xf32>
    %cst_261 = arith.constant 2.000000e+00 : f32
    %560 = vector.broadcast %cst_261 : f32 to vector<8x128xf32>
    %561 = arith.mulf %560, %555 : vector<8x128xf32>
    %cst_262 = arith.constant 1.000000e+00 : f32
    %562 = vector.broadcast %cst_262 : f32 to vector<8x128xf32>
    %563 = arith.subf %555, %562 : vector<8x128xf32>
    %564 = arith.mulf %561, %563 : vector<8x128xf32>
    %cst_263 = arith.constant 1.000000e+00 : f32
    %565 = vector.broadcast %cst_263 : f32 to vector<8x128xf32>
    %566 = arith.addf %564, %565 : vector<8x128xf32>
    %567 = arith.divf %559, %566 : vector<8x128xf32>
    %568 = arith.subf %567, %533 : vector<8x128xf32>
    %569 = arith.mulf %555, %568 : vector<8x128xf32>
    %570 = arith.addf %533, %569 : vector<8x128xf32>
    %c1_264 = arith.constant 1 : index
    %c0_265 = arith.constant 0 : index
    %c0_266 = arith.constant 0 : index
    %571 = vector.load %arg4[%c1_264, %c0_265, %c0_266] : memref<3x128x128xf32, #tpu.memory_space<vmem>>, vector<1x128x128xf32>
    %572 = vector.shape_cast %571 : vector<1x128x128xf32> to vector<128x128xf32>
    %cst_267 = arith.constant dense<0.000000e+00> : vector<8x128xf32>
    %573 = tpu.matmul %570, %572, %cst_267 {dimension_numbers = #tpu.dot_dimension_numbers<[1], [0], [0], [1], [0, 0, 1, 1], [], []>} : vector<8x128xf32>, vector<128x128xf32>, vector<8x128xf32> -> vector<8x128xf32>
    %c1_268 = arith.constant 1 : index
    %c0_269 = arith.constant 0 : index
    %574 = vector.load %arg5[%c1_268, %c0_269] : memref<3x128xf32, #tpu.memory_space<vmem>>, vector<1x128xf32>
    %575 = vector.broadcast %574 : vector<1x128xf32> to vector<8x128xf32>
    %576 = arith.addf %573, %575 : vector<8x128xf32>
    %577 = arith.negf %576 : vector<8x128xf32>
    %578 = math.exp %577 : vector<8x128xf32>
    %cst_270 = arith.constant 1.000000e+00 : f32
    %579 = vector.broadcast %cst_270 : f32 to vector<8x128xf32>
    %580 = arith.addf %579, %578 : vector<8x128xf32>
    %581 = arith.divf %579, %580 : vector<8x128xf32>
    %cst_271 = arith.constant 2.000000e+00 : f32
    %582 = vector.broadcast %cst_271 : f32 to vector<8x128xf32>
    %583 = arith.mulf %582, %581 : vector<8x128xf32>
    %cst_272 = arith.constant 1.000000e+00 : f32
    %584 = vector.broadcast %cst_272 : f32 to vector<8x128xf32>
    %585 = arith.subf %583, %584 : vector<8x128xf32>
    %cst_273 = arith.constant 2.000000e+00 : f32
    %586 = vector.broadcast %cst_273 : f32 to vector<8x128xf32>
    %587 = arith.mulf %586, %581 : vector<8x128xf32>
    %cst_274 = arith.constant 1.000000e+00 : f32
    %588 = vector.broadcast %cst_274 : f32 to vector<8x128xf32>
    %589 = arith.subf %581, %588 : vector<8x128xf32>
    %590 = arith.mulf %587, %589 : vector<8x128xf32>
    %cst_275 = arith.constant 1.000000e+00 : f32
    %591 = vector.broadcast %cst_275 : f32 to vector<8x128xf32>
    %592 = arith.addf %590, %591 : vector<8x128xf32>
    %593 = arith.divf %585, %592 : vector<8x128xf32>
    %594 = arith.subf %593, %570 : vector<8x128xf32>
    %595 = arith.mulf %581, %594 : vector<8x128xf32>
    %596 = arith.addf %570, %595 : vector<8x128xf32>
    %c2_276 = arith.constant 2 : index
    %c0_277 = arith.constant 0 : index
    %c0_278 = arith.constant 0 : index
    %597 = vector.load %arg4[%c2_276, %c0_277, %c0_278] : memref<3x128x128xf32, #tpu.memory_space<vmem>>, vector<1x128x128xf32>
    %598 = vector.shape_cast %597 : vector<1x128x128xf32> to vector<128x128xf32>
    %cst_279 = arith.constant dense<0.000000e+00> : vector<8x128xf32>
    %599 = tpu.matmul %596, %598, %cst_279 {dimension_numbers = #tpu.dot_dimension_numbers<[1], [0], [0], [1], [0, 0, 1, 1], [], []>} : vector<8x128xf32>, vector<128x128xf32>, vector<8x128xf32> -> vector<8x128xf32>
    %c2_280 = arith.constant 2 : index
    %c0_281 = arith.constant 0 : index
    %600 = vector.load %arg5[%c2_280, %c0_281] : memref<3x128xf32, #tpu.memory_space<vmem>>, vector<1x128xf32>
    %601 = vector.broadcast %600 : vector<1x128xf32> to vector<8x128xf32>
    %602 = arith.addf %599, %601 : vector<8x128xf32>
    %603 = arith.negf %602 : vector<8x128xf32>
    %604 = math.exp %603 : vector<8x128xf32>
    %cst_282 = arith.constant 1.000000e+00 : f32
    %605 = vector.broadcast %cst_282 : f32 to vector<8x128xf32>
    %606 = arith.addf %605, %604 : vector<8x128xf32>
    %607 = arith.divf %605, %606 : vector<8x128xf32>
    %cst_283 = arith.constant 2.000000e+00 : f32
    %608 = vector.broadcast %cst_283 : f32 to vector<8x128xf32>
    %609 = arith.mulf %608, %607 : vector<8x128xf32>
    %cst_284 = arith.constant 1.000000e+00 : f32
    %610 = vector.broadcast %cst_284 : f32 to vector<8x128xf32>
    %611 = arith.subf %609, %610 : vector<8x128xf32>
    %cst_285 = arith.constant 2.000000e+00 : f32
    %612 = vector.broadcast %cst_285 : f32 to vector<8x128xf32>
    %613 = arith.mulf %612, %607 : vector<8x128xf32>
    %cst_286 = arith.constant 1.000000e+00 : f32
    %614 = vector.broadcast %cst_286 : f32 to vector<8x128xf32>
    %615 = arith.subf %607, %614 : vector<8x128xf32>
    %616 = arith.mulf %613, %615 : vector<8x128xf32>
    %cst_287 = arith.constant 1.000000e+00 : f32
    %617 = vector.broadcast %cst_287 : f32 to vector<8x128xf32>
    %618 = arith.addf %616, %617 : vector<8x128xf32>
    %619 = arith.divf %611, %618 : vector<8x128xf32>
    %620 = arith.subf %619, %596 : vector<8x128xf32>
    %621 = arith.mulf %607, %620 : vector<8x128xf32>
    %622 = arith.addf %596, %621 : vector<8x128xf32>
    %623 = arith.index_cast %c6_i32 : i32 to index
    %c0_288 = arith.constant 0 : index
    %c0_289 = arith.constant 0 : index
    %624 = vector.load %arg6[%623, %c0_288, %c0_289] : memref<8x8x128xf32, #tpu.memory_space<vmem>>, vector<1x8x128xf32>
    %625 = vector.shape_cast %624 : vector<1x8x128xf32> to vector<8x128xf32>
    %626 = vector.shape_cast %622 : vector<8x128xf32> to vector<1x8x128xf32>
    tpu.vector_store %arg6[%623, %c0_288, %c0_289], %626 {strides = array<i32>} : memref<8x8x128xf32, #tpu.memory_space<vmem>>, vector<1x8x128xf32>,
    %c7_i32 = arith.constant 7 : i32
    %627 = arith.index_cast %c7_i32 : i32 to index
    %c0_290 = arith.constant 0 : index
    %c0_291 = arith.constant 0 : index
    %628 = vector.load %arg0[%627, %c0_290, %c0_291] : memref<8x8x16xf32, #tpu.memory_space<vmem>>, vector<1x8x16xf32>
    %629 = vector.shape_cast %628 : vector<1x8x16xf32> to vector<8x16xf32>
    %cst_292 = arith.constant dense<0.000000e+00> : vector<8x128xf32>
    %630 = tpu.matmul %629, %0, %cst_292 {dimension_numbers = #tpu.dot_dimension_numbers<[1], [0], [0], [1], [0, 0, 1, 1], [], []>} : vector<8x16xf32>, vector<16x128xf32>, vector<8x128xf32> -> vector<8x128xf32>
    %631 = vector.broadcast %1 : vector<1x128xf32> to vector<8x128xf32>
    %632 = arith.addf %630, %631 : vector<8x128xf32>
    %c0_293 = arith.constant 0 : index
    %c0_294 = arith.constant 0 : index
    %c0_295 = arith.constant 0 : index
    %633 = vector.load %arg4[%c0_293, %c0_294, %c0_295] : memref<3x128x128xf32, #tpu.memory_space<vmem>>, vector<1x128x128xf32>
    %634 = vector.shape_cast %633 : vector<1x128x128xf32> to vector<128x128xf32>
    %cst_296 = arith.constant dense<0.000000e+00> : vector<8x128xf32>
    %635 = tpu.matmul %622, %634, %cst_296 {dimension_numbers = #tpu.dot_dimension_numbers<[1], [0], [0], [1], [0, 0, 1, 1], [], []>} : vector<8x128xf32>, vector<128x128xf32>, vector<8x128xf32> -> vector<8x128xf32>
    %c0_297 = arith.constant 0 : index
    %c0_298 = arith.constant 0 : index
    %636 = vector.load %arg5[%c0_297, %c0_298] : memref<3x128xf32, #tpu.memory_space<vmem>>, vector<1x128xf32>
    %637 = vector.broadcast %636 : vector<1x128xf32> to vector<8x128xf32>
    %638 = arith.addf %635, %637 : vector<8x128xf32>
    %639 = arith.addf %638, %632 : vector<8x128xf32>
    %640 = arith.negf %639 : vector<8x128xf32>
    %641 = math.exp %640 : vector<8x128xf32>
    %cst_299 = arith.constant 1.000000e+00 : f32
    %642 = vector.broadcast %cst_299 : f32 to vector<8x128xf32>
    %643 = arith.addf %642, %641 : vector<8x128xf32>
    %644 = arith.divf %642, %643 : vector<8x128xf32>
    %cst_300 = arith.constant 2.000000e+00 : f32
    %645 = vector.broadcast %cst_300 : f32 to vector<8x128xf32>
    %646 = arith.mulf %645, %644 : vector<8x128xf32>
    %cst_301 = arith.constant 1.000000e+00 : f32
    %647 = vector.broadcast %cst_301 : f32 to vector<8x128xf32>
    %648 = arith.subf %646, %647 : vector<8x128xf32>
    %cst_302 = arith.constant 2.000000e+00 : f32
    %649 = vector.broadcast %cst_302 : f32 to vector<8x128xf32>
    %650 = arith.mulf %649, %644 : vector<8x128xf32>
    %cst_303 = arith.constant 1.000000e+00 : f32
    %651 = vector.broadcast %cst_303 : f32 to vector<8x128xf32>
    %652 = arith.subf %644, %651 : vector<8x128xf32>
    %653 = arith.mulf %650, %652 : vector<8x128xf32>
    %cst_304 = arith.constant 1.000000e+00 : f32
    %654 = vector.broadcast %cst_304 : f32 to vector<8x128xf32>
    %655 = arith.addf %653, %654 : vector<8x128xf32>
    %656 = arith.divf %648, %655 : vector<8x128xf32>
    %657 = arith.subf %656, %622 : vector<8x128xf32>
    %658 = arith.mulf %644, %657 : vector<8x128xf32>
    %659 = arith.addf %622, %658 : vector<8x128xf32>
    %c1_305 = arith.constant 1 : index
    %c0_306 = arith.constant 0 : index
    %c0_307 = arith.constant 0 : index
    %660 = vector.load %arg4[%c1_305, %c0_306, %c0_307] : memref<3x128x128xf32, #tpu.memory_space<vmem>>, vector<1x128x128xf32>
    %661 = vector.shape_cast %660 : vector<1x128x128xf32> to vector<128x128xf32>
    %cst_308 = arith.constant dense<0.000000e+00> : vector<8x128xf32>
    %662 = tpu.matmul %659, %661, %cst_308 {dimension_numbers = #tpu.dot_dimension_numbers<[1], [0], [0], [1], [0, 0, 1, 1], [], []>} : vector<8x128xf32>, vector<128x128xf32>, vector<8x128xf32> -> vector<8x128xf32>
    %c1_309 = arith.constant 1 : index
    %c0_310 = arith.constant 0 : index
    %663 = vector.load %arg5[%c1_309, %c0_310] : memref<3x128xf32, #tpu.memory_space<vmem>>, vector<1x128xf32>
    %664 = vector.broadcast %663 : vector<1x128xf32> to vector<8x128xf32>
    %665 = arith.addf %662, %664 : vector<8x128xf32>
    %666 = arith.negf %665 : vector<8x128xf32>
    %667 = math.exp %666 : vector<8x128xf32>
    %cst_311 = arith.constant 1.000000e+00 : f32
    %668 = vector.broadcast %cst_311 : f32 to vector<8x128xf32>
    %669 = arith.addf %668, %667 : vector<8x128xf32>
    %670 = arith.divf %668, %669 : vector<8x128xf32>
    %cst_312 = arith.constant 2.000000e+00 : f32
    %671 = vector.broadcast %cst_312 : f32 to vector<8x128xf32>
    %672 = arith.mulf %671, %670 : vector<8x128xf32>
    %cst_313 = arith.constant 1.000000e+00 : f32
    %673 = vector.broadcast %cst_313 : f32 to vector<8x128xf32>
    %674 = arith.subf %672, %673 : vector<8x128xf32>
    %cst_314 = arith.constant 2.000000e+00 : f32
    %675 = vector.broadcast %cst_314 : f32 to vector<8x128xf32>
    %676 = arith.mulf %675, %670 : vector<8x128xf32>
    %cst_315 = arith.constant 1.000000e+00 : f32
    %677 = vector.broadcast %cst_315 : f32 to vector<8x128xf32>
    %678 = arith.subf %670, %677 : vector<8x128xf32>
    %679 = arith.mulf %676, %678 : vector<8x128xf32>
    %cst_316 = arith.constant 1.000000e+00 : f32
    %680 = vector.broadcast %cst_316 : f32 to vector<8x128xf32>
    %681 = arith.addf %679, %680 : vector<8x128xf32>
    %682 = arith.divf %674, %681 : vector<8x128xf32>
    %683 = arith.subf %682, %659 : vector<8x128xf32>
    %684 = arith.mulf %670, %683 : vector<8x128xf32>
    %685 = arith.addf %659, %684 : vector<8x128xf32>
    %c2_317 = arith.constant 2 : index
    %c0_318 = arith.constant 0 : index
    %c0_319 = arith.constant 0 : index
    %686 = vector.load %arg4[%c2_317, %c0_318, %c0_319] : memref<3x128x128xf32, #tpu.memory_space<vmem>>, vector<1x128x128xf32>
    %687 = vector.shape_cast %686 : vector<1x128x128xf32> to vector<128x128xf32>
    %cst_320 = arith.constant dense<0.000000e+00> : vector<8x128xf32>
    %688 = tpu.matmul %685, %687, %cst_320 {dimension_numbers = #tpu.dot_dimension_numbers<[1], [0], [0], [1], [0, 0, 1, 1], [], []>} : vector<8x128xf32>, vector<128x128xf32>, vector<8x128xf32> -> vector<8x128xf32>
    %c2_321 = arith.constant 2 : index
    %c0_322 = arith.constant 0 : index
    %689 = vector.load %arg5[%c2_321, %c0_322] : memref<3x128xf32, #tpu.memory_space<vmem>>, vector<1x128xf32>
    %690 = vector.broadcast %689 : vector<1x128xf32> to vector<8x128xf32>
    %691 = arith.addf %688, %690 : vector<8x128xf32>
    %692 = arith.negf %691 : vector<8x128xf32>
    %693 = math.exp %692 : vector<8x128xf32>
    %cst_323 = arith.constant 1.000000e+00 : f32
    %694 = vector.broadcast %cst_323 : f32 to vector<8x128xf32>
    %695 = arith.addf %694, %693 : vector<8x128xf32>
    %696 = arith.divf %694, %695 : vector<8x128xf32>
    %cst_324 = arith.constant 2.000000e+00 : f32
    %697 = vector.broadcast %cst_324 : f32 to vector<8x128xf32>
    %698 = arith.mulf %697, %696 : vector<8x128xf32>
    %cst_325 = arith.constant 1.000000e+00 : f32
    %699 = vector.broadcast %cst_325 : f32 to vector<8x128xf32>
    %700 = arith.subf %698, %699 : vector<8x128xf32>
    %cst_326 = arith.constant 2.000000e+00 : f32
    %701 = vector.broadcast %cst_326 : f32 to vector<8x128xf32>
    %702 = arith.mulf %701, %696 : vector<8x128xf32>
    %cst_327 = arith.constant 1.000000e+00 : f32
    %703 = vector.broadcast %cst_327 : f32 to vector<8x128xf32>
    %704 = arith.subf %696, %703 : vector<8x128xf32>
    %705 = arith.mulf %702, %704 : vector<8x128xf32>
    %cst_328 = arith.constant 1.000000e+00 : f32
    %706 = vector.broadcast %cst_328 : f32 to vector<8x128xf32>
    %707 = arith.addf %705, %706 : vector<8x128xf32>
    %708 = arith.divf %700, %707 : vector<8x128xf32>
    %709 = arith.subf %708, %685 : vector<8x128xf32>
    %710 = arith.mulf %696, %709 : vector<8x128xf32>
    %711 = arith.addf %685, %710 : vector<8x128xf32>
    %712 = arith.index_cast %c7_i32 : i32 to index
    %c0_329 = arith.constant 0 : index
    %c0_330 = arith.constant 0 : index
    %713 = vector.load %arg6[%712, %c0_329, %c0_330] : memref<8x8x128xf32, #tpu.memory_space<vmem>>, vector<1x8x128xf32>
    %714 = vector.shape_cast %713 : vector<1x8x128xf32> to vector<8x128xf32>
    %715 = vector.shape_cast %711 : vector<8x128xf32> to vector<1x8x128xf32>
    tpu.vector_store %arg6[%712, %c0_329, %c0_330], %715 {strides = array<i32>} : memref<8x8x128xf32, #tpu.memory_space<vmem>>, vector<1x8x128xf32>,
    %c8_i32 = arith.constant 8 : i32
    return
  }
}

</mosaic_0001>

<bundles_post_ra>
// kernel: tpu_custom_call.1
= control target key start
LH: loop header
LB: loop body
LE: loop exit
PB: predicated region body
PF: predicated region fallthrough
CT: control target
= control target key end

     0   :  { %11 = vsyncpa [#allocation3], 0  ;;  %s6510_s0 = inlined_call_operand.hbm [shape: f32[8,8,16], index: 0, kind: input, shape index: {}]   ;;  %s6511_s1 = inlined_call_operand.hbm [shape: f32[1,8,128], index: 1, kind: input, shape index: {}]   ;;  %s6512_s2 = inlined_call_operand.hbm [shape: f32[16,128], index: 2, kind: input, shape index: {}]   ;;  %s6513_s3 = inlined_call_operand.vmem [shape: f32[1,128], index: 3, kind: input, shape index: {}]   ;;  %s6514_s4 = inlined_call_operand.hbm [shape: f32[3,128,128], index: 4, kind: input, shape index: {}]   ;;  %s6515_s5 = inlined_call_operand.vmem [shape: f32[3,128], index: 5, kind: input, shape index: {}]   ;;  %s6516_s6 = inlined_call_operand.hbm [shape: f32[8,8,128], index: 6, kind: output, shape index: {}]  }
   0x1   :  { %12 = vsyncpa [#allocation6], 0 }
   0x2   :  { %13 = vsyncpa [#allocation9], 0 }
   0x3   :  { %14 = vsyncpa [#allocation4], 0  ;;  %s5636_s21 = smov [#allocation5]   ;;  %s5637_s23 = smov [#allocation2]  }
   0x4   :  { %s33_s22 = sshll.u32 %s5636_s21, 4  ;;  %s20_s24 = sshll.u32 %s5637_s23, 4  ;;  %s34_s22 = int_to_ptr.vmem [resolvable:$true] %s33_s22  ;;  %s5681_s24 = int_to_ptr.vmem [resolvable:$true] %s20_s24 }
   0x5   :  { %s5518_s27 = scalar_lea.hbm %s6511_s1, 128 }
   0x6   :  { %p5519_p0 = scmp.ne.s32.totalorder %s6511_s1, %s5518_s27  ;;  %p5522_p1 = scmp.lt.u32.totalorder %s5518_s27, %s6511_s1 }
   0x8   :  { %p5524_p2 = pnand %p5522_p1, %p5519_p0 }
   0xa   :  { %5527 = shalt.err (!%p5524_p2)
}
   0xb   :  { %s5528_s8 = scalar_lea.vmem %s34_s22, 128  ;;  %p5533_p4 = scmp.lt.s32.totalorder %s34_s22, %s34_s22 }
   0xc   :  { %p5529_p3 = scmp.ne.s32.totalorder %s34_s22, %s5528_s8  ;;  %p5534_p5 = scmp.lt.s32.totalorder %s5528_s8, %s5528_s8 }
   0xe   :  { %p5535_p6 = por %p5534_p5, %p5533_p4 }
  0x10   :  { %p5536_p7 = pnand %p5535_p6, %p5529_p3 }
  0x12   :  { %5539 = shalt.err (!%p5536_p7)
}
  0x13   :  { %36 = dma.hbm_to_vmem [thread:$0]  %s6511_s1, 128, %s34_s22, [#allocation6]  }
  0x14   :  { %s5540_s13 = scalar_lea.hbm %s6510_s0, 1024 }
  0x15   :  { %p5541_p8 = scmp.ne.s32.totalorder %s6510_s0, %s5540_s13  ;;  %p5544_p9 = scmp.lt.u32.totalorder %s5540_s13, %s6510_s0 }
  0x17   :  { %p5546_p10 = pnand %p5544_p9, %p5541_p8 }
  0x19   :  { %5549 = shalt.err (!%p5546_p10)
}
  0x1a   :  { %s5550_s18 = scalar_lea.vmem %s5681_s24, 1024  ;;  %p5555_p12 = scmp.lt.s32.totalorder %s5681_s24, %s5681_s24 }
  0x1b   :  { %p5551_p11 = scmp.ne.s32.totalorder %s5681_s24, %s5550_s18  ;;  %p5556_p13 = scmp.lt.s32.totalorder %s5550_s18, %s5550_s18 }
  0x1d   :  { %p5557_p0 = por %p5556_p13, %p5555_p12 }
  0x1f   :  { %p5558_p1 = pnand %p5557_p0, %p5551_p11 }
  0x21   :  { %5561 = shalt.err (!%p5558_p1)
}
  0x22   :  { %s5638_s1 = smov 128   ;;  %s5639_s19 = smov 8  }
  0x23   :  { %26 = dma.hbm_to_vmem [thread:$0]  %s6510_s0, 1024, %s5681_s24, [#allocation3], %s5638_s1, %s5638_s1, %s5639_s19  }
  0x24   :  { %s5640_s22 = smov [#allocation7]   ;;  %s5641_s25 = smov [#allocation8]  }
  0x25   :  { %s42_s23 = sshll.u32 %s5640_s22, 4  ;;  %s56_s26 = sshll.u32 %s5641_s25, 4  ;;  %s43_s23 = int_to_ptr.vmem [resolvable:$true] %s42_s23  ;;  %s5715_s26 = int_to_ptr.vmem [resolvable:$true] %s56_s26 }
  0x26   :  { %s5562_s29 = scalar_lea.hbm %s6512_s2, 256 }
  0x27   :  { %p5563_p2 = scmp.ne.s32.totalorder %s6512_s2, %s5562_s29  ;;  %p5566_p3 = scmp.lt.u32.totalorder %s5562_s29, %s6512_s2 }
  0x29   :  { %p5568_p4 = pnand %p5566_p3, %p5563_p2 }
  0x2b   :  { %5571 = shalt.err (!%p5568_p4)
}
  0x2c   :  { %s5572_s0 = scalar_lea.vmem %s43_s23, 256  ;;  %p5577_p6 = scmp.lt.s32.totalorder %s43_s23, %s43_s23 }
  0x2d   :  { %p5573_p5 = scmp.ne.s32.totalorder %s43_s23, %s5572_s0  ;;  %p5578_p7 = scmp.lt.s32.totalorder %s5572_s0, %s5572_s0 }
  0x2f   :  { %p5579_p8 = por %p5578_p7, %p5577_p6 }
  0x31   :  { %p5580_p9 = pnand %p5579_p8, %p5573_p5 }
  0x33   :  { %5583 = shalt.err (!%p5580_p9)
}
  0x34   :  { %48 = dma.hbm_to_vmem [thread:$0]  %s6512_s2, 256, %s43_s23, [#allocation6], %s5638_s1, %s5638_s1, %s5639_s19  }
  0x35   :  { %s5584_s13 = scalar_lea.hbm %s6514_s4, 6144 }
  0x36   :  { %p5585_p10 = scmp.ne.s32.totalorder %s6514_s4, %s5584_s13  ;;  %p5588_p11 = scmp.lt.u32.totalorder %s5584_s13, %s6514_s4 }
  0x38   :  { %p5590_p12 = pnand %p5588_p11, %p5585_p10 }
  0x3a   :  { %5593 = shalt.err (!%p5590_p12)
}
  0x3b   :  { %s5594_s18 = scalar_lea.vmem %s5715_s26, 6144  ;;  %p5599_p0 = scmp.lt.s32.totalorder %s5715_s26, %s5715_s26 }
  0x3c   :  { %p5595_p13 = scmp.ne.s32.totalorder %s5715_s26, %s5594_s18  ;;  %p5600_p1 = scmp.lt.s32.totalorder %s5594_s18, %s5594_s18 }
  0x3e   :  { %p5601_p2 = por %p5600_p1, %p5599_p0 }
  0x40   :  { %p5602_p3 = pnand %p5601_p2, %p5595_p13 }
  0x42   :  { %5605 = shalt.err (!%p5602_p3)
}
  0x43   :  { %62 = dma.hbm_to_vmem [thread:$0]  %s6514_s4, 6144, %s5715_s26, [#allocation9], %s5638_s1, %s5638_s1, %s5639_s19  }
  0x44   :  { %5628 = dma.done.wait [#allocation3], 1024  }
  0x45   :  { %5629 = vsyncadd [#allocation3], 4294966272 }
  0x46   :  { %5630 = dma.done.wait [#allocation6], 384  }
  0x47   :  { %5631 = vsyncadd [#allocation6], 4294966912 }
  0x48   :  { %5632 = dma.done.wait [#allocation9], 6144  }
  0x49   :  { %5633 = vsyncadd [#allocation9], 4294961152  ;;  %v5642_v0 = vmov 0.0|0.0   ;;  %vm5643_vm0 = vmmov 0   ;;  %v5644_v1 = vmov 0.0   ;;  %v162_v2 = vld [vmem:[#allocation8] sm:$0xff] }
  0x4a   :  { %4735 = vmatprep.subr.bf16.mxu0 %v5642_v0  ;;  %4732 = vmatprep.subr.bf16.mxu1 %v5642_v0  ;;  %v163_v3 = vld [vmem:[#allocation8 + $0x8] sm:$0xff]  ;;  %v164_v4 = vld [vmem:[#allocation8 + $0x10] sm:$0xff]  ;;  %v165_v6 = vld [vmem:[#allocation8 + $0x18] sm:$0xff]  ;;  %vm88_vm1 = vcmask 130048  }
  0x4b   :  { %3840 = vmatprep.mubr.msk.f32.mxu1 %vm5643_vm0, %v5644_v1  ;;  %3875 = vmatprep.mubr.msk.f32.mxu0 %vm5643_vm0, %v5644_v1  ;;  %v5758_v5 = vpack.c.bf16 %v163_v3, %v162_v2  ;;  %v5761_v7 = vpack.c.bf16 %v165_v6, %v164_v4  ;;  %v166_v8 = vld [vmem:[#allocation8 + $0x20] sm:$0xff]  ;;  %v167_v9 = vld [vmem:[#allocation8 + $0x28] sm:$0xff]  ;;  %v77_v10 = vld [vmem:[#allocation7] sm:$0xff] }
  0x4c   :  { %v78_v11 = vld [vmem:[#allocation7 + $0x8] sm:$0xff]  ;;  %v5767_v13 = vpack.c.bf16 %v167_v9, %v166_v8  ;;  %v81_v14 = vld [vmem:[#allocation2] sm:$0xff]  ;;  %v168_v15 = vld [vmem:[#allocation8 + $0x30] sm:$0xff] }
  0x4d   :  { %4737 = vmatpush3.bf16.msra.mxu0 %v5758_v5  ;;  %v5764_v12 = vpack.c.bf16 %v78_v11, %v77_v10  ;;  %v169_v16 = vld [vmem:[#allocation8 + $0x38] sm:$0xff]  ;;  %v170_v18 = vld [vmem:[#allocation8 + $0x40] sm:$0xff]  ;;  %v171_v19 = vld [vmem:[#allocation8 + $0x48] sm:$0xff] }
  0x4e   :  { %4738 = vmatprep.subr.bf16.mxu0 %v5642_v0  ;;  %v5774_v17 = vpack.c.bf16 %v169_v16, %v168_v15  ;;  %v5780_v20 = vpack.c.bf16 %v171_v19, %v170_v18  ;;  %v172_v21 = vld [vmem:[#allocation8 + $0x50] sm:$0xff]  ;;  %v173_v22 = vld [vmem:[#allocation8 + $0x58] sm:$0xff]  ;;  %v174_v24 = vld [vmem:[#allocation8 + $0x60] sm:$0xff] }
  0x4f   :  { %4734 = vmatpush3.bf16.msra.mxu1 %v5764_v12  ;;  %v5784_v23 = vpack.c.bf16 %v173_v22, %v172_v21  ;;  %v175_v25 = vld [vmem:[#allocation8 + $0x68] sm:$0xff]  ;;  %v176_v27 = vld [vmem:[#allocation8 + $0x70] sm:$0xff]  ;;  %v177_v28 = vld [vmem:[#allocation8 + $0x78] sm:$0xff] }
  0x50   :  { %4759 = vmatprep.subr.bf16.mxu1 %v5642_v0  ;;  %v5788_v26 = vpack.c.bf16 %v175_v25, %v174_v24  ;;  %v5792_v29 = vpack.c.bf16 %v177_v28, %v176_v27  ;;  %v5796_v30 = vld [vmem:[#allocation5] sm:$0xff]  ;;  %v271_v31 = vld [vmem:[#allocation8 + $0x80] sm:$0xff]  ;;  %v273_v33 = vld [vmem:[#allocation8 + $0x90] sm:$0xff] }
  0x51   :  { %4740 = vmatpush3.bf16.msra.mxu0 %v5761_v7  ;;  %v272_v32 = vld [vmem:[#allocation8 + $0x88] sm:$0xff]  ;;  %v274_v35 = vld [vmem:[#allocation8 + $0x98] sm:$0xff]  ;;  %v275_v37 = vld [vmem:[#allocation8 + $0xa0] sm:$0xff] }
  0x52   :  { %4741 = vmatprep.subr.bf16.mxu0 %v5642_v0  ;;  %3841 = vmatmul.mubr.msk.f32.vlgmr.msra.gmra.mrb[0].mxu1 %vm88_vm1, %v81_v14  ;;  %v5804_v34 = vpack.c.bf16 %v272_v32, %v271_v31  ;;  %v5807_v36 = vpack.c.bf16 %v274_v35, %v273_v33  ;;  %v276_v38 = vld [vmem:[#allocation8 + $0xa8] sm:$0xff]  ;;  %v277_v40 = vld [vmem:[#allocation8 + $0xb0] sm:$0xff]  ;;  %v278_v41 = vld [vmem:[#allocation8 + $0xb8] sm:$0xff] }
  0x53   :  { %3910 = vmatprep.mubr.msk.f32.mxu1 %vm5643_vm0, %v5644_v1  ;;  %v5811_v39 = vpack.c.bf16 %v276_v38, %v275_v37  ;;  %v5815_v42 = vpack.c.bf16 %v278_v41, %v277_v40  ;;  %v279_v43 = vld [vmem:[#allocation8 + $0xc0] sm:$0xff]  ;;  %v280_v44 = vld [vmem:[#allocation8 + $0xc8] sm:$0xff]  ;;  %v281_v46 = vld [vmem:[#allocation8 + $0xd0] sm:$0xff] }
  0x54   :  { %4761 = vmatpush3.bf16.msra.mxu1 %v5804_v34  ;;  %v5819_v45 = vpack.c.bf16 %v280_v44, %v279_v43  ;;  %v282_v47 = vld [vmem:[#allocation8 + $0xd8] sm:$0xff]  ;;  %v283_v49 = vld [vmem:[#allocation8 + $0xe0] sm:$0xff]  ;;  %v284_v50 = vld [vmem:[#allocation8 + $0xe8] sm:$0xff] }
  0x55   :  { %4743 = vmatpush3.bf16.msra.mxu0 %v5767_v13  ;;  %4762 = vmatprep.subr.bf16.mxu1 %v5642_v0  ;;  %v5823_v48 = vpack.c.bf16 %v282_v47, %v281_v46  ;;  %v5827_v51 = vpack.c.bf16 %v284_v50, %v283_v49  ;;  %v285_v52 = vld [vmem:[#allocation8 + $0xf0] sm:$0xff]  ;;  %v286_v53 = vld [vmem:[#allocation8 + $0xf8] sm:$0xff]  ;;  %v5839_v57 = vld [vmem:[%s6513_s3] ss:$0 sm:$0xff] }
  0x56   :  { %4744 = vmatprep.subr.bf16.mxu0 %v5642_v0  ;;  %v5831_v54 = vpack.c.bf16 %v286_v53, %v285_v52  ;;  %v5845_v59 = vld [vmem:[%s6515_s5] ss:$0 sm:$0xff]  ;;  %v379_v22 = vld [vmem:[#allocation8 + $0x100] sm:$0xff]  ;;  %v381_v25 = vld [vmem:[#allocation8 + $0x110] sm:$0xff] }
  0x57   :  { %v380_v24 = vld [vmem:[#allocation8 + $0x108] sm:$0xff]  ;;  %v382_v28 = vld [vmem:[#allocation8 + $0x118] sm:$0xff]  ;;  %v383_v32 = vld [vmem:[#allocation8 + $0x120] sm:$0xff] }
  0x58   :  { %4764 = vmatpush3.bf16.msra.mxu1 %v5807_v36  ;;  %v5855_v27 = vpack.c.bf16 %v380_v24, %v379_v22  ;;  %v5858_v31 = vpack.c.bf16 %v382_v28, %v381_v25  ;;  %v385_v35 = vld [vmem:[#allocation8 + $0x130] sm:$0xff]  ;;  %v386_v37 = vld [vmem:[#allocation8 + $0x138] sm:$0xff]  ;;  %v387_v40 = vld [vmem:[#allocation8 + $0x140] sm:$0xff] }
  0x59   :  { %4746 = vmatpush3.bf16.msra.mxu0 %v5774_v17  ;;  %4765 = vmatprep.subr.bf16.mxu1 %v5642_v0  ;;  %v5866_v38 = vpack.c.bf16 %v386_v37, %v385_v35  ;;  %v388_v41 = vld [vmem:[#allocation8 + $0x148] sm:$0xff]  ;;  %v389_v44 = vld [vmem:[#allocation8 + $0x150] sm:$0xff]  ;;  %v390_v46 = vld [vmem:[#allocation8 + $0x158] sm:$0xff] }
  0x5a   :  { %4747 = vmatprep.subr.bf16.mxu0 %v5642_v0  ;;  %v5870_v43 = vpack.c.bf16 %v388_v41, %v387_v40  ;;  %v5874_v47 = vpack.c.bf16 %v390_v46, %v389_v44  ;;  %v391_v49 = vld [vmem:[#allocation8 + $0x160] sm:$0xff]  ;;  %v392_v50 = vld [vmem:[#allocation8 + $0x168] sm:$0xff]  ;;  %v393_v53 = vld [vmem:[#allocation8 + $0x170] sm:$0xff] }
  0x5b   :  { %v5878_v52 = vpack.c.bf16 %v392_v50, %v391_v49  ;;  %v5935_v22 = vld [vmem:[%s6515_s5 + $0x2] ss:$0 sm:$0xff] }
  0x5c   :  { %4767 = vmatpush3.bf16.msra.mxu1 %v5811_v39 }
  0x5d   :  { %4749 = vmatpush3.bf16.msra.mxu0 %v5780_v20  ;;  %4768 = vmatprep.subr.bf16.mxu1 %v5642_v0 }
  0x5e   :  { %4750 = vmatprep.subr.bf16.mxu0 %v5642_v0 }
  0x60   :  { %4770 = vmatpush3.bf16.msra.mxu1 %v5815_v42 }
  0x61   :  { %4752 = vmatpush3.bf16.msra.mxu0 %v5784_v23  ;;  %4771 = vmatprep.subr.bf16.mxu1 %v5642_v0 }
  0x62   :  { %4753 = vmatprep.subr.bf16.mxu0 %v5642_v0 }
  0x64   :  { %4773 = vmatpush3.bf16.msra.mxu1 %v5819_v45 }
  0x65   :  { %4755 = vmatpush3.bf16.msra.mxu0 %v5788_v26  ;;  %4774 = vmatprep.subr.bf16.mxu1 %v5642_v0 }
  0x66   :  { %4756 = vmatprep.subr.bf16.mxu0 %v5642_v0 }
  0x68   :  { %4776 = vmatpush3.bf16.msra.mxu1 %v5823_v48 }
  0x69   :  { %4758 = vmatpush3.bf16.msra.mxu0 %v5792_v29  ;;  %4777 = vmatprep.subr.bf16.mxu1 %v5642_v0 }
  0x6a   :  { %4807 = vmatprep.subr.bf16.mxu0 %v5642_v0 }
  0x6c   :  { %3876 = vmatmul.mubr.f32.vlgmr.msra.gmra.mrb[0].mxu0 %v5796_v30  ;;  %4779 = vmatpush3.bf16.msra.mxu1 %v5827_v51 }
  0x6d   :  { %4809 = vmatpush3.bf16.msra.mxu0 %v5764_v12  ;;  %3952 = vmatprep.mubr.msk.f32.mxu0 %vm5643_vm0, %v5644_v1 }
  0x6e   :  { %4810 = vmatprep.subr.bf16.mxu0 %v5642_v0  ;;  %4780 = vmatprep.subr.bf16.mxu1 %v5642_v0 }
  0x70   :  { %4782 = vmatpush3.bf16.msra.mxu1 %v5831_v54 }
  0x71   :  { %4783 = vmatprep.subr.bf16.mxu1 %v5642_v0 }
 0x125   :  { %v158_v55 = vpop.f32.mrb[0].mxu1 }
 0x126   :  { %v3842_v56 = vpop.f32.mrb[1].mxu1  ;;  %v159_v58 = vadd.f32 %v5839_v57, %v158_v55  ;;  %v394_v55 = vld [vmem:[#allocation8 + $0x178] sm:$0xff] }
 0x127   :  { %v5882_v56 = vpack.c.bf16 %v394_v55, %v393_v53 }
 0x128   :  { %v5333_v60 = vadd.f32 %v5845_v59, %v159_v58  ;;  %v5890_v58 = vld [vmem:[%s6515_s5 + $0x1] ss:$0 sm:$0xff] }
 0x13f   :  { %v249_v61 = vpop.f32.mrb[0].mxu0 }
 0x140   :  { %v5334_v62 = vadd.f32 %v5333_v60, %v249_v61  ;;  %v3877_v63 = vpop.f32.mrb[1].mxu0 }
 0x142   :  { %v3302_v2 = vmul.f32 -1.442695, %v5334_v62 }
 0x144   :  { %5373 = vpow2.f32 %v3302_v2 }
 0x14e   :  { %v5374_v3 = vpop.eup %5373 }
 0x14f   :  { %v257_v4 = vadd.f32 1.0, %v5374_v3 }
 0x151   :  { %5375 = vrcp.f32 %v257_v4 }
 0x15b   :  { %v5376_v6 = vpop.eup %5375 }
 0x15c   :  { %v260_v8 = vmul.f32 2.0, %v5376_v6  ;;  %v3304_v9 = vadd.f32 -1.0, %v5376_v6 }
 0x15e   :  { %v263_v10 = vmul.f32 %v3304_v9, %v260_v8  ;;  %v3303_v14 = vadd.f32 -1.0, %v260_v8 }
 0x160   :  { %v264_v11 = vadd.f32 1.0, %v263_v10 }
 0x162   :  { %5377 = vrcp.f32 %v264_v11 }
 0x16c   :  { %v5378_v15 = vpop.eup %5377 }
 0x16d   :  { %v266_v16 = vmul.f32 %v5378_v15, %v3303_v14 }
 0x16f   :  { %v267_v18 = vsub.f32 %v266_v16, %v5796_v30 }
 0x171   :  { %v268_v19 = vmul.f32 %v5376_v6, %v267_v18 }
 0x173   :  { %v5850_v21 = vadd.f32 %v268_v19, %v5796_v30  ;;  %v384_v30 = vld [vmem:[#allocation8 + $0x128] sm:$0xff] }
 0x174   :  { %v5862_v33 = vpack.c.bf16 %v384_v30, %v383_v32 }
 0x175   :  { %3911 = vmatmul.mubr.f32.vlgmr.msra.gmra.mrb[2].mxu1 %v5850_v21 }
 0x176   :  { %3945 = vmatprep.mubr.msk.f32.mxu1 %vm5643_vm0, %v5644_v1  ;;  %4785 = vmatpush3.bf16.msra.mxu1 %v5855_v27 }
 0x177   :  { %4786 = vmatprep.subr.bf16.mxu1 %v5642_v0 }
 0x17a   :  { %4788 = vmatpush3.bf16.msra.mxu1 %v5858_v31 }
 0x17b   :  { %4789 = vmatprep.subr.bf16.mxu1 %v5642_v0 }
 0x17e   :  { %4791 = vmatpush3.bf16.msra.mxu1 %v5862_v33 }
 0x17f   :  { %4792 = vmatprep.subr.bf16.mxu1 %v5642_v0 }
 0x182   :  { %4794 = vmatpush3.bf16.msra.mxu1 %v5866_v38 }
 0x183   :  { %4795 = vmatprep.subr.bf16.mxu1 %v5642_v0 }
 0x186   :  { %4797 = vmatpush3.bf16.msra.mxu1 %v5870_v43 }
 0x187   :  { %4798 = vmatprep.subr.bf16.mxu1 %v5642_v0 }
 0x18a   :  { %4800 = vmatpush3.bf16.msra.mxu1 %v5874_v47 }
 0x18b   :  { %4801 = vmatprep.subr.bf16.mxu1 %v5642_v0 }
 0x18e   :  { %4803 = vmatpush3.bf16.msra.mxu1 %v5878_v52 }
 0x18f   :  { %4804 = vmatprep.subr.bf16.mxu1 %v5642_v0 }
 0x192   :  { %4806 = vmatpush3.bf16.msra.mxu1 %v5882_v56 }
 0x193   :  { %4834 = vmatprep.subr.bf16.mxu1 %v5642_v0 }
 0x248   :  { %v358_v60 = vpop.f32.mrb[2].mxu1 }
 0x249   :  { %v359_v61 = vadd.f32 %v5890_v58, %v358_v60  ;;  %v3912_v62 = vpop.f32.mrb[3].mxu1 }
 0x24a   :  { %v5958_v62 = vadd.f32 %v5845_v59, %v5839_v57 }
 0x24b   :  { %v3306_v63 = vmul.f32 -1.442695, %v359_v61 }
 0x24d   :  { %5379 = vpow2.f32 %v3306_v63 }
 0x257   :  { %v5380_v2 = vpop.eup %5379 }
 0x258   :  { %v365_v3 = vadd.f32 1.0, %v5380_v2 }
 0x25a   :  { %5381 = vrcp.f32 %v365_v3 }
 0x264   :  { %v5382_v4 = vpop.eup %5381 }
 0x265   :  { %v368_v6 = vmul.f32 2.0, %v5382_v4  ;;  %v3308_v8 = vadd.f32 -1.0, %v5382_v4 }
 0x267   :  { %v371_v9 = vmul.f32 %v3308_v8, %v368_v6  ;;  %v3307_v11 = vadd.f32 -1.0, %v368_v6 }
 0x269   :  { %v372_v10 = vadd.f32 1.0, %v371_v9 }
 0x26b   :  { %5383 = vrcp.f32 %v372_v10 }
 0x275   :  { %v5384_v14 = vpop.eup %5383 }
 0x276   :  { %v374_v15 = vmul.f32 %v5384_v14, %v3307_v11 }
 0x278   :  { %v375_v16 = vsub.f32 %v374_v15, %v5850_v21 }
 0x27a   :  { %v376_v18 = vmul.f32 %v5382_v4, %v375_v16 }
 0x27c   :  { %v377_v19 = vadd.f32 %v376_v18, %v5850_v21  ;;  %v488_v21 = vld [vmem:[#allocation2 + $0x8] sm:$0xff] }
 0x27d   :  { %3953 = vmatmul.mubr.msk.f32.vlgmr.msra.gmra.mrb[2].mxu0 %vm88_vm1, %v488_v21 }
 0x27e   :  { %3946 = vmatmul.mubr.f32.vlgmr.msra.gmra.mrb[4].mxu1 %v377_v19  ;;  %4812 = vmatpush3.bf16.msra.mxu0 %v5758_v5 }
 0x27f   :  { %4836 = vmatpush3.bf16.msra.mxu1 %v5804_v34  ;;  %4022 = vmatprep.mubr.msk.f32.mxu1 %vm5643_vm0, %v5644_v1 }
 0x280   :  { %4837 = vmatprep.subr.bf16.mxu1 %v5642_v0  ;;  %3987 = vmatprep.mubr.msk.f32.mxu0 %vm5643_vm0, %v5644_v1 }
 0x281   :  { %4813 = vmatprep.subr.bf16.mxu0 %v5642_v0 }
 0x282   :  { %4815 = vmatpush3.bf16.msra.mxu0 %v5761_v7 }
 0x283   :  { %4839 = vmatpush3.bf16.msra.mxu1 %v5807_v36  ;;  %4816 = vmatprep.subr.bf16.mxu0 %v5642_v0 }
 0x284   :  { %4840 = vmatprep.subr.bf16.mxu1 %v5642_v0 }
 0x286   :  { %4818 = vmatpush3.bf16.msra.mxu0 %v5767_v13 }
 0x287   :  { %4842 = vmatpush3.bf16.msra.mxu1 %v5811_v39  ;;  %4819 = vmatprep.subr.bf16.mxu0 %v5642_v0 }
 0x288   :  { %4843 = vmatprep.subr.bf16.mxu1 %v5642_v0 }
 0x28a   :  { %4821 = vmatpush3.bf16.msra.mxu0 %v5774_v17 }
 0x28b   :  { %4845 = vmatpush3.bf16.msra.mxu1 %v5815_v42  ;;  %4822 = vmatprep.subr.bf16.mxu0 %v5642_v0 }
 0x28c   :  { %4846 = vmatprep.subr.bf16.mxu1 %v5642_v0 }
 0x28e   :  { %4824 = vmatpush3.bf16.msra.mxu0 %v5780_v20 }
 0x28f   :  { %4848 = vmatpush3.bf16.msra.mxu1 %v5819_v45  ;;  %4825 = vmatprep.subr.bf16.mxu0 %v5642_v0 }
 0x290   :  { %4849 = vmatprep.subr.bf16.mxu1 %v5642_v0 }
 0x292   :  { %4827 = vmatpush3.bf16.msra.mxu0 %v5784_v23 }
 0x293   :  { %4851 = vmatpush3.bf16.msra.mxu1 %v5823_v48  ;;  %4828 = vmatprep.subr.bf16.mxu0 %v5642_v0 }
 0x294   :  { %4852 = vmatprep.subr.bf16.mxu1 %v5642_v0 }
 0x296   :  { %4830 = vmatpush3.bf16.msra.mxu0 %v5788_v26 }
 0x297   :  { %4854 = vmatpush3.bf16.msra.mxu1 %v5827_v51  ;;  %4831 = vmatprep.subr.bf16.mxu0 %v5642_v0 }
 0x298   :  { %4855 = vmatprep.subr.bf16.mxu1 %v5642_v0 }
 0x29a   :  { %4833 = vmatpush3.bf16.msra.mxu0 %v5792_v29 }
 0x29b   :  { %4857 = vmatpush3.bf16.msra.mxu1 %v5831_v54  ;;  %4858 = vmatprep.subr.bf16.mxu0 %v5642_v0 }
 0x29c   :  { %4882 = vmatprep.subr.bf16.mxu1 %v5642_v0 }
 0x351   :  { %v466_v24 = vpop.f32.mrb[4].mxu1 }
 0x352   :  { %v467_v25 = vadd.f32 %v5935_v22, %v466_v24  ;;  %v3947_v28 = vpop.f32.mrb[5].mxu1 }
 0x354   :  { %v3310_v32 = vmul.f32 -1.442695, %v467_v25 }
 0x356   :  { %5385 = vpow2.f32 %v3310_v32 }
 0x360   :  { %v5386_v30 = vpop.eup %5385 }
 0x361   :  { %v473_v35 = vadd.f32 1.0, %v5386_v30 }
 0x363   :  { %5387 = vrcp.f32 %v473_v35 }
 0x36d   :  { %v5388_v37 = vpop.eup %5387 }
 0x36e   :  { %v476_v40 = vmul.f32 2.0, %v5388_v37  ;;  %v3312_v41 = vadd.f32 -1.0, %v5388_v37 }
 0x370   :  { %v479_v44 = vmul.f32 %v3312_v41, %v476_v40  ;;  %v3311_v49 = vadd.f32 -1.0, %v476_v40 }
 0x372   :  { %v480_v46 = vadd.f32 1.0, %v479_v44 }
 0x374   :  { %5389 = vrcp.f32 %v480_v46 }
 0x37e   :  { %v5390_v50 = vpop.eup %5389 }
 0x37f   :  { %v482_v53 = vmul.f32 %v5390_v50, %v3311_v49 }
 0x381   :  { %v483_v55 = vsub.f32 %v482_v53, %v377_v19 }
 0x383   :  { %v484_v60 = vmul.f32 %v5388_v37, %v483_v55 }
 0x385   :  { %v485_v61 = vadd.f32 %v484_v60, %v377_v19 }
 0x387   :  { %486 = vst [vmem:[#allocation10] sm:$0xff] %v485_v61  ;;  %3988 = vmatmul.mubr.f32.vlgmr.msra.gmra.mrb[2].mxu0 %v485_v61 }
 0x388   :  { %4860 = vmatpush3.bf16.msra.mxu0 %v5855_v27  ;;  %4057 = vmatprep.mubr.msk.f32.mxu0 %vm5643_vm0, %v5644_v1 }
 0x389   :  { %4861 = vmatprep.subr.bf16.mxu0 %v5642_v0 }
 0x38c   :  { %4863 = vmatpush3.bf16.msra.mxu0 %v5858_v31 }
 0x38d   :  { %4864 = vmatprep.subr.bf16.mxu0 %v5642_v0 }
 0x390   :  { %4866 = vmatpush3.bf16.msra.mxu0 %v5862_v33 }
 0x391   :  { %4867 = vmatprep.subr.bf16.mxu0 %v5642_v0 }
 0x394   :  { %4869 = vmatpush3.bf16.msra.mxu0 %v5866_v38 }
 0x395   :  { %4870 = vmatprep.subr.bf16.mxu0 %v5642_v0 }
 0x398   :  { %4872 = vmatpush3.bf16.msra.mxu0 %v5870_v43 }
 0x399   :  { %4873 = vmatprep.subr.bf16.mxu0 %v5642_v0 }
 0x39c   :  { %4875 = vmatpush3.bf16.msra.mxu0 %v5874_v47 }
 0x39d   :  { %4876 = vmatprep.subr.bf16.mxu0 %v5642_v0 }
 0x3a0   :  { %4878 = vmatpush3.bf16.msra.mxu0 %v5878_v52 }
 0x3a1   :  { %4879 = vmatprep.subr.bf16.mxu0 %v5642_v0 }
 0x3a4   :  { %4881 = vmatpush3.bf16.msra.mxu0 %v5882_v56 }
 0x3a5   :  { %4909 = vmatprep.subr.bf16.mxu0 %v5642_v0 }
 0x45a   :  { %v649_v63 = vpop.f32.mrb[2].mxu0 }
 0x45b   :  { %v5336_v2 = vadd.f32 %v5958_v62, %v649_v63  ;;  %v3989_v3 = vpop.f32.mrb[3].mxu0 }
 0x45d   :  { %v3315_v4 = vmul.f32 -1.442695, %v5336_v2 }
 0x45f   :  { %5391 = vpow2.f32 %v3315_v4 }
 0x469   :  { %v5392_v6 = vpop.eup %5391 }
 0x46a   :  { %v657_v8 = vadd.f32 1.0, %v5392_v6 }
 0x46c   :  { %5393 = vrcp.f32 %v657_v8 }
 0x476   :  { %v5394_v9 = vpop.eup %5393 }
 0x477   :  { %v660_v10 = vmul.f32 2.0, %v5394_v9  ;;  %v3317_v11 = vadd.f32 -1.0, %v5394_v9 }
 0x479   :  { %v663_v14 = vmul.f32 %v3317_v11, %v660_v10  ;;  %v3316_v16 = vadd.f32 -1.0, %v660_v10 }
 0x47b   :  { %v664_v15 = vadd.f32 1.0, %v663_v14 }
 0x47d   :  { %5395 = vrcp.f32 %v664_v15 }
 0x487   :  { %v5396_v18 = vpop.eup %5395 }
 0x488   :  { %v666_v19 = vmul.f32 %v5396_v18, %v3316_v16 }
 0x48a   :  { %v667_v59 = vsub.f32 %v666_v19, %v485_v61 }
 0x48c   :  { %v668_v21 = vmul.f32 %v5394_v9, %v667_v59 }
 0x48e   :  { %v669_v24 = vadd.f32 %v668_v21, %v485_v61 }
 0x490   :  { %4023 = vmatmul.mubr.f32.vlgmr.msra.gmra.mrb[6].mxu1 %v669_v24 }
 0x491   :  { %4884 = vmatpush3.bf16.msra.mxu1 %v5764_v12  ;;  %4064 = vmatprep.mubr.msk.f32.mxu1 %vm5643_vm0, %v5644_v1 }
 0x492   :  { %4885 = vmatprep.subr.bf16.mxu1 %v5642_v0 }
 0x563   :  { %v757_v25 = vpop.f32.mrb[6].mxu1 }
 0x564   :  { %v758_v28 = vadd.f32 %v5890_v58, %v757_v25  ;;  %v4024_v32 = vpop.f32.mrb[7].mxu1 }
 0x566   :  { %v3319_v30 = vmul.f32 -1.442695, %v758_v28 }
 0x568   :  { %5397 = vpow2.f32 %v3319_v30 }
 0x572   :  { %v5398_v35 = vpop.eup %5397 }
 0x573   :  { %v764_v37 = vadd.f32 1.0, %v5398_v35 }
 0x575   :  { %5399 = vrcp.f32 %v764_v37 }
 0x57f   :  { %v5400_v40 = vpop.eup %5399 }
 0x580   :  { %v767_v41 = vmul.f32 2.0, %v5400_v40  ;;  %v3321_v44 = vadd.f32 -1.0, %v5400_v40 }
 0x582   :  { %v770_v46 = vmul.f32 %v3321_v44, %v767_v41  ;;  %v3320_v50 = vadd.f32 -1.0, %v767_v41 }
 0x584   :  { %v771_v49 = vadd.f32 1.0, %v770_v46 }
 0x586   :  { %5401 = vrcp.f32 %v771_v49 }
 0x590   :  { %v5402_v53 = vpop.eup %5401 }
 0x591   :  { %v773_v55 = vmul.f32 %v5402_v53, %v3320_v50  ;;  %v1360_v50 = vld [vmem:[#allocation8] sm:$0xff]  ;;  %v1361_v53 = vld [vmem:[#allocation8 + $0x8] sm:$0xff] }
 0x593   :  { %v774_v60 = vsub.f32 %v773_v55, %v669_v24  ;;  %v6034_v55 = vpack.c.bf16 %v1361_v53, %v1360_v50  ;;  %v1481_v50 = vld [vmem:[#allocation8 + $0xe8] sm:$0xff] }
 0x595   :  { %v775_v61 = vmul.f32 %v5400_v40, %v774_v60  ;;  %v1362_v60 = vld [vmem:[#allocation8 + $0x10] sm:$0xff] }
 0x597   :  { %v776_v63 = vadd.f32 %v775_v61, %v669_v24  ;;  %v1363_v61 = vld [vmem:[#allocation8 + $0x18] sm:$0xff] }
 0x599   :  { %4058 = vmatmul.mubr.f32.vlgmr.msra.gmra.mrb[4].mxu0 %v776_v63 }
 0x59a   :  { %4911 = vmatpush3.bf16.msra.mxu0 %v5804_v34  ;;  %4134 = vmatprep.mubr.msk.f32.mxu0 %vm5643_vm0, %v5644_v1  ;;  %v887_v34 = vld [vmem:[#allocation2 + $0x10] sm:$0xff] }
 0x59b   :  { %4912 = vmatprep.subr.bf16.mxu0 %v5642_v0  ;;  %4065 = vmatmul.mubr.msk.f32.vlgmr.msra.gmra.mrb[8].mxu1 %vm88_vm1, %v887_v34  ;;  %v1364_v34 = vld [vmem:[#allocation8 + $0x20] sm:$0xff] }
 0x59c   :  { %4887 = vmatpush3.bf16.msra.mxu1 %v5758_v5  ;;  %4099 = vmatprep.mubr.msk.f32.mxu1 %vm5643_vm0, %v5644_v1 }
 0x59d   :  { %4888 = vmatprep.subr.bf16.mxu1 %v5642_v0 }
 0x59e   :  { %4914 = vmatpush3.bf16.msra.mxu0 %v5807_v36 }
 0x59f   :  { %4915 = vmatprep.subr.bf16.mxu0 %v5642_v0 }
 0x5a0   :  { %4890 = vmatpush3.bf16.msra.mxu1 %v5761_v7 }
 0x5a1   :  { %4891 = vmatprep.subr.bf16.mxu1 %v5642_v0 }
 0x5a2   :  { %4917 = vmatpush3.bf16.msra.mxu0 %v5811_v39 }
 0x5a3   :  { %4918 = vmatprep.subr.bf16.mxu0 %v5642_v0 }
 0x5a4   :  { %4893 = vmatpush3.bf16.msra.mxu1 %v5767_v13 }
 0x5a5   :  { %4894 = vmatprep.subr.bf16.mxu1 %v5642_v0 }
 0x5a6   :  { %4920 = vmatpush3.bf16.msra.mxu0 %v5815_v42 }
 0x5a7   :  { %4921 = vmatprep.subr.bf16.mxu0 %v5642_v0 }
 0x5a8   :  { %4896 = vmatpush3.bf16.msra.mxu1 %v5774_v17 }
 0x5a9   :  { %4897 = vmatprep.subr.bf16.mxu1 %v5642_v0 }
 0x5aa   :  { %4923 = vmatpush3.bf16.msra.mxu0 %v5819_v45 }
 0x5ab   :  { %4924 = vmatprep.subr.bf16.mxu0 %v5642_v0 }
 0x5ac   :  { %4899 = vmatpush3.bf16.msra.mxu1 %v5780_v20 }
 0x5ad   :  { %4900 = vmatprep.subr.bf16.mxu1 %v5642_v0 }
 0x5ae   :  { %4926 = vmatpush3.bf16.msra.mxu0 %v5823_v48 }
 0x5af   :  { %4927 = vmatprep.subr.bf16.mxu0 %v5642_v0 }
 0x5b0   :  { %4902 = vmatpush3.bf16.msra.mxu1 %v5784_v23 }
 0x5b1   :  { %4903 = vmatprep.subr.bf16.mxu1 %v5642_v0 }
 0x5b2   :  { %4929 = vmatpush3.bf16.msra.mxu0 %v5827_v51 }
 0x5b3   :  { %4930 = vmatprep.subr.bf16.mxu0 %v5642_v0 }
 0x5b4   :  { %4905 = vmatpush3.bf16.msra.mxu1 %v5788_v26 }
 0x5b5   :  { %4906 = vmatprep.subr.bf16.mxu1 %v5642_v0 }
 0x5b6   :  { %4932 = vmatpush3.bf16.msra.mxu0 %v5831_v54 }
 0x5b7   :  { %4957 = vmatprep.subr.bf16.mxu0 %v5642_v0 }
 0x5b8   :  { %4908 = vmatpush3.bf16.msra.mxu1 %v5792_v29 }
 0x5b9   :  { %4933 = vmatprep.subr.bf16.mxu1 %v5642_v0 }
 0x66c   :  { %v864_v5 = vpop.f32.mrb[4].mxu0 }
 0x66d   :  { %v865_v7 = vadd.f32 %v5935_v22, %v864_v5  ;;  %v4059_v13 = vpop.f32.mrb[5].mxu0  ;;  %v1365_v5 = vld [vmem:[#allocation8 + $0x28] sm:$0xff] }
 0x66e   :  { %v1366_v13 = vld [vmem:[#allocation8 + $0x30] sm:$0xff] }
 0x66f   :  { %v3323_v17 = vmul.f32 -1.442695, %v865_v7  ;;  %v6043_v7 = vpack.c.bf16 %v1365_v5, %v1364_v34  ;;  %v3340_v5 = vld [vmem:[%s6515_s5] ss:$0 sm:$0xff] }
 0x671   :  { %5403 = vpow2.f32 %v3323_v17  ;;  %v1367_v17 = vld [vmem:[#allocation8 + $0x38] sm:$0xff] }
 0x67b   :  { %v5404_v20 = vpop.eup %5403 }
 0x67c   :  { %v871_v36 = vadd.f32 1.0, %v5404_v20  ;;  %v6047_v20 = vpack.c.bf16 %v1367_v17, %v1366_v13  ;;  %v6113_v13 = vadd.f32 %v3340_v5, %v5839_v57 }
 0x67e   :  { %5405 = vrcp.f32 %v871_v36  ;;  %v1368_v36 = vld [vmem:[#allocation8 + $0x40] sm:$0xff] }
 0x688   :  { %v5406_v23 = vpop.eup %5405 }
 0x689   :  { %v874_v39 = vmul.f32 2.0, %v5406_v23  ;;  %v3325_v42 = vadd.f32 -1.0, %v5406_v23 }
 0x68b   :  { %v877_v45 = vmul.f32 %v3325_v42, %v874_v39  ;;  %v3324_v48 = vadd.f32 -1.0, %v874_v39  ;;  %v1370_v42 = vld [vmem:[#allocation8 + $0x50] sm:$0xff] }
 0x68d   :  { %v878_v26 = vadd.f32 1.0, %v877_v45  ;;  %v1371_v45 = vld [vmem:[#allocation8 + $0x58] sm:$0xff] }
 0x68f   :  { %5407 = vrcp.f32 %v878_v26  ;;  %v6055_v26 = vpack.c.bf16 %v1371_v45, %v1370_v42 }
 0x699   :  { %v5408_v51 = vpop.eup %5407 }
 0x69a   :  { %v880_v29 = vmul.f32 %v5408_v51, %v3324_v48  ;;  %v1372_v48 = vld [vmem:[#allocation8 + $0x60] sm:$0xff]  ;;  %v1373_v51 = vld [vmem:[#allocation8 + $0x68] sm:$0xff] }
 0x69c   :  { %v881_v54 = vsub.f32 %v880_v29, %v776_v63  ;;  %v6059_v29 = vpack.c.bf16 %v1373_v51, %v1372_v48 }
 0x69e   :  { %v882_v2 = vmul.f32 %v5406_v23, %v881_v54  ;;  %v1369_v23 = vld [vmem:[#allocation8 + $0x48] sm:$0xff]  ;;  %v1374_v54 = vld [vmem:[#allocation8 + $0x70] sm:$0xff] }
 0x69f   :  { %v6051_v39 = vpack.c.bf16 %v1369_v23, %v1368_v36 }
 0x6a0   :  { %v883_v3 = vadd.f32 %v882_v2, %v776_v63  ;;  %v6039_v63 = vpack.c.bf16 %v1363_v61, %v1362_v60  ;;  %v1375_v2 = vld [vmem:[#allocation8 + $0x78] sm:$0xff]  ;;  %v1482_v60 = vld [vmem:[#allocation8 + $0xf0] sm:$0xff] }
 0x6a1   :  { %v1483_v61 = vld [vmem:[#allocation8 + $0xf8] sm:$0xff] }
 0x6a2   :  { %885 = vst [vmem:[#allocation10 + $0x8] sm:$0xff] %v883_v3  ;;  %4100 = vmatmul.mubr.f32.vlgmr.msra.gmra.mrb[8].mxu1 %v883_v3  ;;  %v6104_v34 = vpack.c.bf16 %v1483_v61, %v1482_v60  ;;  %v6160_v60 = vld [vmem:[%s6515_s5 + $0x1] ss:$0 sm:$0xff] }
 0x6a3   :  { %4935 = vmatpush3.bf16.msra.mxu1 %v5855_v27  ;;  %4169 = vmatprep.mubr.msk.f32.mxu1 %vm5643_vm0, %v5644_v1 }
 0x6a4   :  { %4936 = vmatprep.subr.bf16.mxu1 %v5642_v0 }
 0x6a7   :  { %4938 = vmatpush3.bf16.msra.mxu1 %v5858_v31 }
 0x6a8   :  { %4939 = vmatprep.subr.bf16.mxu1 %v5642_v0 }
 0x6ab   :  { %4941 = vmatpush3.bf16.msra.mxu1 %v5862_v33 }
 0x6ac   :  { %4942 = vmatprep.subr.bf16.mxu1 %v5642_v0 }
 0x6af   :  { %4944 = vmatpush3.bf16.msra.mxu1 %v5866_v38 }
 0x6b0   :  { %4945 = vmatprep.subr.bf16.mxu1 %v5642_v0 }
 0x6b3   :  { %4947 = vmatpush3.bf16.msra.mxu1 %v5870_v43 }
 0x6b4   :  { %4948 = vmatprep.subr.bf16.mxu1 %v5642_v0 }
 0x6b7   :  { %4950 = vmatpush3.bf16.msra.mxu1 %v5874_v47 }
 0x6b8   :  { %4951 = vmatprep.subr.bf16.mxu1 %v5642_v0 }
 0x6bb   :  { %4953 = vmatpush3.bf16.msra.mxu1 %v5878_v52 }
 0x6bc   :  { %4954 = vmatprep.subr.bf16.mxu1 %v5642_v0 }
 0x6bf   :  { %4956 = vmatpush3.bf16.msra.mxu1 %v5882_v56 }
 0x6c0   :  { %4984 = vmatprep.subr.bf16.mxu1 %v5642_v0 }
 0x775   :  { %v1048_v27 = vpop.f32.mrb[8].mxu1 }
 0x776   :  { %v5338_v31 = vadd.f32 %v5958_v62, %v1048_v27  ;;  %v4101_v33 = vpop.f32.mrb[9].mxu1 }
 0x778   :  { %v3328_v38 = vmul.f32 -1.442695, %v5338_v31 }
 0x77a   :  { %5409 = vpow2.f32 %v3328_v38 }
 0x784   :  { %v5410_v43 = vpop.eup %5409 }
 0x785   :  { %v1056_v4 = vadd.f32 1.0, %v5410_v43 }
 0x787   :  { %5411 = vrcp.f32 %v1056_v4 }
 0x791   :  { %v5412_v47 = vpop.eup %5411 }
 0x792   :  { %v1059_v6 = vmul.f32 2.0, %v5412_v47  ;;  %v3330_v8 = vadd.f32 -1.0, %v5412_v47 }
 0x794   :  { %v1062_v9 = vmul.f32 %v3330_v8, %v1059_v6  ;;  %v3329_v10 = vadd.f32 -1.0, %v1059_v6 }
 0x796   :  { %v1063_v52 = vadd.f32 1.0, %v1062_v9 }
 0x798   :  { %5413 = vrcp.f32 %v1063_v52 }
 0x7a2   :  { %v5414_v11 = vpop.eup %5413 }
 0x7a3   :  { %v1065_v56 = vmul.f32 %v5414_v11, %v3329_v10 }
 0x7a5   :  { %v1066_v14 = vsub.f32 %v1065_v56, %v883_v3 }
 0x7a7   :  { %v1067_v15 = vmul.f32 %v5412_v47, %v1066_v14 }
 0x7a9   :  { %v1068_v16 = vadd.f32 %v1067_v15, %v883_v3  ;;  %v6063_v3 = vpack.c.bf16 %v1375_v2, %v1374_v54 }
 0x7ab   :  { %4135 = vmatmul.mubr.f32.vlgmr.msra.gmra.mrb[6].mxu0 %v1068_v16 }
 0x7ac   :  { %4959 = vmatpush3.bf16.msra.mxu0 %v5764_v12  ;;  %4176 = vmatprep.mubr.msk.f32.mxu0 %vm5643_vm0, %v5644_v1 }
 0x7ad   :  { %4960 = vmatprep.subr.bf16.mxu0 %v5642_v0 }
 0x87e   :  { %v1156_v62 = vpop.f32.mrb[6].mxu0 }
 0x87f   :  { %v1157_v18 = vadd.f32 %v5890_v58, %v1156_v62  ;;  %v4136_v19 = vpop.f32.mrb[7].mxu0  ;;  %v1286_v58 = vld [vmem:[#allocation2 + $0x18] sm:$0xff]  ;;  %v1469_v62 = vld [vmem:[#allocation8 + $0x88] sm:$0xff] }
 0x880   :  { %4177 = vmatmul.mubr.msk.f32.vlgmr.msra.gmra.mrb[8].mxu0 %vm88_vm1, %v1286_v58  ;;  %v1480_v58 = vld [vmem:[#allocation8 + $0xe0] sm:$0xff] }
 0x881   :  { %v3332_v59 = vmul.f32 -1.442695, %v1157_v18  ;;  %4211 = vmatprep.mubr.msk.f32.mxu0 %vm5643_vm0, %v5644_v1  ;;  %4962 = vmatpush3.bf16.msra.mxu0 %v6034_v55  ;;  %v1470_v18 = vld [vmem:[#allocation8 + $0x90] sm:$0xff]  ;;  %v6100_v53 = vpack.c.bf16 %v1481_v50, %v1480_v58  ;;  %v1590_v58 = vld [vmem:[#allocation8 + $0x178] sm:$0xff] }
 0x882   :  { %4963 = vmatprep.subr.bf16.mxu0 %v5642_v0 }
 0x883   :  { %5415 = vpow2.f32 %v3332_v59  ;;  %v1471_v59 = vld [vmem:[#allocation8 + $0x98] sm:$0xff] }
 0x885   :  { %4965 = vmatpush3.bf16.msra.mxu0 %v6039_v63 }
 0x886   :  { %4966 = vmatprep.subr.bf16.mxu0 %v5642_v0 }
 0x889   :  { %4968 = vmatpush3.bf16.msra.mxu0 %v6043_v7 }
 0x88a   :  { %4969 = vmatprep.subr.bf16.mxu0 %v5642_v0 }
 0x88d   :  { %v5416_v21 = vpop.eup %5415  ;;  %4971 = vmatpush3.bf16.msra.mxu0 %v6047_v20 }
 0x88e   :  { %v1163_v24 = vadd.f32 1.0, %v5416_v21  ;;  %4972 = vmatprep.subr.bf16.mxu0 %v5642_v0  ;;  %v6080_v21 = vpack.c.bf16 %v1471_v59, %v1470_v18  ;;  %v1583_v18 = vld [vmem:[#allocation8 + $0x140] sm:$0xff]  ;;  %v1584_v59 = vld [vmem:[#allocation8 + $0x148] sm:$0xff] }
 0x890   :  { %5417 = vrcp.f32 %v1163_v24  ;;  %v1472_v24 = vld [vmem:[#allocation8 + $0xa0] sm:$0xff] }
 0x891   :  { %4974 = vmatpush3.bf16.msra.mxu0 %v6051_v39 }
 0x892   :  { %4975 = vmatprep.subr.bf16.mxu0 %v5642_v0 }
 0x895   :  { %4977 = vmatpush3.bf16.msra.mxu0 %v6055_v26 }
 0x896   :  { %4978 = vmatprep.subr.bf16.mxu0 %v5642_v0 }
 0x899   :  { %4980 = vmatpush3.bf16.msra.mxu0 %v6059_v29 }
 0x89a   :  { %v5418_v25 = vpop.eup %5417  ;;  %4981 = vmatprep.subr.bf16.mxu0 %v5642_v0 }
 0x89b   :  { %v1166_v28 = vmul.f32 2.0, %v5418_v25  ;;  %v3334_v32 = vadd.f32 -1.0, %v5418_v25 }
 0x89d   :  { %v1169_v30 = vmul.f32 %v3334_v32, %v1166_v28  ;;  %v3333_v37 = vadd.f32 -1.0, %v1166_v28  ;;  %4983 = vmatpush3.bf16.msra.mxu0 %v6063_v3  ;;  %v1474_v32 = vld [vmem:[#allocation8 + $0xb0] sm:$0xff] }
 0x89e   :  { %5008 = vmatprep.subr.bf16.mxu0 %v5642_v0 }
 0x89f   :  { %v1170_v35 = vadd.f32 1.0, %v1169_v30  ;;  %v1475_v30 = vld [vmem:[#allocation8 + $0xb8] sm:$0xff] }
 0x8a1   :  { %5419 = vrcp.f32 %v1170_v35  ;;  %v6088_v35 = vpack.c.bf16 %v1475_v30, %v1474_v32  ;;  %v1586_v32 = vld [vmem:[#allocation8 + $0x158] sm:$0xff] }
 0x8ab   :  { %v5420_v40 = vpop.eup %5419 }
 0x8ac   :  { %v1172_v41 = vmul.f32 %v5420_v40, %v3333_v37  ;;  %v1476_v37 = vld [vmem:[#allocation8 + $0xc0] sm:$0xff]  ;;  %v1477_v40 = vld [vmem:[#allocation8 + $0xc8] sm:$0xff] }
 0x8ae   :  { %v1173_v44 = vsub.f32 %v1172_v41, %v1068_v16  ;;  %v6092_v41 = vpack.c.bf16 %v1477_v40, %v1476_v37  ;;  %v1587_v37 = vld [vmem:[#allocation8 + $0x160] sm:$0xff]  ;;  %v1588_v40 = vld [vmem:[#allocation8 + $0x168] sm:$0xff] }
 0x8b0   :  { %v1174_v46 = vmul.f32 %v5418_v25, %v1173_v44  ;;  %v1473_v25 = vld [vmem:[#allocation8 + $0xa8] sm:$0xff]  ;;  %v1478_v44 = vld [vmem:[#allocation8 + $0xd0] sm:$0xff] }
 0x8b1   :  { %v6084_v28 = vpack.c.bf16 %v1473_v25, %v1472_v24  ;;  %v6140_v24 = vpack.c.bf16 %v1584_v59, %v1583_v18  ;;  %v1585_v25 = vld [vmem:[#allocation8 + $0x150] sm:$0xff] }
 0x8b2   :  { %v6028_v49 = vadd.f32 %v1174_v46, %v1068_v16  ;;  %v1468_v16 = vld [vmem:[#allocation8 + $0x80] sm:$0xff]  ;;  %v1479_v46 = vld [vmem:[#allocation8 + $0xd8] sm:$0xff]  ;;  %v6144_v30 = vpack.c.bf16 %v1586_v32, %v1585_v25 }
 0x8b3   :  { %v6077_v19 = vpack.c.bf16 %v1469_v62, %v1468_v16  ;;  %v1582_v16 = vld [vmem:[#allocation8 + $0x138] sm:$0xff] }
 0x8b4   :  { %4170 = vmatmul.mubr.f32.vlgmr.msra.gmra.mrb[10].mxu1 %v6028_v49 }
 0x8b5   :  { %4246 = vmatprep.mubr.msk.f32.mxu1 %vm5643_vm0, %v5644_v1  ;;  %4986 = vmatpush3.bf16.msra.mxu1 %v6077_v19 }
 0x8b6   :  { %4987 = vmatprep.subr.bf16.mxu1 %v5642_v0 }
 0x8b9   :  { %4989 = vmatpush3.bf16.msra.mxu1 %v6080_v21 }
 0x8ba   :  { %4990 = vmatprep.subr.bf16.mxu1 %v5642_v0 }
 0x8bd   :  { %4992 = vmatpush3.bf16.msra.mxu1 %v6084_v28 }
 0x8be   :  { %4993 = vmatprep.subr.bf16.mxu1 %v5642_v0 }
 0x8c1   :  { %4995 = vmatpush3.bf16.msra.mxu1 %v6088_v35 }
 0x8c2   :  { %4996 = vmatprep.subr.bf16.mxu1 %v5642_v0 }
 0x8c5   :  { %4998 = vmatpush3.bf16.msra.mxu1 %v6092_v41 }
 0x8c6   :  { %4999 = vmatprep.subr.bf16.mxu1 %v5642_v0 }
 0x987   :  { %v1263_v27 = vpop.f32.mrb[10].mxu1 }
 0x988   :  { %v1264_v31 = vadd.f32 %v5935_v22, %v1263_v27  ;;  %v4171_v33 = vpop.f32.mrb[11].mxu1 }
 0x98a   :  { %v3336_v38 = vmul.f32 -1.442695, %v1264_v31 }
 0x98c   :  { %5421 = vpow2.f32 %v3336_v38 }
 0x996   :  { %v5422_v43 = vpop.eup %5421 }
 0x997   :  { %v1270_v4 = vadd.f32 1.0, %v5422_v43 }
 0x999   :  { %5423 = vrcp.f32 %v1270_v4 }
 0x9a3   :  { %v5424_v47 = vpop.eup %5423 }
 0x9a4   :  { %v1273_v6 = vmul.f32 2.0, %v5424_v47  ;;  %v3338_v8 = vadd.f32 -1.0, %v5424_v47 }
 0x9a6   :  { %v1276_v9 = vmul.f32 %v3338_v8, %v1273_v6  ;;  %v3337_v10 = vadd.f32 -1.0, %v1273_v6  ;;  %v1575_v6 = vld [vmem:[#allocation8 + $0x100] sm:$0xff]  ;;  %v1576_v8 = vld [vmem:[#allocation8 + $0x108] sm:$0xff] }
 0x9a8   :  { %v1277_v52 = vadd.f32 1.0, %v1276_v9  ;;  %v1577_v9 = vld [vmem:[#allocation8 + $0x110] sm:$0xff] }
 0x9aa   :  { %5425 = vrcp.f32 %v1277_v52  ;;  %v6125_v52 = vpack.c.bf16 %v1576_v8, %v1575_v6 }
 0x9b4   :  { %v5426_v11 = vpop.eup %5425 }
 0x9b5   :  { %v1279_v56 = vmul.f32 %v5426_v11, %v3337_v10  ;;  %v1578_v10 = vld [vmem:[#allocation8 + $0x118] sm:$0xff] }
 0x9b6   :  { %v6128_v11 = vpack.c.bf16 %v1578_v10, %v1577_v9 }
 0x9b7   :  { %v1280_v14 = vsub.f32 %v1279_v56, %v6028_v49  ;;  %v1579_v56 = vld [vmem:[#allocation8 + $0x120] sm:$0xff] }
 0x9b9   :  { %v1281_v15 = vmul.f32 %v5424_v47, %v1280_v14  ;;  %v1580_v14 = vld [vmem:[#allocation8 + $0x128] sm:$0xff] }
 0x9bb   :  { %v6071_v22 = vadd.f32 %v1281_v15, %v6028_v49  ;;  %v6096_v49 = vpack.c.bf16 %v1479_v46, %v1478_v44  ;;  %v6132_v15 = vpack.c.bf16 %v1580_v14, %v1579_v56  ;;  %v6148_v44 = vpack.c.bf16 %v1588_v40, %v1587_v37  ;;  %v1589_v46 = vld [vmem:[#allocation8 + $0x170] sm:$0xff] }
 0x9bc   :  { %v6152_v50 = vpack.c.bf16 %v1590_v58, %v1589_v46 }
 0x9bd   :  { %1284 = vst [vmem:[#allocation10 + $0x10] sm:$0xff] %v6071_v22  ;;  %4212 = vmatmul.mubr.f32.vlgmr.msra.gmra.mrb[8].mxu0 %v6071_v22  ;;  %5001 = vmatpush3.bf16.msra.mxu1 %v6096_v49 }
 0x9be   :  { %4281 = vmatprep.mubr.msk.f32.mxu0 %vm5643_vm0, %v5644_v1  ;;  %5002 = vmatprep.subr.bf16.mxu1 %v5642_v0 }
 0x9bf   :  { %5010 = vmatpush3.bf16.msra.mxu0 %v6125_v52 }
 0x9c0   :  { %5011 = vmatprep.subr.bf16.mxu0 %v5642_v0 }
 0x9c1   :  { %5004 = vmatpush3.bf16.msra.mxu1 %v6100_v53 }
 0x9c2   :  { %5005 = vmatprep.subr.bf16.mxu1 %v5642_v0 }
 0x9c3   :  { %5013 = vmatpush3.bf16.msra.mxu0 %v6128_v11 }
 0x9c4   :  { %5014 = vmatprep.subr.bf16.mxu0 %v5642_v0 }
 0x9c5   :  { %5007 = vmatpush3.bf16.msra.mxu1 %v6104_v34 }
 0x9c6   :  { %5032 = vmatprep.subr.bf16.mxu1 %v5642_v0 }
 0x9c7   :  { %5016 = vmatpush3.bf16.msra.mxu0 %v6132_v15 }
 0x9c8   :  { %5017 = vmatprep.subr.bf16.mxu0 %v5642_v0 }
 0xa90   :  { %v1447_v17 = vpop.f32.mrb[8].mxu0 }
 0xa91   :  { %v5340_v36 = vadd.f32 %v6113_v13, %v1447_v17  ;;  %v4213_v23 = vpop.f32.mrb[9].mxu0 }
 0xa93   :  { %v3341_v42 = vmul.f32 -1.442695, %v5340_v36 }
 0xa95   :  { %5427 = vpow2.f32 %v3341_v42 }
 0xa9f   :  { %v5428_v45 = vpop.eup %5427 }
 0xaa0   :  { %v1455_v48 = vadd.f32 1.0, %v5428_v45 }
 0xaa2   :  { %5429 = vrcp.f32 %v1455_v48 }
 0xaac   :  { %v5430_v51 = vpop.eup %5429 }
 0xaad   :  { %v1458_v54 = vmul.f32 2.0, %v5430_v51  ;;  %v3343_v2 = vadd.f32 -1.0, %v5430_v51 }
 0xaaf   :  { %v1461_v27 = vmul.f32 %v3343_v2, %v1458_v54  ;;  %v3342_v33 = vadd.f32 -1.0, %v1458_v54 }
 0xab1   :  { %v1462_v31 = vadd.f32 1.0, %v1461_v27 }
 0xab3   :  { %5431 = vrcp.f32 %v1462_v31 }
 0xabd   :  { %v5432_v38 = vpop.eup %5431 }
 0xabe   :  { %v1464_v43 = vmul.f32 %v5432_v38, %v3342_v33 }
 0xac0   :  { %v1465_v57 = vsub.f32 %v1464_v43, %v6071_v22 }
 0xac2   :  { %v1466_v4 = vmul.f32 %v5430_v51, %v1465_v57 }
 0xac4   :  { %v6118_v47 = vadd.f32 %v1466_v4, %v6071_v22  ;;  %v1581_v22 = vld [vmem:[#allocation8 + $0x130] sm:$0xff]  ;;  %v1685_v4 = vld [vmem:[#allocation2 + $0x20] sm:$0xff] }
 0xac5   :  { %v6136_v62 = vpack.c.bf16 %v1582_v16, %v1581_v22 }
 0xac6   :  { %4247 = vmatmul.mubr.f32.vlgmr.msra.gmra.mrb[12].mxu1 %v6118_v47 }
 0xac7   :  { %5034 = vmatpush3.bf16.msra.mxu1 %v5764_v12  ;;  %4288 = vmatprep.mubr.msk.f32.mxu1 %vm5643_vm0, %v5644_v1 }
 0xac8   :  { %5035 = vmatprep.subr.bf16.mxu1 %v5642_v0  ;;  %5019 = vmatpush3.bf16.msra.mxu0 %v6136_v62 }
 0xac9   :  { %5020 = vmatprep.subr.bf16.mxu0 %v5642_v0 }
 0xaca   :  { %4289 = vmatmul.mubr.msk.f32.vlgmr.msra.gmra.mrb[14].mxu1 %vm88_vm1, %v1685_v4 }
 0xacb   :  { %5037 = vmatpush3.bf16.msra.mxu1 %v6034_v55  ;;  %4323 = vmatprep.mubr.msk.f32.mxu1 %vm5643_vm0, %v5644_v1 }
 0xacc   :  { %5022 = vmatpush3.bf16.msra.mxu0 %v6140_v24  ;;  %5038 = vmatprep.subr.bf16.mxu1 %v5642_v0 }
 0xacd   :  { %5023 = vmatprep.subr.bf16.mxu0 %v5642_v0 }
 0xacf   :  { %5040 = vmatpush3.bf16.msra.mxu1 %v6039_v63 }
 0xad0   :  { %5025 = vmatpush3.bf16.msra.mxu0 %v6144_v30  ;;  %5041 = vmatprep.subr.bf16.mxu1 %v5642_v0 }
 0xad1   :  { %5026 = vmatprep.subr.bf16.mxu0 %v5642_v0 }
 0xad3   :  { %5043 = vmatpush3.bf16.msra.mxu1 %v6043_v7 }
 0xad4   :  { %5028 = vmatpush3.bf16.msra.mxu0 %v6148_v44  ;;  %5044 = vmatprep.subr.bf16.mxu1 %v5642_v0 }
 0xad5   :  { %5029 = vmatprep.subr.bf16.mxu0 %v5642_v0 }
 0xad7   :  { %5046 = vmatpush3.bf16.msra.mxu1 %v6047_v20 }
 0xad8   :  { %5031 = vmatpush3.bf16.msra.mxu0 %v6152_v50  ;;  %5047 = vmatprep.subr.bf16.mxu1 %v5642_v0 }
 0xad9   :  { %5059 = vmatprep.subr.bf16.mxu0 %v5642_v0 }
 0xadb   :  { %5049 = vmatpush3.bf16.msra.mxu1 %v6051_v39 }
 0xadc   :  { %5050 = vmatprep.subr.bf16.mxu1 %v5642_v0 }
 0xadf   :  { %5052 = vmatpush3.bf16.msra.mxu1 %v6055_v26 }
 0xae0   :  { %5053 = vmatprep.subr.bf16.mxu1 %v5642_v0 }
 0xae3   :  { %5055 = vmatpush3.bf16.msra.mxu1 %v6059_v29 }
 0xae4   :  { %5056 = vmatprep.subr.bf16.mxu1 %v5642_v0 }
 0xae7   :  { %5058 = vmatpush3.bf16.msra.mxu1 %v6063_v3 }
 0xae8   :  { %5083 = vmatprep.subr.bf16.mxu1 %v5642_v0 }
 0xb99   :  { %v1555_v61 = vpop.f32.mrb[12].mxu1 }
 0xb9a   :  { %v1556_v5 = vadd.f32 %v6160_v60, %v1555_v61  ;;  %v4248_v17 = vpop.f32.mrb[13].mxu1 }
 0xb9c   :  { %v3345_v36 = vmul.f32 -1.442695, %v1556_v5 }
 0xb9e   :  { %5433 = vpow2.f32 %v3345_v36 }
 0xba8   :  { %v5434_v23 = vpop.eup %5433 }
 0xba9   :  { %v1562_v42 = vadd.f32 1.0, %v5434_v23 }
 0xbab   :  { %5435 = vrcp.f32 %v1562_v42 }
 0xbb5   :  { %v5436_v45 = vpop.eup %5435 }
 0xbb6   :  { %v1565_v48 = vmul.f32 2.0, %v5436_v45  ;;  %v3347_v51 = vadd.f32 -1.0, %v5436_v45 }
 0xbb8   :  { %v1568_v54 = vmul.f32 %v3347_v51, %v1565_v48  ;;  %v3346_v27 = vadd.f32 -1.0, %v1565_v48 }
 0xbba   :  { %v1569_v2 = vadd.f32 1.0, %v1568_v54 }
 0xbbc   :  { %5437 = vrcp.f32 %v1569_v2 }
 0xbc6   :  { %v5438_v31 = vpop.eup %5437 }
 0xbc7   :  { %v1571_v33 = vmul.f32 %v5438_v31, %v3346_v27 }
 0xbc9   :  { %v1572_v38 = vsub.f32 %v1571_v33, %v6118_v47 }
 0xbcb   :  { %v1573_v43 = vmul.f32 %v5436_v45, %v1572_v38 }
 0xbcd   :  { %v1574_v57 = vadd.f32 %v1573_v43, %v6118_v47  ;;  %v6205_v47 = vld [vmem:[%s6515_s5 + $0x2] ss:$0 sm:$0xff] }
 0xbcf   :  { %4282 = vmatmul.mubr.f32.vlgmr.msra.gmra.mrb[10].mxu0 %v1574_v57 }
 0xbd0   :  { %5061 = vmatpush3.bf16.msra.mxu0 %v6077_v19  ;;  %4358 = vmatprep.mubr.msk.f32.mxu0 %vm5643_vm0, %v5644_v1 }
 0xbd1   :  { %5062 = vmatprep.subr.bf16.mxu0 %v5642_v0 }
 0xbd4   :  { %5064 = vmatpush3.bf16.msra.mxu0 %v6080_v21 }
 0xbd5   :  { %5065 = vmatprep.subr.bf16.mxu0 %v5642_v0 }
 0xbd8   :  { %5067 = vmatpush3.bf16.msra.mxu0 %v6084_v28 }
 0xbd9   :  { %5068 = vmatprep.subr.bf16.mxu0 %v5642_v0 }
 0xbdc   :  { %5070 = vmatpush3.bf16.msra.mxu0 %v6088_v35 }
 0xbdd   :  { %5071 = vmatprep.subr.bf16.mxu0 %v5642_v0 }
 0xbe0   :  { %5073 = vmatpush3.bf16.msra.mxu0 %v6092_v41 }
 0xbe1   :  { %5074 = vmatprep.subr.bf16.mxu0 %v5642_v0 }
 0xbe4   :  { %5076 = vmatpush3.bf16.msra.mxu0 %v6096_v49 }
 0xbe5   :  { %5077 = vmatprep.subr.bf16.mxu0 %v5642_v0 }
 0xbe8   :  { %5079 = vmatpush3.bf16.msra.mxu0 %v6100_v53 }
 0xbe9   :  { %5080 = vmatprep.subr.bf16.mxu0 %v5642_v0 }
 0xbec   :  { %5082 = vmatpush3.bf16.msra.mxu0 %v6104_v34 }
 0xbed   :  { %5107 = vmatprep.subr.bf16.mxu0 %v5642_v0 }
 0xca2   :  { %v1662_v6 = vpop.f32.mrb[10].mxu0 }
 0xca3   :  { %v1663_v8 = vadd.f32 %v6205_v47, %v1662_v6  ;;  %v4283_v9 = vpop.f32.mrb[11].mxu0 }
 0xca5   :  { %v3349_v10 = vmul.f32 -1.442695, %v1663_v8 }
 0xca7   :  { %5439 = vpow2.f32 %v3349_v10 }
 0xcb1   :  { %v5440_v56 = vpop.eup %5439 }
 0xcb2   :  { %v1669_v14 = vadd.f32 1.0, %v5440_v56 }
 0xcb4   :  { %5441 = vrcp.f32 %v1669_v14 }
 0xcbe   :  { %v5442_v22 = vpop.eup %5441 }
 0xcbf   :  { %v1672_v16 = vmul.f32 2.0, %v5442_v22  ;;  %v3351_v18 = vadd.f32 -1.0, %v5442_v22 }
 0xcc1   :  { %v1675_v59 = vmul.f32 %v3351_v18, %v1672_v16  ;;  %v3350_v32 = vadd.f32 -1.0, %v1672_v16 }
 0xcc3   :  { %v1676_v25 = vadd.f32 1.0, %v1675_v59 }
 0xcc5   :  { %5443 = vrcp.f32 %v1676_v25 }
 0xccf   :  { %v5444_v37 = vpop.eup %5443 }
 0xcd0   :  { %v1678_v40 = vmul.f32 %v5444_v37, %v3350_v32 }
 0xcd2   :  { %v1679_v46 = vsub.f32 %v1678_v40, %v1574_v57 }
 0xcd4   :  { %v1680_v58 = vmul.f32 %v5442_v22, %v1679_v46 }
 0xcd6   :  { %v1681_v61 = vadd.f32 %v1680_v58, %v1574_v57 }
 0xcd8   :  { %1683 = vst [vmem:[#allocation10 + $0x18] sm:$0xff] %v1681_v61  ;;  %4324 = vmatmul.mubr.f32.vlgmr.msra.gmra.mrb[14].mxu1 %v1681_v61 }
 0xcd9   :  { %5085 = vmatpush3.bf16.msra.mxu1 %v6125_v52  ;;  %4393 = vmatprep.mubr.msk.f32.mxu1 %vm5643_vm0, %v5644_v1 }
 0xcda   :  { %5086 = vmatprep.subr.bf16.mxu1 %v5642_v0 }
 0xcdd   :  { %5088 = vmatpush3.bf16.msra.mxu1 %v6128_v11 }
 0xcde   :  { %5089 = vmatprep.subr.bf16.mxu1 %v5642_v0 }
 0xce1   :  { %5091 = vmatpush3.bf16.msra.mxu1 %v6132_v15 }
 0xce2   :  { %5092 = vmatprep.subr.bf16.mxu1 %v5642_v0 }
 0xce5   :  { %5094 = vmatpush3.bf16.msra.mxu1 %v6136_v62 }
 0xce6   :  { %5095 = vmatprep.subr.bf16.mxu1 %v5642_v0 }
 0xce9   :  { %5097 = vmatpush3.bf16.msra.mxu1 %v6140_v24 }
 0xcea   :  { %5098 = vmatprep.subr.bf16.mxu1 %v5642_v0 }
 0xced   :  { %5100 = vmatpush3.bf16.msra.mxu1 %v6144_v30 }
 0xcee   :  { %5101 = vmatprep.subr.bf16.mxu1 %v5642_v0 }
 0xcf1   :  { %5103 = vmatpush3.bf16.msra.mxu1 %v6148_v44 }
 0xcf2   :  { %5104 = vmatprep.subr.bf16.mxu1 %v5642_v0 }
 0xcf5   :  { %5106 = vmatpush3.bf16.msra.mxu1 %v6152_v50 }
 0xcf6   :  { %5134 = vmatprep.subr.bf16.mxu1 %v5642_v0 }
 0xdab   :  { %v1846_v5 = vpop.f32.mrb[14].mxu1 }
 0xdac   :  { %v5342_v17 = vadd.f32 %v6113_v13, %v1846_v5  ;;  %v4325_v36 = vpop.f32.mrb[15].mxu1 }
 0xdae   :  { %v3354_v23 = vmul.f32 -1.442695, %v5342_v17 }
 0xdb0   :  { %5445 = vpow2.f32 %v3354_v23 }
 0xdba   :  { %v5446_v42 = vpop.eup %5445 }
 0xdbb   :  { %v1854_v45 = vadd.f32 1.0, %v5446_v42 }
 0xdbd   :  { %5447 = vrcp.f32 %v1854_v45 }
 0xdc7   :  { %v5448_v48 = vpop.eup %5447 }
 0xdc8   :  { %v1857_v51 = vmul.f32 2.0, %v5448_v48  ;;  %v3356_v54 = vadd.f32 -1.0, %v5448_v48 }
 0xdca   :  { %v1860_v2 = vmul.f32 %v3356_v54, %v1857_v51  ;;  %v3355_v31 = vadd.f32 -1.0, %v1857_v51 }
 0xdcc   :  { %v1861_v27 = vadd.f32 1.0, %v1860_v2 }
 0xdce   :  { %5449 = vrcp.f32 %v1861_v27 }
 0xdd8   :  { %v5450_v33 = vpop.eup %5449 }
 0xdd9   :  { %v1863_v38 = vmul.f32 %v5450_v33, %v3355_v31 }
 0xddb   :  { %v1864_v43 = vsub.f32 %v1863_v38, %v1681_v61 }
 0xddd   :  { %v1865_v57 = vmul.f32 %v5448_v48, %v1864_v43 }
 0xddf   :  { %v1866_v4 = vadd.f32 %v1865_v57, %v1681_v61 }
 0xde1   :  { %4359 = vmatmul.mubr.f32.vlgmr.msra.gmra.mrb[12].mxu0 %v1866_v4 }
 0xde2   :  { %5109 = vmatpush3.bf16.msra.mxu0 %v5764_v12  ;;  %4400 = vmatprep.mubr.msk.f32.mxu0 %vm5643_vm0, %v5644_v1 }
 0xde3   :  { %5110 = vmatprep.subr.bf16.mxu0 %v5642_v0 }
 0xeb4   :  { %v1954_v6 = vpop.f32.mrb[12].mxu0 }
 0xeb5   :  { %v1955_v8 = vadd.f32 %v6160_v60, %v1954_v6  ;;  %v4360_v9 = vpop.f32.mrb[13].mxu0 }
 0xeb7   :  { %v3358_v10 = vmul.f32 -1.442695, %v1955_v8 }
 0xeb9   :  { %5451 = vpow2.f32 %v3358_v10 }
 0xec3   :  { %v5452_v56 = vpop.eup %5451 }
 0xec4   :  { %v1961_v14 = vadd.f32 1.0, %v5452_v56 }
 0xec6   :  { %5453 = vrcp.f32 %v1961_v14 }
 0xed0   :  { %v5454_v22 = vpop.eup %5453 }
 0xed1   :  { %v1964_v16 = vmul.f32 2.0, %v5454_v22  ;;  %v3360_v18 = vadd.f32 -1.0, %v5454_v22 }
 0xed3   :  { %v1967_v59 = vmul.f32 %v3360_v18, %v1964_v16  ;;  %v3359_v32 = vadd.f32 -1.0, %v1964_v16 }
 0xed5   :  { %v1968_v25 = vadd.f32 1.0, %v1967_v59 }
 0xed7   :  { %5455 = vrcp.f32 %v1968_v25  ;;  %v2557_v25 = vld [vmem:[#allocation8] sm:$0xff] }
 0xee1   :  { %v5456_v37 = vpop.eup %5455 }
 0xee2   :  { %v1970_v40 = vmul.f32 %v5456_v37, %v3359_v32  ;;  %v2558_v32 = vld [vmem:[#allocation8 + $0x8] sm:$0xff] }
 0xee3   :  { %v6300_v37 = vpack.c.bf16 %v2558_v32, %v2557_v25  ;;  %v2679_v32 = vld [vmem:[#allocation8 + $0xf0] sm:$0xff] }
 0xee4   :  { %v1971_v46 = vsub.f32 %v1970_v40, %v1866_v4  ;;  %v2559_v40 = vld [vmem:[#allocation8 + $0x10] sm:$0xff] }
 0xee6   :  { %v1972_v58 = vmul.f32 %v5454_v22, %v1971_v46  ;;  %v2560_v46 = vld [vmem:[#allocation8 + $0x18] sm:$0xff] }
 0xee8   :  { %v1973_v61 = vadd.f32 %v1972_v58, %v1866_v4  ;;  %v6305_v58 = vpack.c.bf16 %v2560_v46, %v2559_v40  ;;  %v2680_v40 = vld [vmem:[#allocation8 + $0xf8] sm:$0xff] }
 0xee9   :  { %v6370_v46 = vpack.c.bf16 %v2680_v40, %v2679_v32  ;;  %v6428_v32 = vld [vmem:[%s6515_s5 + $0x1] ss:$0 sm:$0xff] }
 0xeea   :  { %4394 = vmatmul.mubr.f32.vlgmr.msra.gmra.mrb[16].mxu1 %v1973_v61 }
 0xeeb   :  { %5136 = vmatpush3.bf16.msra.mxu1 %v6077_v19  ;;  %4470 = vmatprep.mubr.msk.f32.mxu1 %vm5643_vm0, %v5644_v1  ;;  %v2084_v19 = vld [vmem:[#allocation2 + $0x28] sm:$0xff] }
 0xeec   :  { %5137 = vmatprep.subr.bf16.mxu1 %v5642_v0  ;;  %4401 = vmatmul.mubr.msk.f32.vlgmr.msra.gmra.mrb[14].mxu0 %vm88_vm1, %v2084_v19  ;;  %v2562_v19 = vld [vmem:[#allocation8 + $0x28] sm:$0xff] }
 0xeed   :  { %5112 = vmatpush3.bf16.msra.mxu0 %v6034_v55  ;;  %4435 = vmatprep.mubr.msk.f32.mxu0 %vm5643_vm0, %v5644_v1 }
 0xeee   :  { %5113 = vmatprep.subr.bf16.mxu0 %v5642_v0 }
 0xeef   :  { %5139 = vmatpush3.bf16.msra.mxu1 %v6080_v21 }
 0xef0   :  { %5140 = vmatprep.subr.bf16.mxu1 %v5642_v0 }
 0xef1   :  { %5115 = vmatpush3.bf16.msra.mxu0 %v6039_v63 }
 0xef2   :  { %5116 = vmatprep.subr.bf16.mxu0 %v5642_v0 }
 0xef3   :  { %5142 = vmatpush3.bf16.msra.mxu1 %v6084_v28 }
 0xef4   :  { %5143 = vmatprep.subr.bf16.mxu1 %v5642_v0 }
 0xef5   :  { %5118 = vmatpush3.bf16.msra.mxu0 %v6043_v7 }
 0xef6   :  { %5119 = vmatprep.subr.bf16.mxu0 %v5642_v0 }
 0xef7   :  { %5145 = vmatpush3.bf16.msra.mxu1 %v6088_v35 }
 0xef8   :  { %5146 = vmatprep.subr.bf16.mxu1 %v5642_v0 }
 0xef9   :  { %5121 = vmatpush3.bf16.msra.mxu0 %v6047_v20 }
 0xefa   :  { %5122 = vmatprep.subr.bf16.mxu0 %v5642_v0 }
 0xefb   :  { %5148 = vmatpush3.bf16.msra.mxu1 %v6092_v41 }
 0xefc   :  { %5149 = vmatprep.subr.bf16.mxu1 %v5642_v0 }
 0xefd   :  { %5124 = vmatpush3.bf16.msra.mxu0 %v6051_v39 }
 0xefe   :  { %5125 = vmatprep.subr.bf16.mxu0 %v5642_v0 }
 0xeff   :  { %5151 = vmatpush3.bf16.msra.mxu1 %v6096_v49 }
 0xf00   :  { %5152 = vmatprep.subr.bf16.mxu1 %v5642_v0 }
 0xf01   :  { %5127 = vmatpush3.bf16.msra.mxu0 %v6055_v26 }
 0xf02   :  { %5128 = vmatprep.subr.bf16.mxu0 %v5642_v0 }
 0xf03   :  { %5154 = vmatpush3.bf16.msra.mxu1 %v6100_v53 }
 0xf04   :  { %5155 = vmatprep.subr.bf16.mxu1 %v5642_v0 }
 0xf05   :  { %5130 = vmatpush3.bf16.msra.mxu0 %v6059_v29 }
 0xf06   :  { %5131 = vmatprep.subr.bf16.mxu0 %v5642_v0 }
 0xf07   :  { %5157 = vmatpush3.bf16.msra.mxu1 %v6104_v34 }
 0xf08   :  { %5182 = vmatprep.subr.bf16.mxu1 %v5642_v0 }
 0xf09   :  { %5133 = vmatpush3.bf16.msra.mxu0 %v6063_v3 }
 0xf0a   :  { %5158 = vmatprep.subr.bf16.mxu0 %v5642_v0 }
 0xfbd   :  { %v2061_v55 = vpop.f32.mrb[16].mxu1 }
 0xfbe   :  { %v2062_v63 = vadd.f32 %v6205_v47, %v2061_v55  ;;  %v4395_v7 = vpop.f32.mrb[17].mxu1 }
 0xfbf   :  { %v2564_v7 = vld [vmem:[#allocation8 + $0x38] sm:$0xff] }
 0xfc0   :  { %v3362_v20 = vmul.f32 -1.442695, %v2062_v63  ;;  %v2563_v63 = vld [vmem:[#allocation8 + $0x30] sm:$0xff] }
 0xfc2   :  { %5457 = vpow2.f32 %v3362_v20  ;;  %v6313_v20 = vpack.c.bf16 %v2564_v7, %v2563_v63 }
 0xfcc   :  { %v5458_v39 = vpop.eup %5457 }
 0xfcd   :  { %v2068_v21 = vadd.f32 1.0, %v5458_v39  ;;  %v2565_v39 = vld [vmem:[#allocation8 + $0x40] sm:$0xff] }
 0xfcf   :  { %5459 = vrcp.f32 %v2068_v21  ;;  %v2566_v21 = vld [vmem:[#allocation8 + $0x48] sm:$0xff] }
 0xfd9   :  { %v5460_v26 = vpop.eup %5459 }
 0xfda   :  { %v2071_v28 = vmul.f32 2.0, %v5460_v26  ;;  %v3364_v35 = vadd.f32 -1.0, %v5460_v26 }
 0xfdc   :  { %v2074_v41 = vmul.f32 %v3364_v35, %v2071_v28  ;;  %v3363_v49 = vadd.f32 -1.0, %v2071_v28  ;;  %v2567_v28 = vld [vmem:[#allocation8 + $0x50] sm:$0xff]  ;;  %v2568_v35 = vld [vmem:[#allocation8 + $0x58] sm:$0xff] }
 0xfde   :  { %v2075_v29 = vadd.f32 1.0, %v2074_v41  ;;  %v6321_v41 = vpack.c.bf16 %v2568_v35, %v2567_v28 }
 0xfe0   :  { %5461 = vrcp.f32 %v2075_v29  ;;  %v2569_v29 = vld [vmem:[#allocation8 + $0x60] sm:$0xff] }
 0xfea   :  { %v5462_v53 = vpop.eup %5461 }
 0xfeb   :  { %v2077_v3 = vmul.f32 %v5462_v53, %v3363_v49  ;;  %v2570_v49 = vld [vmem:[#allocation8 + $0x68] sm:$0xff] }
 0xfec   :  { %v6325_v53 = vpack.c.bf16 %v2570_v49, %v2569_v29 }
 0xfed   :  { %v2078_v34 = vsub.f32 %v2077_v3, %v1973_v61  ;;  %v2571_v3 = vld [vmem:[#allocation8 + $0x70] sm:$0xff] }
 0xfef   :  { %v2079_v5 = vmul.f32 %v5460_v26, %v2078_v34  ;;  %v6317_v26 = vpack.c.bf16 %v2566_v21, %v2565_v39  ;;  %v2572_v34 = vld [vmem:[#allocation8 + $0x78] sm:$0xff] }
 0xff1   :  { %v2080_v17 = vadd.f32 %v2079_v5, %v1973_v61  ;;  %v2561_v61 = vld [vmem:[#allocation8 + $0x20] sm:$0xff]  ;;  %v6329_v5 = vpack.c.bf16 %v2572_v34, %v2571_v3 }
 0xff2   :  { %v6309_v55 = vpack.c.bf16 %v2562_v19, %v2561_v61  ;;  %v3379_v61 = vld [vmem:[%s6515_s5] ss:$0 sm:$0xff] }
 0xff3   :  { %2082 = vst [vmem:[#allocation10 + $0x20] sm:$0xff] %v2080_v17  ;;  %4436 = vmatmul.mubr.f32.vlgmr.msra.gmra.mrb[14].mxu0 %v2080_v17  ;;  %v5517_v19 = vld [vmem:[%s6513_s3] ss:$0 sm:$0xff] }
 0xff4   :  { %5160 = vmatpush3.bf16.msra.mxu0 %v6125_v52  ;;  %4505 = vmatprep.mubr.msk.f32.mxu0 %vm5643_vm0, %v5644_v1  ;;  %v6381_v63 = vadd.f32 %v5517_v19, %v3379_v61 }
 0xff5   :  { %5161 = vmatprep.subr.bf16.mxu0 %v5642_v0 }
 0xff8   :  { %5163 = vmatpush3.bf16.msra.mxu0 %v6128_v11 }
 0xff9   :  { %5164 = vmatprep.subr.bf16.mxu0 %v5642_v0 }
 0xffc   :  { %5166 = vmatpush3.bf16.msra.mxu0 %v6132_v15 }
 0xffd   :  { %5167 = vmatprep.subr.bf16.mxu0 %v5642_v0 }
0x1000   :  { %5169 = vmatpush3.bf16.msra.mxu0 %v6136_v62 }
0x1001   :  { %5170 = vmatprep.subr.bf16.mxu0 %v5642_v0 }
0x1004   :  { %5172 = vmatpush3.bf16.msra.mxu0 %v6140_v24 }
0x1005   :  { %5173 = vmatprep.subr.bf16.mxu0 %v5642_v0 }
0x1008   :  { %5175 = vmatpush3.bf16.msra.mxu0 %v6144_v30 }
0x1009   :  { %5176 = vmatprep.subr.bf16.mxu0 %v5642_v0 }
0x100c   :  { %5178 = vmatpush3.bf16.msra.mxu0 %v6148_v44 }
0x100d   :  { %5179 = vmatprep.subr.bf16.mxu0 %v5642_v0 }
0x1010   :  { %5181 = vmatpush3.bf16.msra.mxu0 %v6152_v50 }
0x1011   :  { %5209 = vmatprep.subr.bf16.mxu0 %v5642_v0 }
0x10c6   :  { %v2245_v52 = vpop.f32.mrb[14].mxu0 }
0x10c7   :  { %v5344_v11 = vadd.f32 %v6113_v13, %v2245_v52  ;;  %v4437_v15 = vpop.f32.mrb[15].mxu0 }
0x10c9   :  { %v3367_v62 = vmul.f32 -1.442695, %v5344_v11 }
0x10cb   :  { %5463 = vpow2.f32 %v3367_v62 }
0x10d5   :  { %v5464_v24 = vpop.eup %5463 }
0x10d6   :  { %v2253_v36 = vadd.f32 1.0, %v5464_v24 }
0x10d8   :  { %5465 = vrcp.f32 %v2253_v36 }
0x10e2   :  { %v5466_v30 = vpop.eup %5465 }
0x10e3   :  { %v2256_v23 = vmul.f32 2.0, %v5466_v30  ;;  %v3369_v42 = vadd.f32 -1.0, %v5466_v30 }
0x10e5   :  { %v2259_v45 = vmul.f32 %v3369_v42, %v2256_v23  ;;  %v3368_v48 = vadd.f32 -1.0, %v2256_v23 }
0x10e7   :  { %v2260_v44 = vadd.f32 1.0, %v2259_v45 }
0x10e9   :  { %5467 = vrcp.f32 %v2260_v44 }
0x10f3   :  { %v5468_v51 = vpop.eup %5467 }
0x10f4   :  { %v2262_v50 = vmul.f32 %v5468_v51, %v3368_v48 }
0x10f6   :  { %v2263_v54 = vsub.f32 %v2262_v50, %v2080_v17 }
0x10f8   :  { %v2264_v2 = vmul.f32 %v5466_v30, %v2263_v54 }
0x10fa   :  { %v2265_v27 = vadd.f32 %v2264_v2, %v2080_v17  ;;  %v2665_v2 = vld [vmem:[#allocation8 + $0x80] sm:$0xff] }
0x10fc   :  { %4471 = vmatmul.mubr.f32.vlgmr.msra.gmra.mrb[18].mxu1 %v2265_v27 }
0x10fd   :  { %5184 = vmatpush3.bf16.msra.mxu1 %v5764_v12  ;;  %4512 = vmatprep.mubr.msk.f32.mxu1 %vm5643_vm0, %v5644_v1 }
0x10fe   :  { %5185 = vmatprep.subr.bf16.mxu1 %v5642_v0 }
0x11cf   :  { %v2353_v13 = vpop.f32.mrb[18].mxu1 }
0x11d0   :  { %v2354_v31 = vadd.f32 %v6160_v60, %v2353_v13  ;;  %v4472_v33 = vpop.f32.mrb[19].mxu1  ;;  %v2483_v60 = vld [vmem:[#allocation2 + $0x30] sm:$0xff]  ;;  %v2667_v13 = vld [vmem:[#allocation8 + $0x90] sm:$0xff] }
0x11d1   :  { %4513 = vmatmul.mubr.msk.f32.vlgmr.msra.gmra.mrb[20].mxu1 %vm88_vm1, %v2483_v60  ;;  %v2668_v33 = vld [vmem:[#allocation8 + $0x98] sm:$0xff]  ;;  %v2678_v60 = vld [vmem:[#allocation8 + $0xe8] sm:$0xff] }
0x11d2   :  { %v3371_v38 = vmul.f32 -1.442695, %v2354_v31  ;;  %4547 = vmatprep.mubr.msk.f32.mxu1 %vm5643_vm0, %v5644_v1  ;;  %5187 = vmatpush3.bf16.msra.mxu1 %v6300_v37 }
0x11d3   :  { %5188 = vmatprep.subr.bf16.mxu1 %v5642_v0 }
0x11d4   :  { %5469 = vpow2.f32 %v3371_v38  ;;  %v6346_v38 = vpack.c.bf16 %v2668_v33, %v2667_v13  ;;  %v2780_v13 = vld [vmem:[#allocation8 + $0x140] sm:$0xff]  ;;  %v2781_v33 = vld [vmem:[#allocation8 + $0x148] sm:$0xff] }
0x11d6   :  { %5190 = vmatpush3.bf16.msra.mxu1 %v6305_v58 }
0x11d7   :  { %5191 = vmatprep.subr.bf16.mxu1 %v5642_v0 }
0x11da   :  { %5193 = vmatpush3.bf16.msra.mxu1 %v6309_v55 }
0x11db   :  { %5194 = vmatprep.subr.bf16.mxu1 %v5642_v0 }
0x11de   :  { %v5470_v43 = vpop.eup %5469  ;;  %5196 = vmatpush3.bf16.msra.mxu1 %v6313_v20 }
0x11df   :  { %v2360_v57 = vadd.f32 1.0, %v5470_v43  ;;  %5197 = vmatprep.subr.bf16.mxu1 %v5642_v0  ;;  %v2669_v43 = vld [vmem:[#allocation8 + $0xa0] sm:$0xff] }
0x11e1   :  { %5471 = vrcp.f32 %v2360_v57  ;;  %v2670_v57 = vld [vmem:[#allocation8 + $0xa8] sm:$0xff] }
0x11e2   :  { %5199 = vmatpush3.bf16.msra.mxu1 %v6317_v26 }
0x11e3   :  { %5200 = vmatprep.subr.bf16.mxu1 %v5642_v0 }
0x11e6   :  { %5202 = vmatpush3.bf16.msra.mxu1 %v6321_v41 }
0x11e7   :  { %5203 = vmatprep.subr.bf16.mxu1 %v5642_v0 }
0x11ea   :  { %5205 = vmatpush3.bf16.msra.mxu1 %v6325_v53 }
0x11eb   :  { %v5472_v4 = vpop.eup %5471  ;;  %5206 = vmatprep.subr.bf16.mxu1 %v5642_v0 }
0x11ec   :  { %v2363_v6 = vmul.f32 2.0, %v5472_v4  ;;  %v3373_v8 = vadd.f32 -1.0, %v5472_v4 }
0x11ee   :  { %v2366_v9 = vmul.f32 %v3373_v8, %v2363_v6  ;;  %v3372_v56 = vadd.f32 -1.0, %v2363_v6  ;;  %5208 = vmatpush3.bf16.msra.mxu1 %v6329_v5  ;;  %v2671_v6 = vld [vmem:[#allocation8 + $0xb0] sm:$0xff]  ;;  %v2672_v8 = vld [vmem:[#allocation8 + $0xb8] sm:$0xff] }
0x11ef   :  { %5233 = vmatprep.subr.bf16.mxu1 %v5642_v0 }
0x11f0   :  { %v2367_v10 = vadd.f32 1.0, %v2366_v9  ;;  %v6354_v9 = vpack.c.bf16 %v2672_v8, %v2671_v6  ;;  %v2783_v6 = vld [vmem:[#allocation8 + $0x158] sm:$0xff] }
0x11f2   :  { %5473 = vrcp.f32 %v2367_v10  ;;  %v2673_v10 = vld [vmem:[#allocation8 + $0xc0] sm:$0xff] }
0x11fc   :  { %v5474_v14 = vpop.eup %5473 }
0x11fd   :  { %v2369_v22 = vmul.f32 %v5474_v14, %v3372_v56  ;;  %v2674_v56 = vld [vmem:[#allocation8 + $0xc8] sm:$0xff] }
0x11fe   :  { %v6358_v14 = vpack.c.bf16 %v2674_v56, %v2673_v10  ;;  %v2784_v10 = vld [vmem:[#allocation8 + $0x160] sm:$0xff]  ;;  %v2785_v56 = vld [vmem:[#allocation8 + $0x168] sm:$0xff] }
0x11ff   :  { %v2370_v16 = vsub.f32 %v2369_v22, %v2265_v27  ;;  %v2675_v22 = vld [vmem:[#allocation8 + $0xd0] sm:$0xff] }
0x1201   :  { %v2371_v18 = vmul.f32 %v5472_v4, %v2370_v16  ;;  %v6350_v4 = vpack.c.bf16 %v2670_v57, %v2669_v43  ;;  %v2676_v16 = vld [vmem:[#allocation8 + $0xd8] sm:$0xff]  ;;  %v6408_v43 = vpack.c.bf16 %v2781_v33, %v2780_v13  ;;  %v2782_v57 = vld [vmem:[#allocation8 + $0x150] sm:$0xff] }
0x1202   :  { %v6412_v8 = vpack.c.bf16 %v2783_v6, %v2782_v57 }
0x1203   :  { %v6294_v59 = vadd.f32 %v2371_v18, %v2265_v27  ;;  %v2666_v27 = vld [vmem:[#allocation8 + $0x88] sm:$0xff]  ;;  %v6362_v18 = vpack.c.bf16 %v2676_v16, %v2675_v22  ;;  %v6416_v22 = vpack.c.bf16 %v2785_v56, %v2784_v10  ;;  %v2786_v16 = vld [vmem:[#allocation8 + $0x170] sm:$0xff] }
0x1204   :  { %v6343_v31 = vpack.c.bf16 %v2666_v27, %v2665_v2  ;;  %v2779_v2 = vld [vmem:[#allocation8 + $0x138] sm:$0xff] }
0x1205   :  { %4506 = vmatmul.mubr.f32.vlgmr.msra.gmra.mrb[16].mxu0 %v6294_v59 }
0x1206   :  { %4582 = vmatprep.mubr.msk.f32.mxu0 %vm5643_vm0, %v5644_v1  ;;  %5211 = vmatpush3.bf16.msra.mxu0 %v6343_v31 }
0x1207   :  { %5212 = vmatprep.subr.bf16.mxu0 %v5642_v0 }
0x120a   :  { %5214 = vmatpush3.bf16.msra.mxu0 %v6346_v38 }
0x120b   :  { %5215 = vmatprep.subr.bf16.mxu0 %v5642_v0 }
0x120e   :  { %5217 = vmatpush3.bf16.msra.mxu0 %v6350_v4 }
0x120f   :  { %5218 = vmatprep.subr.bf16.mxu0 %v5642_v0 }
0x1212   :  { %5220 = vmatpush3.bf16.msra.mxu0 %v6354_v9 }
0x1213   :  { %5221 = vmatprep.subr.bf16.mxu0 %v5642_v0 }
0x1216   :  { %5223 = vmatpush3.bf16.msra.mxu0 %v6358_v14 }
0x1217   :  { %5224 = vmatprep.subr.bf16.mxu0 %v5642_v0 }
0x121a   :  { %5226 = vmatpush3.bf16.msra.mxu0 %v6362_v18 }
0x121b   :  { %5227 = vmatprep.subr.bf16.mxu0 %v5642_v0 }
0x12d8   :  { %v2460_v17 = vpop.f32.mrb[16].mxu0 }
0x12d9   :  { %v2461_v52 = vadd.f32 %v6205_v47, %v2460_v17  ;;  %v4507_v11 = vpop.f32.mrb[17].mxu0 }
0x12db   :  { %v3375_v15 = vmul.f32 -1.442695, %v2461_v52 }
0x12dd   :  { %5475 = vpow2.f32 %v3375_v15 }
0x12e7   :  { %v5476_v62 = vpop.eup %5475 }
0x12e8   :  { %v2467_v24 = vadd.f32 1.0, %v5476_v62 }
0x12ea   :  { %5477 = vrcp.f32 %v2467_v24 }
0x12f4   :  { %v5478_v36 = vpop.eup %5477 }
0x12f5   :  { %v2470_v30 = vmul.f32 2.0, %v5478_v36  ;;  %v3377_v23 = vadd.f32 -1.0, %v5478_v36 }
0x12f7   :  { %v2473_v42 = vmul.f32 %v3377_v23, %v2470_v30  ;;  %v3376_v44 = vadd.f32 -1.0, %v2470_v30  ;;  %v2772_v23 = vld [vmem:[#allocation8 + $0x100] sm:$0xff] }
0x12f9   :  { %v2474_v45 = vadd.f32 1.0, %v2473_v42  ;;  %v2773_v42 = vld [vmem:[#allocation8 + $0x108] sm:$0xff] }
0x12fb   :  { %5479 = vrcp.f32 %v2474_v45  ;;  %v2774_v45 = vld [vmem:[#allocation8 + $0x110] sm:$0xff] }
0x1305   :  { %v5480_v48 = vpop.eup %5479 }
0x1306   :  { %v2476_v51 = vmul.f32 %v5480_v48, %v3376_v44  ;;  %v6393_v44 = vpack.c.bf16 %v2773_v42, %v2772_v23  ;;  %v2775_v48 = vld [vmem:[#allocation8 + $0x118] sm:$0xff] }
0x1308   :  { %v2477_v50 = vsub.f32 %v2476_v51, %v6294_v59  ;;  %v6396_v51 = vpack.c.bf16 %v2775_v48, %v2774_v45 }
0x130a   :  { %v2478_v54 = vmul.f32 %v5478_v36, %v2477_v50  ;;  %v2776_v50 = vld [vmem:[#allocation8 + $0x120] sm:$0xff] }
0x130c   :  { %v6337_v47 = vadd.f32 %v2478_v54, %v6294_v59  ;;  %v2677_v59 = vld [vmem:[#allocation8 + $0xe0] sm:$0xff]  ;;  %v2777_v54 = vld [vmem:[#allocation8 + $0x128] sm:$0xff] }
0x130d   :  { %v6366_v25 = vpack.c.bf16 %v2678_v60, %v2677_v59  ;;  %v2787_v59 = vld [vmem:[#allocation8 + $0x178] sm:$0xff] }
0x130e   :  { %2481 = vst [vmem:[#allocation10 + $0x28] sm:$0xff] %v6337_v47  ;;  %4548 = vmatmul.mubr.f32.vlgmr.msra.gmra.mrb[20].mxu1 %v6337_v47  ;;  %v6420_v60 = vpack.c.bf16 %v2787_v59, %v2786_v16 }
0x130f   :  { %4617 = vmatprep.mubr.msk.f32.mxu1 %vm5643_vm0, %v5644_v1  ;;  %5229 = vmatpush3.bf16.msra.mxu0 %v6366_v25 }
0x1310   :  { %5230 = vmatprep.subr.bf16.mxu0 %v5642_v0  ;;  %5235 = vmatpush3.bf16.msra.mxu1 %v6393_v44 }
0x1311   :  { %5236 = vmatprep.subr.bf16.mxu1 %v5642_v0 }
0x1313   :  { %5232 = vmatpush3.bf16.msra.mxu0 %v6370_v46 }
0x1314   :  { %5257 = vmatprep.subr.bf16.mxu0 %v5642_v0  ;;  %5238 = vmatpush3.bf16.msra.mxu1 %v6396_v51 }
0x1315   :  { %5239 = vmatprep.subr.bf16.mxu1 %v5642_v0 }
0x13e1   :  { %v2644_v7 = vpop.f32.mrb[20].mxu1 }
0x13e2   :  { %v5346_v39 = vadd.f32 %v6381_v63, %v2644_v7  ;;  %v4549_v21 = vpop.f32.mrb[21].mxu1 }
0x13e4   :  { %v3380_v28 = vmul.f32 -1.442695, %v5346_v39 }
0x13e6   :  { %5481 = vpow2.f32 %v3380_v28 }
0x13f0   :  { %v5482_v35 = vpop.eup %5481 }
0x13f1   :  { %v2652_v29 = vadd.f32 1.0, %v5482_v35 }
0x13f3   :  { %5483 = vrcp.f32 %v2652_v29 }
0x13fd   :  { %v5484_v49 = vpop.eup %5483 }
0x13fe   :  { %v2655_v3 = vmul.f32 2.0, %v5484_v49  ;;  %v3382_v34 = vadd.f32 -1.0, %v5484_v49 }
0x1400   :  { %v2658_v17 = vmul.f32 %v3382_v34, %v2655_v3  ;;  %v3381_v11 = vadd.f32 -1.0, %v2655_v3 }
0x1402   :  { %v2659_v52 = vadd.f32 1.0, %v2658_v17 }
0x1404   :  { %5485 = vrcp.f32 %v2659_v52 }
0x140e   :  { %v5486_v15 = vpop.eup %5485 }
0x140f   :  { %v2661_v62 = vmul.f32 %v5486_v15, %v3381_v11 }
0x1411   :  { %v2662_v24 = vsub.f32 %v2661_v62, %v6337_v47 }
0x1413   :  { %v2663_v36 = vmul.f32 %v5484_v49, %v2662_v24 }
0x1415   :  { %v6386_v30 = vadd.f32 %v2663_v36, %v6337_v47  ;;  %v2778_v47 = vld [vmem:[#allocation8 + $0x130] sm:$0xff] }
0x1416   :  { %v6404_v27 = vpack.c.bf16 %v2779_v2, %v2778_v47 }
0x1417   :  { %4583 = vmatmul.mubr.f32.vlgmr.msra.gmra.mrb[18].mxu0 %v6386_v30 }
0x1418   :  { %5259 = vmatpush3.bf16.msra.mxu0 %v5764_v12  ;;  %4624 = vmatprep.mubr.msk.f32.mxu0 %vm5643_vm0, %v5644_v1  ;;  %v6400_v12 = vpack.c.bf16 %v2777_v54, %v2776_v50 }
0x1419   :  { %5260 = vmatprep.subr.bf16.mxu0 %v5642_v0 }
0x141a   :  { %5241 = vmatpush3.bf16.msra.mxu1 %v6400_v12 }
0x141b   :  { %5242 = vmatprep.subr.bf16.mxu1 %v5642_v0 }
0x141e   :  { %5244 = vmatpush3.bf16.msra.mxu1 %v6404_v27 }
0x141f   :  { %5245 = vmatprep.subr.bf16.mxu1 %v5642_v0 }
0x1422   :  { %5247 = vmatpush3.bf16.msra.mxu1 %v6408_v43 }
0x1423   :  { %5248 = vmatprep.subr.bf16.mxu1 %v5642_v0 }
0x1426   :  { %5250 = vmatpush3.bf16.msra.mxu1 %v6412_v8 }
0x1427   :  { %5251 = vmatprep.subr.bf16.mxu1 %v5642_v0 }
0x142a   :  { %5253 = vmatpush3.bf16.msra.mxu1 %v6416_v22 }
0x142b   :  { %5254 = vmatprep.subr.bf16.mxu1 %v5642_v0 }
0x142e   :  { %5256 = vmatpush3.bf16.msra.mxu1 %v6420_v60 }
0x142f   :  { %5284 = vmatprep.subr.bf16.mxu1 %v5642_v0 }
0x14ea   :  { %v2752_v40 = vpop.f32.mrb[18].mxu0 }
0x14eb   :  { %v2753_v61 = vadd.f32 %v6428_v32, %v2752_v40  ;;  %v4584_v19 = vpop.f32.mrb[19].mxu0 }
0x14ed   :  { %v3384_v7 = vmul.f32 -1.442695, %v2753_v61 }
0x14ef   :  { %5487 = vpow2.f32 %v3384_v7 }
0x14f9   :  { %v5488_v39 = vpop.eup %5487 }
0x14fa   :  { %v2759_v21 = vadd.f32 1.0, %v5488_v39 }
0x14fc   :  { %5489 = vrcp.f32 %v2759_v21 }
0x1506   :  { %v5490_v28 = vpop.eup %5489 }
0x1507   :  { %v2762_v35 = vmul.f32 2.0, %v5490_v28  ;;  %v3386_v29 = vadd.f32 -1.0, %v5490_v28 }
0x1509   :  { %v2765_v49 = vmul.f32 %v3386_v29, %v2762_v35  ;;  %v3385_v34 = vadd.f32 -1.0, %v2762_v35 }
0x150b   :  { %v2766_v3 = vadd.f32 1.0, %v2765_v49 }
0x150d   :  { %5491 = vrcp.f32 %v2766_v3 }
0x1517   :  { %v5492_v17 = vpop.eup %5491 }
0x1518   :  { %v2768_v52 = vmul.f32 %v5492_v17, %v3385_v34 }
0x151a   :  { %v2769_v11 = vsub.f32 %v2768_v52, %v6386_v30 }
0x151c   :  { %v2770_v15 = vmul.f32 %v5490_v28, %v2769_v11 }
0x151e   :  { %v2771_v62 = vadd.f32 %v2770_v15, %v6386_v30 }
0x1520   :  { %4618 = vmatmul.mubr.f32.vlgmr.msra.gmra.mrb[22].mxu1 %v2771_v62 }
0x1521   :  { %5286 = vmatpush3.bf16.msra.mxu1 %v6343_v31  ;;  %4694 = vmatprep.mubr.msk.f32.mxu1 %vm5643_vm0, %v5644_v1  ;;  %v2882_v31 = vld [vmem:[#allocation2 + $0x38] sm:$0xff] }
0x1522   :  { %5287 = vmatprep.subr.bf16.mxu1 %v5642_v0  ;;  %4625 = vmatmul.mubr.msk.f32.vlgmr.msra.gmra.mrb[20].mxu0 %vm88_vm1, %v2882_v31 }
0x1523   :  { %5262 = vmatpush3.bf16.msra.mxu0 %v6300_v37  ;;  %4659 = vmatprep.mubr.msk.f32.mxu0 %vm5643_vm0, %v5644_v1  ;;  %v6472_v37 = vld [vmem:[%s6515_s5 + $0x2] ss:$0 sm:$0xff]  ;;  %s5645_s5 = smov [#allocation10]  }
0x1524   :  { %5263 = vmatprep.subr.bf16.mxu0 %v5642_v0  ;;  %s3285_s16 = sshll.u32 %s5645_s5, 4  ;;  %s3286_s16 = int_to_ptr.vmem [resolvable:$true] %s3285_s16 }
0x1525   :  { %5289 = vmatpush3.bf16.msra.mxu1 %v6346_v38  ;;  %s5606_s17 = scalar_lea.vmem %s3286_s16, 1024  ;;  %p5611_p5 = scmp.lt.s32.totalorder %s3286_s16, %s3286_s16 }
0x1526   :  { %5290 = vmatprep.subr.bf16.mxu1 %v5642_v0  ;;  %p5607_p4 = scmp.ne.s32.totalorder %s3286_s16, %s5606_s17  ;;  %p5612_p6 = scmp.lt.s32.totalorder %s5606_s17, %s5606_s17 }
0x1527   :  { %5265 = vmatpush3.bf16.msra.mxu0 %v6305_v58 }
0x1528   :  { %5266 = vmatprep.subr.bf16.mxu0 %v5642_v0  ;;  %p5613_p7 = por %p5612_p6, %p5611_p5 }
0x1529   :  { %5292 = vmatpush3.bf16.msra.mxu1 %v6350_v4 }
0x152a   :  { %5293 = vmatprep.subr.bf16.mxu1 %v5642_v0  ;;  %p5614_p8 = pnand %p5613_p7, %p5607_p4 }
0x152b   :  { %5268 = vmatpush3.bf16.msra.mxu0 %v6309_v55 }
0x152c   :  { %5269 = vmatprep.subr.bf16.mxu0 %v5642_v0 }
0x152d   :  { %5295 = vmatpush3.bf16.msra.mxu1 %v6354_v9 }
0x152e   :  { %5296 = vmatprep.subr.bf16.mxu1 %v5642_v0 }
0x152f   :  { %5271 = vmatpush3.bf16.msra.mxu0 %v6313_v20 }
0x1530   :  { %5272 = vmatprep.subr.bf16.mxu0 %v5642_v0 }
0x1531   :  { %5298 = vmatpush3.bf16.msra.mxu1 %v6358_v14 }
0x1532   :  { %5299 = vmatprep.subr.bf16.mxu1 %v5642_v0 }
0x1533   :  { %5274 = vmatpush3.bf16.msra.mxu0 %v6317_v26 }
0x1534   :  { %5275 = vmatprep.subr.bf16.mxu0 %v5642_v0 }
0x1535   :  { %5301 = vmatpush3.bf16.msra.mxu1 %v6362_v18 }
0x1536   :  { %5302 = vmatprep.subr.bf16.mxu1 %v5642_v0 }
0x1537   :  { %5277 = vmatpush3.bf16.msra.mxu0 %v6321_v41 }
0x1538   :  { %5278 = vmatprep.subr.bf16.mxu0 %v5642_v0 }
0x1539   :  { %5304 = vmatpush3.bf16.msra.mxu1 %v6366_v25 }
0x153a   :  { %5305 = vmatprep.subr.bf16.mxu1 %v5642_v0 }
0x153b   :  { %5280 = vmatpush3.bf16.msra.mxu0 %v6325_v53 }
0x153c   :  { %5281 = vmatprep.subr.bf16.mxu0 %v5642_v0 }
0x153d   :  { %5307 = vmatpush3.bf16.msra.mxu1 %v6370_v46 }
0x153f   :  { %5283 = vmatpush3.bf16.msra.mxu0 %v6329_v5 }
0x1540   :  { %5308 = vmatprep.subr.bf16.mxu0 %v5642_v0 }
0x15f3   :  { %v2859_v58 = vpop.f32.mrb[22].mxu1 }
0x15f4   :  { %v2860_v55 = vadd.f32 %v6472_v37, %v2859_v58  ;;  %v4619_v20 = vpop.f32.mrb[23].mxu1 }
0x15f6   :  { %v3388_v26 = vmul.f32 -1.442695, %v2860_v55 }
0x15f8   :  { %5493 = vpow2.f32 %v3388_v26 }
0x1602   :  { %v5494_v41 = vpop.eup %5493 }
0x1603   :  { %v2866_v38 = vadd.f32 1.0, %v5494_v41 }
0x1605   :  { %5495 = vrcp.f32 %v2866_v38 }
0x160f   :  { %v5496_v53 = vpop.eup %5495 }
0x1610   :  { %v2869_v4 = vmul.f32 2.0, %v5496_v53  ;;  %v3390_v9 = vadd.f32 -1.0, %v5496_v53 }
0x1612   :  { %v2872_v5 = vmul.f32 %v3390_v9, %v2869_v4  ;;  %v3389_v18 = vadd.f32 -1.0, %v2869_v4 }
0x1614   :  { %v2873_v14 = vadd.f32 1.0, %v2872_v5 }
0x1616   :  { %5497 = vrcp.f32 %v2873_v14 }
0x1620   :  { %v5498_v25 = vpop.eup %5497 }
0x1621   :  { %v2875_v46 = vmul.f32 %v5498_v25, %v3389_v18 }
0x1623   :  { %v2876_v24 = vsub.f32 %v2875_v46, %v2771_v62 }
0x1625   :  { %v2877_v36 = vmul.f32 %v5496_v53, %v2876_v24 }
0x1627   :  { %v2878_v30 = vadd.f32 %v2877_v36, %v2771_v62 }
0x1629   :  { %2880 = vst [vmem:[#allocation10 + $0x30] sm:$0xff] %v2878_v30  ;;  %4660 = vmatmul.mubr.f32.vlgmr.msra.gmra.mrb[20].mxu0 %v2878_v30 }
0x162a   :  { %5310 = vmatpush3.bf16.msra.mxu0 %v6393_v44  ;;  %4729 = vmatprep.mubr.msk.f32.mxu0 %vm5643_vm0, %v5644_v1 }
0x162b   :  { %5311 = vmatprep.subr.bf16.mxu0 %v5642_v0 }
0x162e   :  { %5313 = vmatpush3.bf16.msra.mxu0 %v6396_v51 }
0x162f   :  { %5314 = vmatprep.subr.bf16.mxu0 %v5642_v0 }
0x1632   :  { %5316 = vmatpush3.bf16.msra.mxu0 %v6400_v12 }
0x1633   :  { %5317 = vmatprep.subr.bf16.mxu0 %v5642_v0 }
0x1636   :  { %5319 = vmatpush3.bf16.msra.mxu0 %v6404_v27 }
0x1637   :  { %5320 = vmatprep.subr.bf16.mxu0 %v5642_v0 }
0x163a   :  { %5322 = vmatpush3.bf16.msra.mxu0 %v6408_v43 }
0x163b   :  { %5323 = vmatprep.subr.bf16.mxu0 %v5642_v0 }
0x163e   :  { %5325 = vmatpush3.bf16.msra.mxu0 %v6412_v8 }
0x163f   :  { %5326 = vmatprep.subr.bf16.mxu0 %v5642_v0 }
0x1642   :  { %5328 = vmatpush3.bf16.msra.mxu0 %v6416_v22 }
0x1643   :  { %5329 = vmatprep.subr.bf16.mxu0 %v5642_v0 }
0x1646   :  { %5331 = vmatpush3.bf16.msra.mxu0 %v6420_v60 }
0x16fc   :  { %v3043_v1 = vpop.f32.mrb[20].mxu0 }
0x16fd   :  { %v5348_v23 = vadd.f32 %v6381_v63, %v3043_v1  ;;  %v4661_v42 = vpop.f32.mrb[21].mxu0 }
0x16ff   :  { %v3393_v45 = vmul.f32 -1.442695, %v5348_v23 }
0x1701   :  { %5499 = vpow2.f32 %v3393_v45 }
0x170b   :  { %v5500_v44 = vpop.eup %5499 }
0x170c   :  { %v3051_v48 = vadd.f32 1.0, %v5500_v44 }
0x170e   :  { %5501 = vrcp.f32 %v3051_v48 }
0x1718   :  { %v5502_v51 = vpop.eup %5501 }
0x1719   :  { %v3054_v50 = vmul.f32 2.0, %v5502_v51  ;;  %v3395_v54 = vadd.f32 -1.0, %v5502_v51 }
0x171b   :  { %v3057_v12 = vmul.f32 %v3395_v54, %v3054_v50  ;;  %v3394_v2 = vadd.f32 -1.0, %v3054_v50 }
0x171d   :  { %v3058_v47 = vadd.f32 1.0, %v3057_v12 }
0x171f   :  { %5503 = vrcp.f32 %v3058_v47 }
0x1729   :  { %v5504_v27 = vpop.eup %5503 }
0x172a   :  { %v3060_v0 = vmul.f32 %v5504_v27, %v3394_v2 }
0x172c   :  { %v3061_v13 = vsub.f32 %v3060_v0, %v2878_v30 }
0x172e   :  { %v3062_v33 = vmul.f32 %v5502_v51, %v3061_v13 }
0x1730   :  { %v3063_v43 = vadd.f32 %v3062_v33, %v2878_v30 }
0x1732   :  { %4695 = vmatmul.mubr.f32.vlgmr.msra.gmra.mrb[24].mxu1 %v3063_v43 }
0x1805   :  { %v3151_v63 = vpop.f32.mrb[24].mxu1 }
0x1806   :  { %v3152_v57 = vadd.f32 %v6428_v32, %v3151_v63  ;;  %v4696_v6 = vpop.f32.mrb[25].mxu1 }
0x1808   :  { %v3397_v8 = vmul.f32 -1.442695, %v3152_v57 }
0x180a   :  { %5505 = vpow2.f32 %v3397_v8 }
0x1814   :  { %v5506_v10 = vpop.eup %5505 }
0x1815   :  { %v3158_v56 = vadd.f32 1.0, %v5506_v10 }
0x1817   :  { %5507 = vrcp.f32 %v3158_v56 }
0x1821   :  { %v5508_v22 = vpop.eup %5507 }
0x1822   :  { %v3161_v16 = vmul.f32 2.0, %v5508_v22  ;;  %v3399_v59 = vadd.f32 -1.0, %v5508_v22 }
0x1824   :  { %v3164_v60 = vmul.f32 %v3399_v59, %v3161_v16  ;;  %v3398_v61 = vadd.f32 -1.0, %v3161_v16 }
0x1826   :  { %v3165_v40 = vadd.f32 1.0, %v3164_v60 }
0x1828   :  { %5509 = vrcp.f32 %v3165_v40 }
0x1832   :  { %v5510_v19 = vpop.eup %5509 }
0x1833   :  { %v3167_v7 = vmul.f32 %v5510_v19, %v3398_v61 }
0x1835   :  { %v3168_v39 = vsub.f32 %v3167_v7, %v3063_v43 }
0x1837   :  { %v3169_v21 = vmul.f32 %v5508_v22, %v3168_v39 }
0x1839   :  { %v3170_v28 = vadd.f32 %v3169_v21, %v3063_v43 }
0x183b   :  { %4730 = vmatmul.mubr.f32.vlgmr.msra.gmra.mrb[22].mxu0 %v3170_v28 }
0x190e   :  { %v3258_v32 = vpop.f32.mrb[22].mxu0 }
0x190f   :  { %v3259_v35 = vadd.f32 %v6472_v37, %v3258_v32  ;;  %v4731_v29 = vpop.f32.mrb[23].mxu0 }
0x1911   :  { %v3401_v49 = vmul.f32 -1.442695, %v3259_v35 }
0x1913   :  { %5511 = vpow2.f32 %v3401_v49 }
0x191d   :  { %v5512_v3 = vpop.eup %5511 }
0x191e   :  { %v3265_v34 = vadd.f32 1.0, %v5512_v3 }
0x1920   :  { %5513 = vrcp.f32 %v3265_v34 }
0x192a   :  { %v5514_v17 = vpop.eup %5513 }
0x192b   :  { %v3268_v52 = vmul.f32 2.0, %v5514_v17  ;;  %v3403_v11 = vadd.f32 -1.0, %v5514_v17 }
0x192d   :  { %v3271_v15 = vmul.f32 %v3403_v11, %v3268_v52  ;;  %v3402_v31 = vadd.f32 -1.0, %v3268_v52 }
0x192f   :  { %v3272_v62 = vadd.f32 1.0, %v3271_v15 }
0x1931   :  { %5515 = vrcp.f32 %v3272_v62 }
0x193b   :  { %v5516_v58 = vpop.eup %5515 }
0x193c   :  { %v3274_v55 = vmul.f32 %v5516_v58, %v3402_v31 }
0x193e   :  { %v3275_v20 = vsub.f32 %v3274_v55, %v3170_v28 }
0x1940   :  { %v3276_v26 = vmul.f32 %v5514_v17, %v3275_v20 }
0x1942   :  { %v3277_v37 = vadd.f32 %v3276_v26, %v3170_v28 }
0x1944   :  { %3279 = vst [vmem:[#allocation10 + $0x38] sm:$0xff] %v3277_v37 }
0x1945   :  { %5617 = shalt.err (!%p5614_p8)
}
0x1946   :  { %s5618_s20 = scalar_lea.hbm %s6516_s6, 1024 }
0x1947   :  { %p5619_p9 = scmp.ne.s32.totalorder %s6516_s6, %s5618_s20  ;;  %p5622_p10 = scmp.lt.u32.totalorder %s5618_s20, %s6516_s6 }
0x1949   :  { %p5624_p11 = pnand %p5622_p10, %p5619_p9 }
0x194b   :  { %5627 = shalt.err (!%p5624_p11)
}
0x194c   :  { %3291 = dma.vmem_to_hbm [thread:$0]  %s3286_s16, 1024, %s6516_s6, [#allocation4], %s5638_s1, %s5638_s1, %s5639_s19  }
0x194d   :  { %5634 = dma.done.wait [#allocation4], 1024  }
0x194e   :  { %5635 = vsyncadd [#allocation4], 4294966272 }
0x194f   :  { %3295 = vsyncpa [#allocation3], 1 }
0x1950   :  { %3296 = vsyncpa [#allocation6], 1 }
0x1951   :  { %3297 = vsyncpa [#allocation9], 1 }
0x1952   :  { %3298 = vsyncpa [#allocation4], 1 }

</bundles_post_ra>
